<compile_context>
chip_gen: v7x
topology: tpu7x:2x2x1
jax: 0.10.0
libtpu: 0.0.40
codegen_flags: <defaults>
</compile_context>

<pallas_src>
import jax
import jax.numpy as jnp
from jax import lax
from jax.experimental import pallas as pl
from jax.experimental.pallas import tpu as pltpu


# ----------------------------------------------------------------------------
# Pallas kernel: whole block (2x conv3x3, ReLU, avgpool2, conv1x1, residual add)
# Channel dims (Ci, Co) are already padded to multiples of 128 by the wrapper.
# ----------------------------------------------------------------------------
def disc_opt_block_kernel(xpad_ref,   # (Bt, H+2, W+2, Ci)   zero-padded input tile
                          w1_ref,     # (9*Ci, Co)           conv2d1 weight (im2col layout)
                          b1_ref,     # (1, Co)
                          w2_ref,     # (9*Co, Co)           conv2d2 weight (im2col layout)
                          b2_ref,     # (1, Co)
                          w0_ref,     # (Ci, Co)             conv2d0 (1x1) weight
                          b0_ref,     # (1, Co)
                          pool_ref,   # (Bt*Hh*Wh, Bt*H*W)   2x2 avg-pool selection matrix
                          o_ref,      # (Bt, Hh, Wh, Co)
                          h1pad_ref,  # scratch (Bt, H+2, W+2, Co)  padded ReLU(conv1)
                          col_ref):   # scratch (Bt*H*W, 9*max(Ci, Co)) im2col slab
    Bt, Hp, Wp, Ci = xpad_ref.shape
    H, W = Hp - 2, Wp - 2
    Hh, Wh = H // 2, W // 2
    Co = o_ref.shape[-1]
    n = Bt * H * W

    # ---- conv2d1: 3x3 SAME as ONE im2col matmul (K = 9*Ci) ------------------
    k = 0
    for dh in range(3):
        for dw in range(3):
            col_ref[:, k * Ci:(k + 1) * Ci] = (
                xpad_ref[:, dh:dh + H, dw:dw + W, :].reshape(n, Ci))
            k += 1
    h1 = jnp.dot(col_ref[:, 0:9 * Ci], w1_ref[...],
                 preferred_element_type=jnp.float32)
    h1 = jnp.maximum(h1 + b1_ref[...], 0.0)          # bias + ReLU (f32, VPU)

    # ---- stash ReLU(conv1): zero ONLY the 1-px halo, overwrite the interior --
    h1pad_ref[:, 0:1, :, :] = jnp.zeros((Bt, 1, Wp, Co), jnp.float32)
    h1pad_ref[:, H + 1:Hp, :, :] = jnp.zeros((Bt, 1, Wp, Co), jnp.float32)
    h1pad_ref[:, :, 0:1, :] = jnp.zeros((Bt, Hp, 1, Co), jnp.float32)
    h1pad_ref[:, :, W + 1:Wp, :] = jnp.zeros((Bt, Hp, 1, Co), jnp.float32)
    h1pad_ref[:, 1:H + 1, 1:W + 1, :] = h1.reshape(Bt, H, W, Co)

    # ---- conv2d2: 3x3 SAME as ONE im2col matmul (K = 9*Co) ------------------
    k = 0
    for dh in range(3):
        for dw in range(3):
            col_ref[:, k * Co:(k + 1) * Co] = (
                h1pad_ref[:, dh:dh + H, dw:dw + W, :].reshape(n, Co))
            k += 1
    h2 = jnp.dot(col_ref[:, 0:9 * Co], w2_ref[...],
                 preferred_element_type=jnp.float32) + b2_ref[...]

    # ---- both 2x2 average pools as a single selection-matrix matmul ---------
    # pool_ref rows hold four 0.25 entries -> avg-pool over NHWC-flattened rows.
    P = pool_ref[...]                                       # (nh, n)
    pooled_main = jnp.dot(P, h2, preferred_element_type=jnp.float32)

    xin = xpad_ref[:, 1:H + 1, 1:W + 1, :].reshape(n, Ci)   # interior == original x
    pooled_x = jnp.dot(P, xin, preferred_element_type=jnp.float32)

    # ---- conv2d0 (1x1) on pooled shortcut + residual add --------------------
    sc = jnp.dot(pooled_x, w0_ref[...],
                 preferred_element_type=jnp.float32) + b0_ref[...]
    o_ref[...] = (pooled_main + sc).reshape(Bt, Hh, Wh, Co)


# ----------------------------------------------------------------------------
# Wrapper helpers
# ----------------------------------------------------------------------------
def _round_up(v, m):
    return (v + m - 1) // m * m


def _pool_matrix(bt, H, W):
    """Selection matrix P of shape (bt*Hh*Wh, bt*H*W): row q holds 0.25 at the
    four NHWC-flat input positions that average-pool into output pixel q."""
    Hh, Wh = H // 2, W // 2
    r = jnp.arange(bt * H * W)
    b = r // (H * W)
    h = (r // W) % H
    w = r % W
    q_of_r = (b * Hh + h // 2) * Wh + w // 2
    q = jnp.arange(bt * Hh * Wh)
    return (q[:, None] == q_of_r[None, :]).astype(jnp.float32) * 0.25


def _step_bytes(bt, H, W, Ci, Co):
    """Rough per-grid-step VMEM working-set estimate (f32)."""
    Hp, Wp = H + 2, W + 2
    Hh, Wh = H // 2, W // 2
    Cm = max(Ci, Co)
    f = 4
    win = f * bt * (2 * Hp * Wp * Ci        # xpad block (double-buffered)
                    + 2 * Hh * Wh * Co      # out block (double-buffered)
                    + Hp * Wp * Co          # h1pad scratch
                    + 9 * H * W * Cm        # im2col scratch
                    + 4 * H * W * Co)       # matmul outputs / live temporaries
    fixed = f * (9 * Ci * Co + 9 * Co * Co + Ci * Co + 3 * Co
                 + (bt * Hh * Wh) * (bt * H * W))   # weights + pool matrix
    return win + fixed


def _pick_batch_tile(B, H, W, Ci, Co, budget):
    # Keep >= 2 grid steps when possible so DMA/compute overlap (and v7x's two
    # TensorCores) actually have work to split.
    cap = max(1, B // 2)
    for bt in range(cap, 0, -1):
        if B % bt == 0 and _step_bytes(bt, H, W, Ci, Co) <= budget:
            return bt
    return 1


# ----------------------------------------------------------------------------
# Wrapper (layout transpose, channel/lane padding, pallas_call setup) - jitted.
# ----------------------------------------------------------------------------
def _disc_opt_block_impl(x_nchw, params):
    w1, b1, w2, b2, w0, b0 = params            # w1/w2: HWIO, w0: (Cin, Cout)
    x = jnp.transpose(x_nchw, (0, 2, 3, 1)).astype(jnp.float32)   # NCHW -> NHWC
    B, H, W, Cin = x.shape
    Cout = w1.shape[-1]
    assert H % 2 == 0 and W % 2 == 0, "avgpool(2) requires even spatial dims"

    # Lane-dense channel padding (no-op when channels are already 128-multiples).
    Ci = _round_up(Cin, 128)
    Co = _round_up(Cout, 128)
    Hp, Wp = H + 2, W + 2
    Hh, Wh = H // 2, W // 2

    xpad = jnp.pad(x, ((0, 0), (1, 1), (1, 1), (0, Ci - Cin)))
    w1m = jnp.pad(w1, ((0, 0), (0, 0), (0, Ci - Cin), (0, Co - Cout))
                  ).reshape(9 * Ci, Co)                    # (dh, dw, ci) tap order
    w2m = jnp.pad(w2, ((0, 0), (0, 0), (0, Co - Cout), (0, Co - Cout))
                  ).reshape(9 * Co, Co)
    w0m = jnp.pad(w0, ((0, Ci - Cin), (0, Co - Cout)))
    b1p = jnp.pad(b1, (0, Co - Cout)).reshape(1, Co)
    b2p = jnp.pad(b2, (0, Co - Cout)).reshape(1, Co)
    b0p = jnp.pad(b0, (0, Co - Cout)).reshape(1, Co)

    # Batch tile sized against a VMEM budget (also fits v7x's 64 MiB VMEM).
    budget = 24 * 1024 * 1024
    bt = _pick_batch_tile(B, H, W, Ci, Co, budget)
    vmem_limit = int(min(64 * 1024 * 1024,
                         max(16 * 1024 * 1024,
                             int(1.5 * _step_bytes(bt, H, W, Ci, Co)))))

    pool_mat = _pool_matrix(bt, H, W)                      # (bt*Hh*Wh, bt*H*W)
    n_t = bt * H * W
    nh_t = bt * Hh * Wh
    Cm = max(Ci, Co)

    out_nhwc = pl.pallas_call(
        disc_opt_block_kernel,
        out_shape=jax.ShapeDtypeStruct((B, Hh, Wh, Co), jnp.float32),
        grid_spec=pltpu.PrefetchScalarGridSpec(
            num_scalar_prefetch=0,
            grid=(B // bt,),
            in_specs=[
                pl.BlockSpec((bt, Hp, Wp, Ci), lambda b: (b, 0, 0, 0)),  # xpad
                pl.BlockSpec((9 * Ci, Co), lambda b: (0, 0)),            # w1 (DMA'd once)
                pl.BlockSpec((1, Co), lambda b: (0, 0)),                 # b1
                pl.BlockSpec((9 * Co, Co), lambda b: (0, 0)),            # w2
                pl.BlockSpec((1, Co), lambda b: (0, 0)),                 # b2
                pl.BlockSpec((Ci, Co), lambda b: (0, 0)),                # w0
                pl.BlockSpec((1, Co), lambda b: (0, 0)),                 # b0
                pl.BlockSpec((nh_t, n_t), lambda b: (0, 0)),             # pool matrix
            ],
            out_specs=pl.BlockSpec((bt, Hh, Wh, Co), lambda b: (b, 0, 0, 0)),
            scratch_shapes=[
                pltpu.VMEM((bt, Hp, Wp, Co), jnp.float32),   # padded ReLU(conv1)
                pltpu.VMEM((n_t, 9 * Cm), jnp.float32),      # shared im2col slab
            ],
        ),
        compiler_params=pltpu.CompilerParams(
            dimension_semantics=("parallel",),
            vmem_limit_bytes=vmem_limit),
    )(xpad, w1m, b1p, w2m, b2p, w0m, b0p, pool_mat)

    out_nhwc = out_nhwc[..., :Cout]                         # drop channel padding
    return jnp.transpose(out_nhwc, (0, 3, 1, 2))            # NHWC -> NCHW


disc_opt_block = jax.jit(_disc_opt_block_impl)


# ----------------------------------------------------------------------------
# Parameter setup (deterministic, synthetic). snconv2d == conv weight / sigma(W);
# spectral normalization is a weight reparameterization done ONCE here (not in
# the per-call forward path).
# ----------------------------------------------------------------------------
def spectral_normalize(w, n_iter=30):
    cout = w.shape[-1]
    mat = w.reshape(-1, cout)
    v = jnp.ones((cout,), jnp.float32) / jnp.sqrt(cout)
    u = mat @ v
    for _ in range(n_iter):
        u = mat @ v
        u = u / (jnp.linalg.norm(u) + 1e-12)
        v = mat.T @ u
        v = v / (jnp.linalg.norm(v) + 1e-12)
    sigma = u @ (mat @ v)
    return w / sigma


def make_params(key, cin, cout):
    ks = jax.random.split(key, 6)
    w1 = spectral_normalize(0.1 * jax.random.normal(ks[0], (3, 3, cin, cout), jnp.float32))
    b1 = 0.1 * jax.random.normal(ks[1], (cout,), jnp.float32)
    w2 = spectral_normalize(0.1 * jax.random.normal(ks[2], (3, 3, cout, cout), jnp.float32))
    b2 = 0.1 * jax.random.normal(ks[3], (cout,), jnp.float32)
    w0 = spectral_normalize(0.1 * jax.random.normal(ks[4], (cin, cout), jnp.float32))
    b0 = 0.1 * jax.random.normal(ks[5], (cout,), jnp.float32)
    return (w1, b1, w2, b2, w0, b0)


# ----------------------------------------------------------------------------
# Pure-JAX reference (same math, XLA convs) for verification
# ----------------------------------------------------------------------------
def _avgpool2(y):
    B, H, W, C = y.shape
    return y.reshape(B, H // 2, 2, W // 2, 2, C).mean(axis=(2, 4))


def ref_forward(x_nchw, params):
    w1, b1, w2, b2, w0, b0 = params
    dn = ('NHWC', 'HWIO', 'NHWC')
    hp = lax.Precision.HIGHEST
    x = jnp.transpose(x_nchw, (0, 2, 3, 1)).astype(jnp.float32)
    cin, cout = w0.shape

    h = lax.conv_general_dilated(x, w1, (1, 1), 'SAME',
                                 dimension_numbers=dn, precision=hp) + b1
    h = jnp.maximum(h, 0.0)
    h = lax.conv_general_dilated(h, w2, (1, 1), 'SAME',
                                 dimension_numbers=dn, precision=hp) + b2
    h = _avgpool2(h)
    x0 = _avgpool2(x)
    x0 = lax.conv_general_dilated(x0, w0.reshape(1, 1, cin, cout), (1, 1), 'VALID',
                                  dimension_numbers=dn, precision=hp) + b0
    return jnp.transpose(h + x0, (0, 3, 1, 2))


if __name__ == "__main__":
    B, Cin, H, W = 2, 4, 16, 16
    Cout = 8

    key = jax.random.PRNGKey(0)
    kx, kp = jax.random.split(key)
    x = jax.random.normal(kx, (B, Cin, H, W), jnp.float32)   # PyTorch-style NCHW
    params = make_params(kp, Cin, Cout)

    out = jax.block_until_ready(disc_opt_block(x, params))
    ref = jax.block_until_ready(ref_forward(x, params))

    assert out.shape == (B, Cout, H // 2, W // 2), out.shape
    max_err = float(jnp.max(jnp.abs(out - ref)))
    assert max_err < 1e-3, f"mismatch vs reference: max_err={max_err}"

    print("KERNEL_OK")
</pallas_src>

<mosaic_0001>
module attributes {stable_mosaic.version = 11 : i64} {
  func.func @disc_opt_block_kernel(%arg0: i32, %arg1: memref<1x18x18x128xf32, #tpu.memory_space<vmem>>, %arg2: memref<1152x128xf32, #tpu.memory_space<vmem>>, %arg3: memref<1x128xf32, #tpu.memory_space<vmem>>, %arg4: memref<1152x128xf32, #tpu.memory_space<vmem>>, %arg5: memref<1x128xf32, #tpu.memory_space<vmem>>, %arg6: memref<128x128xf32, #tpu.memory_space<vmem>>, %arg7: memref<1x128xf32, #tpu.memory_space<vmem>>, %arg8: memref<64x256xf32, #tpu.memory_space<vmem>>, %arg9: memref<1x8x8x128xf32, #tpu.memory_space<vmem>>, %arg10: memref<1x18x18x128xf32, #tpu.memory_space<vmem>>, %arg11: memref<256x1152xf32, #tpu.memory_space<vmem>>) attributes {dimension_semantics = [#tpu.dimension_semantics<parallel>], iteration_bounds = array<i64: 2>, scalar_prefetch = 0 : i64, scratch_operands = 2 : i64, tpu.core_type = #tpu.core_type<tc>, window_params = [{transform_indices = @transform_0, window_bounds = array<i64: 1, 18, 18, 128>}, {pipeline_mode = #tpu.pipeline_mode<synchronous>, transform_indices = @transform_1, window_bounds = array<i64: 1152, 128>}, {pipeline_mode = #tpu.pipeline_mode<synchronous>, transform_indices = @transform_2, window_bounds = array<i64: 1, 128>}, {pipeline_mode = #tpu.pipeline_mode<synchronous>, transform_indices = @transform_3, window_bounds = array<i64: 1152, 128>}, {pipeline_mode = #tpu.pipeline_mode<synchronous>, transform_indices = @transform_4, window_bounds = array<i64: 1, 128>}, {pipeline_mode = #tpu.pipeline_mode<synchronous>, transform_indices = @transform_5, window_bounds = array<i64: 128, 128>}, {pipeline_mode = #tpu.pipeline_mode<synchronous>, transform_indices = @transform_6, window_bounds = array<i64: 1, 128>}, {pipeline_mode = #tpu.pipeline_mode<synchronous>, transform_indices = @transform_7, window_bounds = array<i64: 64, 256>}, {transform_indices = @transform_8, window_bounds = array<i64: 1, 8, 8, 128>}]} {
    %c0 = arith.constant 0 : index
    %c0_0 = arith.constant 0 : index
    %c0_1 = arith.constant 0 : index
    %c0_2 = arith.constant 0 : index
    %0 = vector.load %arg1[%c0, %c0_0, %c0_1, %c0_2] : memref<1x18x18x128xf32, #tpu.memory_space<vmem>>, vector<1x16x16x128xf32>
    %1 = vector.shape_cast %0 : vector<1x16x16x128xf32> to vector<256x128xf32>
    %c0_3 = arith.constant 0 : index
    %c0_4 = arith.constant 0 : index
    %2 = vector.load %arg11[%c0_3, %c0_4] : memref<256x1152xf32, #tpu.memory_space<vmem>>, vector<256x128xf32>
    tpu.vector_store %arg11[%c0_3, %c0_4], %1 {strides = array<i32>} : memref<256x1152xf32, #tpu.memory_space<vmem>>, vector<256x128xf32>,
    %c0_5 = arith.constant 0 : index
    %c0_6 = arith.constant 0 : index
    %c1 = arith.constant 1 : index
    %c0_7 = arith.constant 0 : index
    %3 = vector.load %arg1[%c0_5, %c0_6, %c1, %c0_7] : memref<1x18x18x128xf32, #tpu.memory_space<vmem>>, vector<1x16x16x128xf32>
    %4 = vector.shape_cast %3 : vector<1x16x16x128xf32> to vector<256x128xf32>
    %c0_8 = arith.constant 0 : index
    %c128 = arith.constant 128 : index
    %5 = vector.load %arg11[%c0_8, %c128] : memref<256x1152xf32, #tpu.memory_space<vmem>>, vector<256x128xf32>
    tpu.vector_store %arg11[%c0_8, %c128], %4 {strides = array<i32>} : memref<256x1152xf32, #tpu.memory_space<vmem>>, vector<256x128xf32>,
    %c0_9 = arith.constant 0 : index
    %c0_10 = arith.constant 0 : index
    %c2 = arith.constant 2 : index
    %c0_11 = arith.constant 0 : index
    %6 = vector.load %arg1[%c0_9, %c0_10, %c2, %c0_11] : memref<1x18x18x128xf32, #tpu.memory_space<vmem>>, vector<1x16x16x128xf32>
    %7 = vector.shape_cast %6 : vector<1x16x16x128xf32> to vector<256x128xf32>
    %c0_12 = arith.constant 0 : index
    %c256 = arith.constant 256 : index
    %8 = vector.load %arg11[%c0_12, %c256] : memref<256x1152xf32, #tpu.memory_space<vmem>>, vector<256x128xf32>
    tpu.vector_store %arg11[%c0_12, %c256], %7 {strides = array<i32>} : memref<256x1152xf32, #tpu.memory_space<vmem>>, vector<256x128xf32>,
    %c0_13 = arith.constant 0 : index
    %c1_14 = arith.constant 1 : index
    %c0_15 = arith.constant 0 : index
    %c0_16 = arith.constant 0 : index
    %9 = vector.load %arg1[%c0_13, %c1_14, %c0_15, %c0_16] : memref<1x18x18x128xf32, #tpu.memory_space<vmem>>, vector<1x16x16x128xf32>
    %10 = vector.shape_cast %9 : vector<1x16x16x128xf32> to vector<256x128xf32>
    %c0_17 = arith.constant 0 : index
    %c384 = arith.constant 384 : index
    %11 = vector.load %arg11[%c0_17, %c384] : memref<256x1152xf32, #tpu.memory_space<vmem>>, vector<256x128xf32>
    tpu.vector_store %arg11[%c0_17, %c384], %10 {strides = array<i32>} : memref<256x1152xf32, #tpu.memory_space<vmem>>, vector<256x128xf32>,
    %c0_18 = arith.constant 0 : index
    %c1_19 = arith.constant 1 : index
    %c1_20 = arith.constant 1 : index
    %c0_21 = arith.constant 0 : index
    %12 = vector.load %arg1[%c0_18, %c1_19, %c1_20, %c0_21] : memref<1x18x18x128xf32, #tpu.memory_space<vmem>>, vector<1x16x16x128xf32>
    %13 = vector.shape_cast %12 : vector<1x16x16x128xf32> to vector<256x128xf32>
    %c0_22 = arith.constant 0 : index
    %c512 = arith.constant 512 : index
    %14 = vector.load %arg11[%c0_22, %c512] : memref<256x1152xf32, #tpu.memory_space<vmem>>, vector<256x128xf32>
    tpu.vector_store %arg11[%c0_22, %c512], %13 {strides = array<i32>} : memref<256x1152xf32, #tpu.memory_space<vmem>>, vector<256x128xf32>,
    %c0_23 = arith.constant 0 : index
    %c1_24 = arith.constant 1 : index
    %c2_25 = arith.constant 2 : index
    %c0_26 = arith.constant 0 : index
    %15 = vector.load %arg1[%c0_23, %c1_24, %c2_25, %c0_26] : memref<1x18x18x128xf32, #tpu.memory_space<vmem>>, vector<1x16x16x128xf32>
    %16 = vector.shape_cast %15 : vector<1x16x16x128xf32> to vector<256x128xf32>
    %c0_27 = arith.constant 0 : index
    %c640 = arith.constant 640 : index
    %17 = vector.load %arg11[%c0_27, %c640] : memref<256x1152xf32, #tpu.memory_space<vmem>>, vector<256x128xf32>
    tpu.vector_store %arg11[%c0_27, %c640], %16 {strides = array<i32>} : memref<256x1152xf32, #tpu.memory_space<vmem>>, vector<256x128xf32>,
    %c0_28 = arith.constant 0 : index
    %c2_29 = arith.constant 2 : index
    %c0_30 = arith.constant 0 : index
    %c0_31 = arith.constant 0 : index
    %18 = vector.load %arg1[%c0_28, %c2_29, %c0_30, %c0_31] : memref<1x18x18x128xf32, #tpu.memory_space<vmem>>, vector<1x16x16x128xf32>
    %19 = vector.shape_cast %18 : vector<1x16x16x128xf32> to vector<256x128xf32>
    %c0_32 = arith.constant 0 : index
    %c768 = arith.constant 768 : index
    %20 = vector.load %arg11[%c0_32, %c768] : memref<256x1152xf32, #tpu.memory_space<vmem>>, vector<256x128xf32>
    tpu.vector_store %arg11[%c0_32, %c768], %19 {strides = array<i32>} : memref<256x1152xf32, #tpu.memory_space<vmem>>, vector<256x128xf32>,
    %c0_33 = arith.constant 0 : index
    %c2_34 = arith.constant 2 : index
    %c1_35 = arith.constant 1 : index
    %c0_36 = arith.constant 0 : index
    %21 = vector.load %arg1[%c0_33, %c2_34, %c1_35, %c0_36] : memref<1x18x18x128xf32, #tpu.memory_space<vmem>>, vector<1x16x16x128xf32>
    %22 = vector.shape_cast %21 : vector<1x16x16x128xf32> to vector<256x128xf32>
    %c0_37 = arith.constant 0 : index
    %c896 = arith.constant 896 : index
    %23 = vector.load %arg11[%c0_37, %c896] : memref<256x1152xf32, #tpu.memory_space<vmem>>, vector<256x128xf32>
    tpu.vector_store %arg11[%c0_37, %c896], %22 {strides = array<i32>} : memref<256x1152xf32, #tpu.memory_space<vmem>>, vector<256x128xf32>,
    %c0_38 = arith.constant 0 : index
    %c2_39 = arith.constant 2 : index
    %c2_40 = arith.constant 2 : index
    %c0_41 = arith.constant 0 : index
    %24 = vector.load %arg1[%c0_38, %c2_39, %c2_40, %c0_41] : memref<1x18x18x128xf32, #tpu.memory_space<vmem>>, vector<1x16x16x128xf32>
    %25 = vector.shape_cast %24 : vector<1x16x16x128xf32> to vector<256x128xf32>
    %c0_42 = arith.constant 0 : index
    %c1024 = arith.constant 1024 : index
    %26 = vector.load %arg11[%c0_42, %c1024] : memref<256x1152xf32, #tpu.memory_space<vmem>>, vector<256x128xf32>
    tpu.vector_store %arg11[%c0_42, %c1024], %25 {strides = array<i32>} : memref<256x1152xf32, #tpu.memory_space<vmem>>, vector<256x128xf32>,
    %c0_43 = arith.constant 0 : index
    %c0_44 = arith.constant 0 : index
    %27 = vector.load %arg11[%c0_43, %c0_44] : memref<256x1152xf32, #tpu.memory_space<vmem>>, vector<256x1152xf32>
    %c0_45 = arith.constant 0 : index
    %c0_46 = arith.constant 0 : index
    %28 = vector.load %arg2[%c0_45, %c0_46] : memref<1152x128xf32, #tpu.memory_space<vmem>>, vector<1152x128xf32>
    %cst = arith.constant dense<0.000000e+00> : vector<256x128xf32>
    %29 = tpu.matmul %27, %28, %cst {dimension_numbers = #tpu.dot_dimension_numbers<[1], [0], [0], [1], [0, 0, 1, 1], [], []>} : vector<256x1152xf32>, vector<1152x128xf32>, vector<256x128xf32> -> vector<256x128xf32>
    %c0_47 = arith.constant 0 : index
    %c0_48 = arith.constant 0 : index
    %30 = vector.load %arg3[%c0_47, %c0_48] : memref<1x128xf32, #tpu.memory_space<vmem>>, vector<1x128xf32>
    %31 = vector.broadcast %30 : vector<1x128xf32> to vector<256x128xf32>
    %32 = arith.addf %29, %31 : vector<256x128xf32>
    %cst_49 = arith.constant 0.000000e+00 : f32
    %33 = vector.broadcast %cst_49 : f32 to vector<256x128xf32>
    %34 = arith.maximumf %32, %33 : vector<256x128xf32>
    %cst_50 = arith.constant 0.000000e+00 : f32
    %35 = vector.broadcast %cst_50 : f32 to vector<1x1x18x128xf32>
    %c0_51 = arith.constant 0 : index
    %c0_52 = arith.constant 0 : index
    %c0_53 = arith.constant 0 : index
    %c0_54 = arith.constant 0 : index
    %36 = vector.load %arg10[%c0_51, %c0_52, %c0_53, %c0_54] : memref<1x18x18x128xf32, #tpu.memory_space<vmem>>, vector<1x1x18x128xf32>
    tpu.vector_store %arg10[%c0_51, %c0_52, %c0_53, %c0_54], %35 {strides = array<i32>} : memref<1x18x18x128xf32, #tpu.memory_space<vmem>>, vector<1x1x18x128xf32>,
    %cst_55 = arith.constant 0.000000e+00 : f32
    %37 = vector.broadcast %cst_55 : f32 to vector<1x1x18x128xf32>
    %c0_56 = arith.constant 0 : index
    %c17 = arith.constant 17 : index
    %c0_57 = arith.constant 0 : index
    %c0_58 = arith.constant 0 : index
    %38 = vector.load %arg10[%c0_56, %c17, %c0_57, %c0_58] : memref<1x18x18x128xf32, #tpu.memory_space<vmem>>, vector<1x1x18x128xf32>
    tpu.vector_store %arg10[%c0_56, %c17, %c0_57, %c0_58], %37 {strides = array<i32>} : memref<1x18x18x128xf32, #tpu.memory_space<vmem>>, vector<1x1x18x128xf32>,
    %cst_59 = arith.constant 0.000000e+00 : f32
    %39 = vector.broadcast %cst_59 : f32 to vector<1x18x1x128xf32>
    %c0_60 = arith.constant 0 : index
    %c0_61 = arith.constant 0 : index
    %c0_62 = arith.constant 0 : index
    %c0_63 = arith.constant 0 : index
    %40 = vector.load %arg10[%c0_60, %c0_61, %c0_62, %c0_63] : memref<1x18x18x128xf32, #tpu.memory_space<vmem>>, vector<1x18x1x128xf32>
    tpu.vector_store %arg10[%c0_60, %c0_61, %c0_62, %c0_63], %39 {strides = array<i32>} : memref<1x18x18x128xf32, #tpu.memory_space<vmem>>, vector<1x18x1x128xf32>,
    %cst_64 = arith.constant 0.000000e+00 : f32
    %41 = vector.broadcast %cst_64 : f32 to vector<1x18x1x128xf32>
    %c0_65 = arith.constant 0 : index
    %c0_66 = arith.constant 0 : index
    %c17_67 = arith.constant 17 : index
    %c0_68 = arith.constant 0 : index
    %42 = vector.load %arg10[%c0_65, %c0_66, %c17_67, %c0_68] : memref<1x18x18x128xf32, #tpu.memory_space<vmem>>, vector<1x18x1x128xf32>
    tpu.vector_store %arg10[%c0_65, %c0_66, %c17_67, %c0_68], %41 {strides = array<i32>} : memref<1x18x18x128xf32, #tpu.memory_space<vmem>>, vector<1x18x1x128xf32>,
    %43 = vector.shape_cast %34 : vector<256x128xf32> to vector<1x16x16x128xf32>
    %c0_69 = arith.constant 0 : index
    %c1_70 = arith.constant 1 : index
    %c1_71 = arith.constant 1 : index
    %c0_72 = arith.constant 0 : index
    %44 = vector.load %arg10[%c0_69, %c1_70, %c1_71, %c0_72] : memref<1x18x18x128xf32, #tpu.memory_space<vmem>>, vector<1x16x16x128xf32>
    tpu.vector_store %arg10[%c0_69, %c1_70, %c1_71, %c0_72], %43 {strides = array<i32>} : memref<1x18x18x128xf32, #tpu.memory_space<vmem>>, vector<1x16x16x128xf32>,
    %c0_73 = arith.constant 0 : index
    %c0_74 = arith.constant 0 : index
    %c0_75 = arith.constant 0 : index
    %c0_76 = arith.constant 0 : index
    %45 = vector.load %arg10[%c0_73, %c0_74, %c0_75, %c0_76] : memref<1x18x18x128xf32, #tpu.memory_space<vmem>>, vector<1x16x16x128xf32>
    %46 = vector.shape_cast %45 : vector<1x16x16x128xf32> to vector<256x128xf32>
    %c0_77 = arith.constant 0 : index
    %c0_78 = arith.constant 0 : index
    %47 = vector.load %arg11[%c0_77, %c0_78] : memref<256x1152xf32, #tpu.memory_space<vmem>>, vector<256x128xf32>
    tpu.vector_store %arg11[%c0_77, %c0_78], %46 {strides = array<i32>} : memref<256x1152xf32, #tpu.memory_space<vmem>>, vector<256x128xf32>,
    %c0_79 = arith.constant 0 : index
    %c0_80 = arith.constant 0 : index
    %c1_81 = arith.constant 1 : index
    %c0_82 = arith.constant 0 : index
    %48 = vector.load %arg10[%c0_79, %c0_80, %c1_81, %c0_82] : memref<1x18x18x128xf32, #tpu.memory_space<vmem>>, vector<1x16x16x128xf32>
    %49 = vector.shape_cast %48 : vector<1x16x16x128xf32> to vector<256x128xf32>
    %c0_83 = arith.constant 0 : index
    %c128_84 = arith.constant 128 : index
    %50 = vector.load %arg11[%c0_83, %c128_84] : memref<256x1152xf32, #tpu.memory_space<vmem>>, vector<256x128xf32>
    tpu.vector_store %arg11[%c0_83, %c128_84], %49 {strides = array<i32>} : memref<256x1152xf32, #tpu.memory_space<vmem>>, vector<256x128xf32>,
    %c0_85 = arith.constant 0 : index
    %c0_86 = arith.constant 0 : index
    %c2_87 = arith.constant 2 : index
    %c0_88 = arith.constant 0 : index
    %51 = vector.load %arg10[%c0_85, %c0_86, %c2_87, %c0_88] : memref<1x18x18x128xf32, #tpu.memory_space<vmem>>, vector<1x16x16x128xf32>
    %52 = vector.shape_cast %51 : vector<1x16x16x128xf32> to vector<256x128xf32>
    %c0_89 = arith.constant 0 : index
    %c256_90 = arith.constant 256 : index
    %53 = vector.load %arg11[%c0_89, %c256_90] : memref<256x1152xf32, #tpu.memory_space<vmem>>, vector<256x128xf32>
    tpu.vector_store %arg11[%c0_89, %c256_90], %52 {strides = array<i32>} : memref<256x1152xf32, #tpu.memory_space<vmem>>, vector<256x128xf32>,
    %c0_91 = arith.constant 0 : index
    %c1_92 = arith.constant 1 : index
    %c0_93 = arith.constant 0 : index
    %c0_94 = arith.constant 0 : index
    %54 = vector.load %arg10[%c0_91, %c1_92, %c0_93, %c0_94] : memref<1x18x18x128xf32, #tpu.memory_space<vmem>>, vector<1x16x16x128xf32>
    %55 = vector.shape_cast %54 : vector<1x16x16x128xf32> to vector<256x128xf32>
    %c0_95 = arith.constant 0 : index
    %c384_96 = arith.constant 384 : index
    %56 = vector.load %arg11[%c0_95, %c384_96] : memref<256x1152xf32, #tpu.memory_space<vmem>>, vector<256x128xf32>
    tpu.vector_store %arg11[%c0_95, %c384_96], %55 {strides = array<i32>} : memref<256x1152xf32, #tpu.memory_space<vmem>>, vector<256x128xf32>,
    %c0_97 = arith.constant 0 : index
    %c1_98 = arith.constant 1 : index
    %c1_99 = arith.constant 1 : index
    %c0_100 = arith.constant 0 : index
    %57 = vector.load %arg10[%c0_97, %c1_98, %c1_99, %c0_100] : memref<1x18x18x128xf32, #tpu.memory_space<vmem>>, vector<1x16x16x128xf32>
    %58 = vector.shape_cast %57 : vector<1x16x16x128xf32> to vector<256x128xf32>
    %c0_101 = arith.constant 0 : index
    %c512_102 = arith.constant 512 : index
    %59 = vector.load %arg11[%c0_101, %c512_102] : memref<256x1152xf32, #tpu.memory_space<vmem>>, vector<256x128xf32>
    tpu.vector_store %arg11[%c0_101, %c512_102], %58 {strides = array<i32>} : memref<256x1152xf32, #tpu.memory_space<vmem>>, vector<256x128xf32>,
    %c0_103 = arith.constant 0 : index
    %c1_104 = arith.constant 1 : index
    %c2_105 = arith.constant 2 : index
    %c0_106 = arith.constant 0 : index
    %60 = vector.load %arg10[%c0_103, %c1_104, %c2_105, %c0_106] : memref<1x18x18x128xf32, #tpu.memory_space<vmem>>, vector<1x16x16x128xf32>
    %61 = vector.shape_cast %60 : vector<1x16x16x128xf32> to vector<256x128xf32>
    %c0_107 = arith.constant 0 : index
    %c640_108 = arith.constant 640 : index
    %62 = vector.load %arg11[%c0_107, %c640_108] : memref<256x1152xf32, #tpu.memory_space<vmem>>, vector<256x128xf32>
    tpu.vector_store %arg11[%c0_107, %c640_108], %61 {strides = array<i32>} : memref<256x1152xf32, #tpu.memory_space<vmem>>, vector<256x128xf32>,
    %c0_109 = arith.constant 0 : index
    %c2_110 = arith.constant 2 : index
    %c0_111 = arith.constant 0 : index
    %c0_112 = arith.constant 0 : index
    %63 = vector.load %arg10[%c0_109, %c2_110, %c0_111, %c0_112] : memref<1x18x18x128xf32, #tpu.memory_space<vmem>>, vector<1x16x16x128xf32>
    %64 = vector.shape_cast %63 : vector<1x16x16x128xf32> to vector<256x128xf32>
    %c0_113 = arith.constant 0 : index
    %c768_114 = arith.constant 768 : index
    %65 = vector.load %arg11[%c0_113, %c768_114] : memref<256x1152xf32, #tpu.memory_space<vmem>>, vector<256x128xf32>
    tpu.vector_store %arg11[%c0_113, %c768_114], %64 {strides = array<i32>} : memref<256x1152xf32, #tpu.memory_space<vmem>>, vector<256x128xf32>,
    %c0_115 = arith.constant 0 : index
    %c2_116 = arith.constant 2 : index
    %c1_117 = arith.constant 1 : index
    %c0_118 = arith.constant 0 : index
    %66 = vector.load %arg10[%c0_115, %c2_116, %c1_117, %c0_118] : memref<1x18x18x128xf32, #tpu.memory_space<vmem>>, vector<1x16x16x128xf32>
    %67 = vector.shape_cast %66 : vector<1x16x16x128xf32> to vector<256x128xf32>
    %c0_119 = arith.constant 0 : index
    %c896_120 = arith.constant 896 : index
    %68 = vector.load %arg11[%c0_119, %c896_120] : memref<256x1152xf32, #tpu.memory_space<vmem>>, vector<256x128xf32>
    tpu.vector_store %arg11[%c0_119, %c896_120], %67 {strides = array<i32>} : memref<256x1152xf32, #tpu.memory_space<vmem>>, vector<256x128xf32>,
    %c0_121 = arith.constant 0 : index
    %c2_122 = arith.constant 2 : index
    %c2_123 = arith.constant 2 : index
    %c0_124 = arith.constant 0 : index
    %69 = vector.load %arg10[%c0_121, %c2_122, %c2_123, %c0_124] : memref<1x18x18x128xf32, #tpu.memory_space<vmem>>, vector<1x16x16x128xf32>
    %70 = vector.shape_cast %69 : vector<1x16x16x128xf32> to vector<256x128xf32>
    %c0_125 = arith.constant 0 : index
    %c1024_126 = arith.constant 1024 : index
    %71 = vector.load %arg11[%c0_125, %c1024_126] : memref<256x1152xf32, #tpu.memory_space<vmem>>, vector<256x128xf32>
    tpu.vector_store %arg11[%c0_125, %c1024_126], %70 {strides = array<i32>} : memref<256x1152xf32, #tpu.memory_space<vmem>>, vector<256x128xf32>,
    %c0_127 = arith.constant 0 : index
    %c0_128 = arith.constant 0 : index
    %72 = vector.load %arg11[%c0_127, %c0_128] : memref<256x1152xf32, #tpu.memory_space<vmem>>, vector<256x1152xf32>
    %c0_129 = arith.constant 0 : index
    %c0_130 = arith.constant 0 : index
    %73 = vector.load %arg4[%c0_129, %c0_130] : memref<1152x128xf32, #tpu.memory_space<vmem>>, vector<1152x128xf32>
    %cst_131 = arith.constant dense<0.000000e+00> : vector<256x128xf32>
    %74 = tpu.matmul %72, %73, %cst_131 {dimension_numbers = #tpu.dot_dimension_numbers<[1], [0], [0], [1], [0, 0, 1, 1], [], []>} : vector<256x1152xf32>, vector<1152x128xf32>, vector<256x128xf32> -> vector<256x128xf32>
    %c0_132 = arith.constant 0 : index
    %c0_133 = arith.constant 0 : index
    %75 = vector.load %arg5[%c0_132, %c0_133] : memref<1x128xf32, #tpu.memory_space<vmem>>, vector<1x128xf32>
    %76 = vector.broadcast %75 : vector<1x128xf32> to vector<256x128xf32>
    %77 = arith.addf %74, %76 : vector<256x128xf32>
    %c0_134 = arith.constant 0 : index
    %c0_135 = arith.constant 0 : index
    %78 = vector.load %arg8[%c0_134, %c0_135] : memref<64x256xf32, #tpu.memory_space<vmem>>, vector<64x256xf32>
    %cst_136 = arith.constant dense<0.000000e+00> : vector<64x128xf32>
    %79 = tpu.matmul %78, %77, %cst_136 {dimension_numbers = #tpu.dot_dimension_numbers<[1], [0], [0], [1], [0, 0, 1, 1], [], []>} : vector<64x256xf32>, vector<256x128xf32>, vector<64x128xf32> -> vector<64x128xf32>
    %c0_137 = arith.constant 0 : index
    %c1_138 = arith.constant 1 : index
    %c1_139 = arith.constant 1 : index
    %c0_140 = arith.constant 0 : index
    %80 = vector.load %arg1[%c0_137, %c1_138, %c1_139, %c0_140] : memref<1x18x18x128xf32, #tpu.memory_space<vmem>>, vector<1x16x16x128xf32>
    %81 = vector.shape_cast %80 : vector<1x16x16x128xf32> to vector<256x128xf32>
    %cst_141 = arith.constant dense<0.000000e+00> : vector<64x128xf32>
    %82 = tpu.matmul %78, %81, %cst_141 {dimension_numbers = #tpu.dot_dimension_numbers<[1], [0], [0], [1], [0, 0, 1, 1], [], []>} : vector<64x256xf32>, vector<256x128xf32>, vector<64x128xf32> -> vector<64x128xf32>
    %c0_142 = arith.constant 0 : index
    %c0_143 = arith.constant 0 : index
    %83 = vector.load %arg6[%c0_142, %c0_143] : memref<128x128xf32, #tpu.memory_space<vmem>>, vector<128x128xf32>
    %cst_144 = arith.constant dense<0.000000e+00> : vector<64x128xf32>
    %84 = tpu.matmul %82, %83, %cst_144 {dimension_numbers = #tpu.dot_dimension_numbers<[1], [0], [0], [1], [0, 0, 1, 1], [], []>} : vector<64x128xf32>, vector<128x128xf32>, vector<64x128xf32> -> vector<64x128xf32>
    %c0_145 = arith.constant 0 : index
    %c0_146 = arith.constant 0 : index
    %85 = vector.load %arg7[%c0_145, %c0_146] : memref<1x128xf32, #tpu.memory_space<vmem>>, vector<1x128xf32>
    %86 = vector.broadcast %85 : vector<1x128xf32> to vector<64x128xf32>
    %87 = arith.addf %84, %86 : vector<64x128xf32>
    %88 = arith.addf %79, %87 : vector<64x128xf32>
    %89 = vector.shape_cast %88 : vector<64x128xf32> to vector<1x8x8x128xf32>
    %c0_147 = arith.constant 0 : index
    %c0_148 = arith.constant 0 : index
    %c0_149 = arith.constant 0 : index
    %c0_150 = arith.constant 0 : index
    %90 = vector.load %arg9[%c0_147, %c0_148, %c0_149, %c0_150] : memref<1x8x8x128xf32, #tpu.memory_space<vmem>>, vector<1x8x8x128xf32>
    tpu.vector_store %arg9[%c0_147, %c0_148, %c0_149, %c0_150], %89 {strides = array<i32>} : memref<1x8x8x128xf32, #tpu.memory_space<vmem>>, vector<1x8x8x128xf32>,
    return
  }
  func.func @transform_0(%arg0: i32) -> (i32, i32, i32, i32) {
    %c0_i32 = arith.constant 0 : i32
    %c0_i32_0 = arith.constant 0 : i32
    %c0_i32_1 = arith.constant 0 : i32
    %c0_i32_2 = arith.constant 0 : i32
    return %arg0, %c0_i32, %c0_i32_0, %c0_i32_1 : i32, i32, i32, i32
  }
  func.func @transform_1(%arg0: i32) -> (i32, i32) {
    %c0_i32 = arith.constant 0 : i32
    %c0_i32_0 = arith.constant 0 : i32
    %c0_i32_1 = arith.constant 0 : i32
    return %c0_i32, %c0_i32_0 : i32, i32
  }
  func.func @transform_2(%arg0: i32) -> (i32, i32) {
    %c0_i32 = arith.constant 0 : i32
    %c0_i32_0 = arith.constant 0 : i32
    %c0_i32_1 = arith.constant 0 : i32
    return %c0_i32, %c0_i32_0 : i32, i32
  }
  func.func @transform_3(%arg0: i32) -> (i32, i32) {
    %c0_i32 = arith.constant 0 : i32
    %c0_i32_0 = arith.constant 0 : i32
    %c0_i32_1 = arith.constant 0 : i32
    return %c0_i32, %c0_i32_0 : i32, i32
  }
  func.func @transform_4(%arg0: i32) -> (i32, i32) {
    %c0_i32 = arith.constant 0 : i32
    %c0_i32_0 = arith.constant 0 : i32
    %c0_i32_1 = arith.constant 0 : i32
    return %c0_i32, %c0_i32_0 : i32, i32
  }
  func.func @transform_5(%arg0: i32) -> (i32, i32) {
    %c0_i32 = arith.constant 0 : i32
    %c0_i32_0 = arith.constant 0 : i32
    %c0_i32_1 = arith.constant 0 : i32
    return %c0_i32, %c0_i32_0 : i32, i32
  }
  func.func @transform_6(%arg0: i32) -> (i32, i32) {
    %c0_i32 = arith.constant 0 : i32
    %c0_i32_0 = arith.constant 0 : i32
    %c0_i32_1 = arith.constant 0 : i32
    return %c0_i32, %c0_i32_0 : i32, i32
  }
  func.func @transform_7(%arg0: i32) -> (i32, i32) {
    %c0_i32 = arith.constant 0 : i32
    %c0_i32_0 = arith.constant 0 : i32
    %c0_i32_1 = arith.constant 0 : i32
    return %c0_i32, %c0_i32_0 : i32, i32
  }
  func.func @transform_8(%arg0: i32) -> (i32, i32, i32, i32) {
    %c0_i32 = arith.constant 0 : i32
    %c0_i32_0 = arith.constant 0 : i32
    %c0_i32_1 = arith.constant 0 : i32
    %c0_i32_2 = arith.constant 0 : i32
    return %arg0, %c0_i32, %c0_i32_0, %c0_i32_1 : i32, i32, i32, i32
  }
}

</mosaic_0001>

<bundles_post_ra>
// kernel: _disc_opt_block_impl.1
= control target key start
LH: loop header
LB: loop body
LE: loop exit
PB: predicated region body
PF: predicated region fallthrough
CT: control target
= control target key end

     0   :  { %s6879_s27 = smov 0   ;;  %s9442_s0 = inlined_call_operand.vmem [shape: f32[2,18,18,128], index: 0, kind: input, shape index: {}]   ;;  %s9443_s1 = inlined_call_operand.vmem [shape: f32[1152,128], index: 1, kind: input, shape index: {}]   ;;  %s9444_s2 = inlined_call_operand.vmem [shape: f32[1,128], index: 2, kind: input, shape index: {}]   ;;  %s9445_s3 = inlined_call_operand.vmem [shape: f32[1152,128], index: 3, kind: input, shape index: {}]   ;;  %s9446_s4 = inlined_call_operand.vmem [shape: f32[1,128], index: 4, kind: input, shape index: {}]   ;;  %s9447_s5 = inlined_call_operand.vmem [shape: f32[128,128], index: 5, kind: input, shape index: {}]   ;;  %s9448_s6 = inlined_call_operand.vmem [shape: f32[1,128], index: 6, kind: input, shape index: {}]   ;;  %s9449_s7 = inlined_call_operand.vmem [shape: f32[64,256], index: 7, kind: input, shape index: {}]   ;;  %s9450_s8 = inlined_call_operand.vmem [shape: f32[2,8,8,128], index: 8, kind: output, shape index: {}]  }
   0x1 LB: > { %s5146_s28 = sadd.s32 4294967295, %s6830_s27   ;;  %p5150_p0 = scmp.ge.s32.totalorder %s6830_s27, 1  ;;  %s6830_s27 = sphi %s6879_s27, %s18_s27  }
   0x2   : > { %p262_p1 = scmp.lt.s32.totalorder %s6830_s27, 3 }
   0x4   : > { %p263_p2 = pnand %p5150_p0, %p262_p1 }
   0x6   : > { %266 = sbr.rel (%p263_p2) target bundleno = 1659 (0x67b), region = 52 }
   0xd   : > { %v1172_v0 = vld [vmem:[%s9443_s1] sm:$0xff]  ;;  %v1173_v1 = vld [vmem:[%s9443_s1 + $0x8] sm:$0xff]  ;;  %v1174_v2 = vld [vmem:[%s9443_s1 + $0x10] sm:$0xff]  ;;  %p296_p3 = scmp.lt.s32.totalorder %s5146_s28, 1  ;;  %v9451_v3 = vmov 0.0|0.0  }
   0xe   : > { %5820 = vmatprep.subr.bf16.mxu0 %v9451_v3  ;;  %v5821_v4 = vpack.c.bf16 %v1173_v1, %v1172_v0  ;;  %v1175_v5 = vld [vmem:[%s9443_s1 + $0x18] sm:$0xff]  ;;  %v1176_v7 = vld [vmem:[%s9443_s1 + $0x20] sm:$0xff]  ;;  %v1177_v8 = vld [vmem:[%s9443_s1 + $0x28] sm:$0xff] }
   0xf   : > { %s9526_s28 = smov (!%p296_p3, %s5146_s28), 1  ;;  %v5824_v6 = vpack.c.bf16 %v1175_v5, %v1174_v2  ;;  %v5827_v9 = vpack.c.bf16 %v1177_v8, %v1176_v7  ;;  %v1178_v10 = vld [vmem:[%s9443_s1 + $0x30] sm:$0xff]  ;;  %v1179_v11 = vld [vmem:[%s9443_s1 + $0x38] sm:$0xff]  ;;  %v1180_v14 = vld [vmem:[%s9443_s1 + $0x40] sm:$0xff] }
  0x10   : > { %5822 = vmatpush1.bf16.msra.mxu0 %v5821_v4  ;;  %s6812_s19 = smul.u32 432, %s9526_s28  ;;  %v5830_v13 = vpack.c.bf16 %v1179_v11, %v1178_v10  ;;  %v1181_v15 = vld [vmem:[%s9443_s1 + $0x48] sm:$0xff]  ;;  %v1182_v17 = vld [vmem:[%s9443_s1 + $0x50] sm:$0xff]  ;;  %v1183_v18 = vld [vmem:[%s9443_s1 + $0x58] sm:$0xff]  ;;  %s5383_s26 = sshll.u32 %s9526_s28, 6 }
  0x11   : > { %5823 = vmatprep.subr.bf16.mxu0 %v9451_v3  ;;  %v5833_v16 = vpack.c.bf16 %v1181_v15, %v1180_v14  ;;  %v5836_v19 = vpack.c.bf16 %v1183_v18, %v1182_v17  ;;  %v1184_v20 = vld [vmem:[%s9443_s1 + $0x60] sm:$0xff]  ;;  %v1185_v21 = vld [vmem:[%s9443_s1 + $0x68] sm:$0xff]  ;;  %v1186_v23 = vld [vmem:[%s9443_s1 + $0x70] sm:$0xff]  ;;  %s9429_s9 = scalar_lea.vmem %s9450_s8, %s5383_s26 }
  0x12   : > { %s6913_s22 = scalar_lea.vmem %s9442_s0, %s6812_s19  ;;  %v5839_v22 = vpack.c.bf16 %v1185_v21, %v1184_v20  ;;  %v1187_v24 = vld [vmem:[%s9443_s1 + $0x78] sm:$0xff]  ;;  %v1188_v26 = vld [vmem:[%s9443_s1 + $0x80] sm:$0xff]  ;;  %v1189_v27 = vld [vmem:[%s9443_s1 + $0x88] sm:$0xff] }
  0x13   : > { %v370_v12 = vld [vmem:[%s6913_s22 + $0x1] sm:$0xff]  ;;  %v5842_v25 = vpack.c.bf16 %v1187_v24, %v1186_v23  ;;  %v5845_v28 = vpack.c.bf16 %v1189_v27, %v1188_v26  ;;  %v1190_v29 = vld [vmem:[%s9443_s1 + $0x90] sm:$0xff]  ;;  %v1191_v30 = vld [vmem:[%s9443_s1 + $0x98] sm:$0xff] }
  0x14   : > { %5825 = vmatpush1.bf16.msra.mxu0 %v5824_v6  ;;  %1387 = vmatprep.mubr.f32.mxu0 %v370_v12  ;;  %v5848_v31 = vpack.c.bf16 %v1191_v30, %v1190_v29  ;;  %v1192_v32 = vld [vmem:[%s9443_s1 + $0xa0] sm:$0xff]  ;;  %v1193_v33 = vld [vmem:[%s9443_s1 + $0xa8] sm:$0xff]  ;;  %v1194_v35 = vld [vmem:[%s9443_s1 + $0xb0] sm:$0xff] }
  0x15   : > { %5826 = vmatprep.subr.bf16.mxu0 %v9451_v3  ;;  %v5851_v34 = vpack.c.bf16 %v1193_v33, %v1192_v32  ;;  %v1195_v36 = vld [vmem:[%s9443_s1 + $0xb8] sm:$0xff]  ;;  %v1196_v38 = vld [vmem:[%s9443_s1 + $0xc0] sm:$0xff]  ;;  %v1197_v39 = vld [vmem:[%s9443_s1 + $0xc8] sm:$0xff] }
  0x16   : > { %v5854_v37 = vpack.c.bf16 %v1195_v36, %v1194_v35  ;;  %v5857_v40 = vpack.c.bf16 %v1197_v39, %v1196_v38  ;;  %v1198_v41 = vld [vmem:[%s9443_s1 + $0xd0] sm:$0xff]  ;;  %v1199_v42 = vld [vmem:[%s9443_s1 + $0xd8] sm:$0xff]  ;;  %v1200_v44 = vld [vmem:[%s9443_s1 + $0xe0] sm:$0xff] }
  0x17   : > { %v5860_v43 = vpack.c.bf16 %v1199_v42, %v1198_v41  ;;  %v1201_v45 = vld [vmem:[%s9443_s1 + $0xe8] sm:$0xff]  ;;  %v1202_v47 = vld [vmem:[%s9443_s1 + $0xf0] sm:$0xff]  ;;  %v1203_v48 = vld [vmem:[%s9443_s1 + $0xf8] sm:$0xff] }
  0x18   : > { %5828 = vmatpush1.bf16.msra.mxu0 %v5827_v9  ;;  %v5863_v46 = vpack.c.bf16 %v1201_v45, %v1200_v44  ;;  %v5866_v49 = vpack.c.bf16 %v1203_v48, %v1202_v47  ;;  %v1204_v50 = vld [vmem:[%s9443_s1 + $0x100] sm:$0xff]  ;;  %v1205_v51 = vld [vmem:[%s9443_s1 + $0x108] sm:$0xff]  ;;  %v1206_v55 = vld [vmem:[%s9443_s1 + $0x110] sm:$0xff] }
  0x19   : > { %5829 = vmatprep.subr.bf16.mxu0 %v9451_v3  ;;  %v306_v52 = vld [vmem:[%s6913_s22] sm:$0xff]  ;;  %v5869_v53 = vpack.c.bf16 %v1205_v51, %v1204_v50  ;;  %v371_v54 = vld [vmem:[%s6913_s22 + $0x9] sm:$0xff]  ;;  %v1207_v56 = vld [vmem:[%s9443_s1 + $0x118] sm:$0xff] }
  0x1a   : > { %v307_v57 = vld [vmem:[%s6913_s22 + $0x8] sm:$0xff]  ;;  %v5872_v58 = vpack.c.bf16 %v1207_v56, %v1206_v55  ;;  %v7025_v59 = vld [vmem:[%s6913_s22 + $0x19] sm:$0xff]  ;;  %v1210_v1 = vld [vmem:[%s9443_s1 + $0x130] sm:$0xff] }
  0x1b   : > { %v1208_v60 = vld [vmem:[%s9443_s1 + $0x120] sm:$0xff]  ;;  %v1209_v61 = vld [vmem:[%s9443_s1 + $0x128] sm:$0xff]  ;;  %v7036_v62 = vld [vmem:[%s6913_s22 + $0x18] sm:$0xff] }
  0x1c   : > { %5831 = vmatpush1.bf16.msra.mxu0 %v5830_v13  ;;  %v5875_v63 = vpack.c.bf16 %v1209_v61, %v1208_v60  ;;  %v7039_v0 = vld [vmem:[%s6913_s22 + $0x21] sm:$0xff]  ;;  %v1211_v2 = vld [vmem:[%s9443_s1 + $0x138] sm:$0xff]  ;;  %v7066_v9 = vld [vmem:[%s6913_s22 + $0x30] sm:$0xff] }
  0x1d   : > { %5832 = vmatprep.subr.bf16.mxu0 %v9451_v3  ;;  %v7051_v4 = vld [vmem:[%s6913_s22 + $0x20] sm:$0xff]  ;;  %v5878_v5 = vpack.c.bf16 %v1211_v2, %v1210_v1  ;;  %v7054_v6 = vld [vmem:[%s6913_s22 + $0x31] sm:$0xff]  ;;  %v1213_v8 = vld [vmem:[%s9443_s1 + $0x148] sm:$0xff] }
  0x1e   : > { %v1212_v7 = vld [vmem:[%s9443_s1 + $0x140] sm:$0xff]  ;;  %v7069_v11 = vld [vmem:[%s6913_s22 + $0x32] sm:$0xff]  ;;  %v7088_v17 = vld [vmem:[%s6913_s22 + $0x49] sm:$0xff] }
  0x1f   : > { %v5881_v10 = vpack.c.bf16 %v1213_v8, %v1212_v7  ;;  %v7072_v12 = vld [vmem:[%s6913_s22 + $0x39] sm:$0xff]  ;;  %v1214_v13 = vld [vmem:[%s9443_s1 + $0x150] sm:$0xff]  ;;  %5648 = vmatprep.mubr.f32.mxu1 %v7069_v11  ;;  %v7100_v20 = vld [vmem:[%s6913_s22 + $0x48] sm:$0xff] }
  0x20   : > { %5834 = vmatpush1.bf16.msra.mxu0 %v5833_v16  ;;  %v1215_v14 = vld [vmem:[%s9443_s1 + $0x158] sm:$0xff]  ;;  %v1216_v18 = vld [vmem:[%s9443_s1 + $0x160] sm:$0xff]  ;;  %v1218_v23 = vld [vmem:[%s9443_s1 + $0x170] sm:$0xff] }
  0x21   : > { %5835 = vmatprep.subr.bf16.mxu0 %v9451_v3  ;;  %v7085_v15 = vld [vmem:[%s6913_s22 + $0x38] sm:$0xff]  ;;  %v5884_v16 = vpack.c.bf16 %v1215_v14, %v1214_v13  ;;  %v7118_v27 = vld [vmem:[%s6913_s22 + $0x61] sm:$0xff]  ;;  %v7133_v32 = vld [vmem:[%s6913_s22 + $0x69] sm:$0xff] }
  0x22   : > { %v1219_v24 = vld [vmem:[%s9443_s1 + $0x178] sm:$0xff]  ;;  %v1221_v29 = vld [vmem:[%s9443_s1 + $0x188] sm:$0xff]  ;;  %v7130_v30 = vld [vmem:[%s6913_s22 + $0x60] sm:$0xff] }
  0x23   : > { %v5890_v26 = vpack.c.bf16 %v1219_v24, %v1218_v23  ;;  %v1222_v33 = vld [vmem:[%s9443_s1 + $0x190] sm:$0xff]  ;;  %v7145_v35 = vld [vmem:[%s6913_s22 + $0x68] sm:$0xff]  ;;  %v1224_v38 = vld [vmem:[%s9443_s1 + $0x1a0] sm:$0xff] }
  0x24   : > { %5837 = vmatpush1.bf16.msra.mxu0 %v5836_v19  ;;  %v1217_v19 = vld [vmem:[%s9443_s1 + $0x168] sm:$0xff]  ;;  %v1227_v44 = vld [vmem:[%s9443_s1 + $0x1b8] sm:$0xff]  ;;  %v7175_v45 = vld [vmem:[%s6913_s22 + $0x80] sm:$0xff] }
  0x25   : > { %5838 = vmatprep.subr.bf16.mxu0 %v9451_v3  ;;  %v5887_v21 = vpack.c.bf16 %v1217_v19, %v1216_v18  ;;  %v1225_v39 = vld [vmem:[%s9443_s1 + $0x1a8] sm:$0xff]  ;;  %v7178_v47 = vld [vmem:[%s6913_s22 + $0x91] sm:$0xff]  ;;  %v1228_v48 = vld [vmem:[%s9443_s1 + $0x1c0] sm:$0xff] }
  0x26   : > { %v5899_v41 = vpack.c.bf16 %v1225_v39, %v1224_v38  ;;  %v7163_v42 = vld [vmem:[%s6913_s22 + $0x81] sm:$0xff]  ;;  %v7190_v50 = vld [vmem:[%s6913_s22 + $0x90] sm:$0xff]  ;;  %v7205_v55 = vld [vmem:[%s6913_s22 + $0x98] sm:$0xff] }
  0x27   : > { %v1233_v60 = vld [vmem:[%s9443_s1 + $0x1e8] sm:$0xff]  ;;  %v7223_v1 = vld [vmem:[%s6913_s22 + $0xb1] sm:$0xff]  ;;  %v7244_v13 = vld [vmem:[%s6913_s22 + $0xc0] sm:$0xff] }
  0x28   : > { %5840 = vmatpush1.bf16.msra.mxu0 %v5839_v22  ;;  %v7103_v22 = vld [vmem:[%s6913_s22 + $0x51] sm:$0xff]  ;;  %v7220_v61 = vld [vmem:[%s6913_s22 + $0xa8] sm:$0xff]  ;;  %v7256_v18 = vld [vmem:[%s6913_s22 + $0xd9] sm:$0xff] }
  0x29   : > { %5841 = vmatprep.subr.bf16.mxu0 %v9451_v3  ;;  %v1234_v2 = vld [vmem:[%s9443_s1 + $0x1f0] sm:$0xff]  ;;  %v7261_v19 = vld [vmem:[%s6913_s22 + $0xd8] sm:$0xff]  ;;  %v7269_v23 = vld [vmem:[%s6913_s22 + $0xe0] sm:$0xff] }
  0x2a   : > { %v7235_v7 = vld [vmem:[%s6913_s22 + $0xb0] sm:$0xff]  ;;  %v7304_v38 = vld [vmem:[%s6913_s22 + $0x121] sm:$0xff] }
  0x2b   : > { %v7247_v14 = vld [vmem:[%s6913_s22 + $0xc9] sm:$0xff]  ;;  %v7272_v24 = vld [vmem:[%s6913_s22 + $0xf1] sm:$0xff]  ;;  %v7309_v39 = vld [vmem:[%s6913_s22 + $0x120] sm:$0xff] }
  0x2c   : > { %5843 = vmatpush1.bf16.msra.mxu0 %v5842_v25  ;;  %v7115_v25 = vld [vmem:[%s6913_s22 + $0x50] sm:$0xff] }
  0x2d   : > { %5844 = vmatprep.subr.bf16.mxu0 %v9451_v3 }
  0x30   : > { %5846 = vmatpush1.bf16.msra.mxu0 %v5845_v28  ;;  %v1220_v28 = vld [vmem:[%s9443_s1 + $0x180] sm:$0xff] }
  0x31   : > { %5847 = vmatprep.subr.bf16.mxu0 %v9451_v3 }
  0x34   : > { %5849 = vmatpush1.bf16.msra.mxu0 %v5848_v31  ;;  %v5893_v31 = vpack.c.bf16 %v1221_v29, %v1220_v28  ;;  %v7280_v28 = vld [vmem:[%s6913_s22 + $0xf9] sm:$0xff] }
  0x35   : > { %5850 = vmatprep.subr.bf16.mxu0 %v9451_v3  ;;  %v7285_v29 = vld [vmem:[%s6913_s22 + $0xf8] sm:$0xff] }
  0x38   : > { %5852 = vmatpush1.bf16.msra.mxu0 %v5851_v34  ;;  %v1223_v34 = vld [vmem:[%s9443_s1 + $0x198] sm:$0xff] }
  0x39   : > { %5853 = vmatprep.subr.bf16.mxu0 %v9451_v3  ;;  %v5896_v36 = vpack.c.bf16 %v1223_v34, %v1222_v33  ;;  %v7293_v33 = vld [vmem:[%s6913_s22 + $0x108] sm:$0xff]  ;;  %v7296_v34 = vld [vmem:[%s6913_s22 + $0x111] sm:$0xff] }
  0x3c   : > { %5855 = vmatpush1.bf16.msra.mxu0 %v5854_v37  ;;  %v7148_v37 = vld [vmem:[%s6913_s22 + $0x79] sm:$0xff] }
  0x3d   : > { %5856 = vmatprep.subr.bf16.mxu0 %v9451_v3 }
  0x40   : > { %5858 = vmatpush1.bf16.msra.mxu0 %v5857_v40  ;;  %v7160_v40 = vld [vmem:[%s6913_s22 + $0x78] sm:$0xff] }
  0x41   : > { %5859 = vmatprep.subr.bf16.mxu0 %v9451_v3 }
  0x44   : > { %5861 = vmatpush1.bf16.msra.mxu0 %v5860_v43  ;;  %v1226_v43 = vld [vmem:[%s9443_s1 + $0x1b0] sm:$0xff] }
  0x45   : > { %5862 = vmatprep.subr.bf16.mxu0 %v9451_v3 }
  0x48   : > { %5864 = vmatpush1.bf16.msra.mxu0 %v5863_v46  ;;  %v5902_v46 = vpack.c.bf16 %v1227_v44, %v1226_v43  ;;  %v7317_v43 = vld [vmem:[%s6913_s22 + $0x128] sm:$0xff]  ;;  %v7320_v44 = vld [vmem:[%s6913_s22 + $0x139] sm:$0xff] }
  0x49   : > { %5865 = vmatprep.subr.bf16.mxu0 %v9451_v3  ;;  %9476 = vst [vmem:[#allocation4_spill] sm:$0xff] %v7320_v44 }
  0x4c   : > { %5867 = vmatpush1.bf16.msra.mxu0 %v5866_v49  ;;  %v1229_v49 = vld [vmem:[%s9443_s1 + $0x1c8] sm:$0xff] }
  0x4d   : > { %5868 = vmatprep.subr.bf16.mxu0 %v9451_v3  ;;  %v5905_v51 = vpack.c.bf16 %v1229_v49, %v1228_v48  ;;  %v7328_v48 = vld [vmem:[%s6913_s22 + $0x141] sm:$0xff] }
  0x4e   : > { %9477 = vst [vmem:[#allocation5_spill] sm:$0xff] %v7328_v48  ;;  %v7333_v49 = vld [vmem:[%s6913_s22 + $0x140] sm:$0xff] }
  0x4f   : > { %1388 = vmatmul.mubr.f32.vlgmr.msra.gmra.mrb[0].mxu0 %v306_v52  ;;  %v7193_v52 = vld [vmem:[%s6913_s22 + $0x99] sm:$0xff] }
  0x50   : > { %5870 = vmatpush1.bf16.msra.mxu0 %v5869_v53  ;;  %1392 = vmatprep.mubr.f32.mxu0 %v371_v54  ;;  %v1230_v53 = vld [vmem:[%s9443_s1 + $0x1d0] sm:$0xff]  ;;  %v1231_v54 = vld [vmem:[%s9443_s1 + $0x1d8] sm:$0xff] }
  0x51   : > { %5871 = vmatprep.subr.bf16.mxu0 %v9451_v3  ;;  %v5908_v56 = vpack.c.bf16 %v1231_v54, %v1230_v53  ;;  %v7341_v53 = vld [vmem:[%s6913_s22 + $0x150] sm:$0xff]  ;;  %v7344_v54 = vld [vmem:[%s6913_s22 + $0x159] sm:$0xff] }
  0x52   : > { %9479 = vst [vmem:[#allocation7_spill] sm:$0xff] %v7344_v54 }
  0x53   : > { %1393 = vmatmul.mubr.f32.gmra.mrb[2].mxu0 %v307_v57  ;;  %v7208_v57 = vld [vmem:[%s6913_s22 + $0xa9] sm:$0xff] }
  0x54   : > { %1397 = vmatprep.mubr.f32.mxu0 %v7025_v59  ;;  %5873 = vmatpush1.bf16.msra.mxu0 %v5872_v58  ;;  %v1232_v58 = vld [vmem:[%s9443_s1 + $0x1e0] sm:$0xff] }
  0x55   : > { %5874 = vmatprep.subr.bf16.mxu0 %v9451_v3 }
  0x57   : > { %1398 = vmatmul.mubr.f32.gmra.mrb[4].mxu0 %v7036_v62 }
  0x58   : > { %1402 = vmatprep.mubr.f32.mxu0 %v7039_v0  ;;  %5876 = vmatpush1.bf16.msra.mxu0 %v5875_v63  ;;  %v5911_v63 = vpack.c.bf16 %v1233_v60, %v1232_v58  ;;  %v7352_v58 = vld [vmem:[%s6913_s22 + $0x169] sm:$0xff] }
  0x59   : > { %5877 = vmatprep.subr.bf16.mxu0 %v9451_v3  ;;  %9480 = vst [vmem:[#allocation8_spill] sm:$0xff] %v7352_v58  ;;  %v7357_v60 = vld [vmem:[%s6913_s22 + $0x168] sm:$0xff] }
  0x5b   : > { %1403 = vmatmul.mubr.f32.gmra.mrb[6].mxu0 %v7051_v4 }
  0x5c   : > { %1407 = vmatprep.mubr.f32.mxu0 %v7054_v6  ;;  %5879 = vmatpush1.bf16.msra.mxu0 %v5878_v5  ;;  %v1235_v5 = vld [vmem:[%s9443_s1 + $0x1f8] sm:$0xff] }
  0x5d   : > { %5880 = vmatprep.subr.bf16.mxu0 %v9451_v3  ;;  %v5914_v8 = vpack.c.bf16 %v1235_v5, %v1234_v2  ;;  %v7365_v2 = vld [vmem:[%s6913_s22 + $0x170] sm:$0xff]  ;;  %v1236_v5 = vld [vmem:[%s9443_s1 + $0x200] sm:$0xff] }
  0x5f   : > { %1408 = vmatmul.mubr.f32.gmra.mrb[8].mxu0 %v7066_v9 }
  0x60   : > { %1412 = vmatprep.mubr.f32.mxu0 %v7072_v12  ;;  %5882 = vmatpush1.bf16.msra.mxu0 %v5881_v10  ;;  %v7238_v10 = vld [vmem:[%s6913_s22 + $0xc1] sm:$0xff] }
  0x61   : > { %5883 = vmatprep.subr.bf16.mxu0 %v9451_v3 }
  0x63   : > { %1413 = vmatmul.mubr.f32.gmra.mrb[10].mxu0 %v7085_v15 }
  0x64   : > { %1417 = vmatprep.mubr.f32.mxu0 %v7088_v17  ;;  %5885 = vmatpush1.bf16.msra.mxu0 %v5884_v16  ;;  %v7253_v16 = vld [vmem:[%s6913_s22 + $0xc8] sm:$0xff] }
  0x65   : > { %5886 = vmatprep.subr.bf16.mxu0 %v9451_v3 }
  0x67   : > { %1418 = vmatmul.mubr.f32.gmra.mrb[12].mxu0 %v7100_v20 }
  0x68   : > { %1422 = vmatprep.mubr.f32.mxu0 %v7103_v22  ;;  %5888 = vmatpush1.bf16.msra.mxu0 %v5887_v21  ;;  %v7264_v21 = vld [vmem:[%s6913_s22 + $0xe1] sm:$0xff] }
  0x69   : > { %5889 = vmatprep.subr.bf16.mxu0 %v9451_v3 }
  0x6b   : > { %1423 = vmatmul.mubr.f32.gmra.mrb[14].mxu0 %v7115_v25 }
  0x6c   : > { %1427 = vmatprep.mubr.f32.mxu0 %v7118_v27  ;;  %5891 = vmatpush1.bf16.msra.mxu0 %v5890_v26  ;;  %v7277_v26 = vld [vmem:[%s6913_s22 + $0xf0] sm:$0xff] }
  0x6d   : > { %5892 = vmatprep.subr.bf16.mxu0 %v9451_v3 }
  0x6f   : > { %1428 = vmatmul.mubr.f32.gmra.mrb[16].mxu0 %v7130_v30 }
  0x70   : > { %1432 = vmatprep.mubr.f32.mxu0 %v7133_v32  ;;  %5894 = vmatpush1.bf16.msra.mxu0 %v5893_v31  ;;  %v7288_v31 = vld [vmem:[%s6913_s22 + $0x109] sm:$0xff] }
  0x71   : > { %5895 = vmatprep.subr.bf16.mxu0 %v9451_v3 }
  0x73   : > { %1433 = vmatmul.mubr.f32.gmra.mrb[18].mxu0 %v7145_v35 }
  0x74   : > { %1437 = vmatprep.mubr.f32.mxu0 %v7148_v37  ;;  %5897 = vmatpush1.bf16.msra.mxu0 %v5896_v36  ;;  %v7301_v36 = vld [vmem:[%s6913_s22 + $0x110] sm:$0xff] }
  0x75   : > { %5898 = vmatprep.subr.bf16.mxu0 %v9451_v3 }
  0x77   : > { %1438 = vmatmul.mubr.f32.gmra.mrb[20].mxu0 %v7160_v40 }
  0x78   : > { %1442 = vmatprep.mubr.f32.mxu0 %v7163_v42  ;;  %5900 = vmatpush1.bf16.msra.mxu0 %v5899_v41  ;;  %v7312_v41 = vld [vmem:[%s6913_s22 + $0x129] sm:$0xff] }
  0x79   : > { %5901 = vmatprep.subr.bf16.mxu0 %v9451_v3 }
  0x7b   : > { %1443 = vmatmul.mubr.f32.gmra.mrb[22].mxu0 %v7175_v45 }
  0x7c   : > { %1447 = vmatprep.mubr.f32.mxu0 %v7178_v47  ;;  %5903 = vmatpush1.bf16.msra.mxu0 %v5902_v46  ;;  %v7325_v46 = vld [vmem:[%s6913_s22 + $0x138] sm:$0xff] }
  0x7d   : > { %5904 = vmatprep.subr.bf16.mxu0 %v9451_v3 }
  0x7f   : > { %1448 = vmatmul.mubr.f32.gmra.mrb[24].mxu0 %v7190_v50 }
  0x80   : > { %1452 = vmatprep.mubr.f32.mxu0 %v7193_v52  ;;  %5906 = vmatpush1.bf16.msra.mxu0 %v5905_v51  ;;  %v7336_v51 = vld [vmem:[%s6913_s22 + $0x151] sm:$0xff] }
  0x81   : > { %5907 = vmatprep.subr.bf16.mxu0 %v9451_v3  ;;  %9478 = vst [vmem:[#allocation6_spill] sm:$0xff] %v7336_v51 }
  0x83   : > { %1453 = vmatmul.mubr.f32.gmra.mrb[26].mxu0 %v7205_v55 }
  0x84   : > { %1457 = vmatprep.mubr.f32.mxu0 %v7208_v57  ;;  %5909 = vmatpush1.bf16.msra.mxu0 %v5908_v56  ;;  %v7349_v56 = vld [vmem:[%s6913_s22 + $0x158] sm:$0xff] }
  0x85   : > { %5910 = vmatprep.subr.bf16.mxu0 %v9451_v3 }
  0x87   : > { %1458 = vmatmul.mubr.f32.gmra.mrb[28].mxu0 %v7220_v61 }
  0x88   : > { %1462 = vmatprep.mubr.f32.mxu0 %v7223_v1  ;;  %5912 = vmatpush1.bf16.msra.mxu0 %v5911_v63  ;;  %v7360_v63 = vld [vmem:[%s6913_s22 + $0x171] sm:$0xff] }
  0x89   : > { %5913 = vmatprep.subr.bf16.mxu0 %v9451_v3  ;;  %9481 = vst [vmem:[#allocation9_spill] sm:$0xff] %v7360_v63 }
  0x8b   : > { %1463 = vmatmul.mubr.f32.gmra.mrb[30].mxu0 %v7235_v7 }
  0x8c   : > { %1467 = vmatprep.mubr.f32.mxu0 %v7238_v10  ;;  %5915 = vmatpush1.bf16.msra.mxu0 %v5914_v8  ;;  %v1237_v8 = vld [vmem:[%s9443_s1 + $0x208] sm:$0xff] }
  0x8d   : > { %5916 = vmatprep.subr.bf16.mxu0 %v9451_v3  ;;  %v434_v3 = vld [vmem:[%s6913_s22 + $0x2] sm:$0xff] }
  0x8f   : > { %1468 = vmatmul.mubr.f32.gmra.mrb[32].mxu0 %v7244_v13 }
  0x90   : > { %1472 = vmatprep.mubr.f32.mxu0 %v7247_v14 }
  0x93   : > { %1473 = vmatmul.mubr.f32.gmra.mrb[34].mxu0 %v7253_v16 }
  0x94   : > { %1477 = vmatprep.mubr.f32.mxu0 %v7256_v18 }
  0x97   : > { %1478 = vmatmul.mubr.f32.gmra.mrb[36].mxu0 %v7261_v19 }
  0x98   : > { %1482 = vmatprep.mubr.f32.mxu0 %v7264_v21 }
  0x9b   : > { %1483 = vmatmul.mubr.f32.gmra.mrb[38].mxu0 %v7269_v23 }
  0x9c   : > { %1487 = vmatprep.mubr.f32.mxu0 %v7272_v24 }
  0x9f   : > { %1488 = vmatmul.mubr.f32.gmra.mrb[40].mxu0 %v7277_v26 }
  0xa0   : > { %1492 = vmatprep.mubr.f32.mxu0 %v7280_v28 }
  0xa3   : > { %1493 = vmatmul.mubr.f32.gmra.mrb[42].mxu0 %v7285_v29 }
  0xa4   : > { %1497 = vmatprep.mubr.f32.mxu0 %v7288_v31 }
  0xa7   : > { %1498 = vmatmul.mubr.f32.gmra.mrb[44].mxu0 %v7293_v33 }
  0xa8   : > { %1502 = vmatprep.mubr.f32.mxu0 %v7296_v34 }
  0xab   : > { %1503 = vmatmul.mubr.f32.gmra.mrb[46].mxu0 %v7301_v36 }
  0xac   : > { %1507 = vmatprep.mubr.f32.mxu0 %v7304_v38 }
  0xaf   : > { %1508 = vmatmul.mubr.f32.gmra.mrb[48].mxu0 %v7309_v39 }
  0xb0   : > { %1512 = vmatprep.mubr.f32.mxu0 %v7312_v41 }
  0xb3   : > { %1513 = vmatmul.mubr.f32.gmra.mrb[50].mxu0 %v7317_v43 }
  0xb4   : > { %1517 = vmatprep.mubr.f32.mxu0 %v7320_v44  ;;  %v9482_v44 = vmov 0.0|0.0  }
  0xb7   : > { %1518 = vmatmul.mubr.f32.gmra.mrb[52].mxu0 %v7325_v46 }
  0xb8   : > { %1522 = vmatprep.mubr.f32.mxu0 %v7328_v48 }
  0xbb   : > { %1523 = vmatmul.mubr.f32.gmra.mrb[54].mxu0 %v7333_v49 }
  0xbc   : > { %1527 = vmatprep.mubr.f32.mxu0 %v7336_v51  ;;  %v435_v51 = vld [vmem:[%s6913_s22 + $0xa] sm:$0xff] }
  0xbf   : > { %1528 = vmatmul.mubr.f32.gmra.mrb[56].mxu0 %v7341_v53 }
  0xc0   : > { %1532 = vmatprep.mubr.f32.mxu0 %v7344_v54  ;;  %v1239_v54 = vld [vmem:[%s9443_s1 + $0x218] sm:$0xff] }
  0xc3   : > { %1533 = vmatmul.mubr.f32.gmra.mrb[58].mxu0 %v7349_v56 }
  0xc4   : > { %1537 = vmatprep.mubr.f32.mxu0 %v7352_v58  ;;  %v5917_v58 = vpack.c.bf16 %v1237_v8, %v1236_v5  ;;  %v1241_v5 = vld [vmem:[%s9443_s1 + $0x228] sm:$0xff]  ;;  %v1246_v8 = vld [vmem:[%s9443_s1 + $0x250] sm:$0xff] }
  0xc7   : > { %1538 = vmatmul.mubr.f32.gmra.mrb[60].mxu0 %v7357_v60 }
  0xc8   : > { %1542 = vmatprep.mubr.f32.mxu0 %v7360_v63  ;;  %v1238_v63 = vld [vmem:[%s9443_s1 + $0x210] sm:$0xff] }
  0xc9   : > { %v5920_v48 = vpack.c.bf16 %v1239_v54, %v1238_v63  ;;  %v1242_v54 = vld [vmem:[%s9443_s1 + $0x230] sm:$0xff]  ;;  %v1245_v63 = vld [vmem:[%s9443_s1 + $0x248] sm:$0xff] }
  0xcb   : > { %1543 = vmatmul.mubr.f32.gmra.mrb[62].mxu0 %v7365_v2 }
  0xcc   : > { %1612 = vmatprep.mubr.f32.mxu0 %v7036_v62  ;;  %v1240_v62 = vld [vmem:[%s9443_s1 + $0x220] sm:$0xff] }
  0xcf   : > { %1613 = vmatmul.mubr.f32.vlgmr.msra.gmra.mrb[0].mxu0 %v434_v3  ;;  %v7393_v3 = vld [vmem:[%s6913_s22 + $0x1a] sm:$0xff] }
  0xd0   : > { %5918 = vmatpush1.bf16.msra.mxu0 %v5917_v58  ;;  %1617 = vmatprep.mubr.f32.mxu0 %v7051_v4  ;;  %v5923_v4 = vpack.c.bf16 %v1241_v5, %v1240_v62  ;;  %v1243_v58 = vld [vmem:[%s9443_s1 + $0x238] sm:$0xff] }
  0xd1   : > { %5919 = vmatprep.subr.bf16.mxu0 %v9482_v44  ;;  %v1247_v62 = vld [vmem:[%s9443_s1 + $0x258] sm:$0xff] }
  0xd2   : > { %v7426_v5 = vld [vmem:[%s6913_s22 + $0x3a] sm:$0xff] }
  0xd3   : > { %1618 = vmatmul.mubr.f32.gmra.mrb[2].mxu0 %v435_v51  ;;  %v1244_v51 = vld [vmem:[%s9443_s1 + $0x240] sm:$0xff] }
  0xd4   : > { %1622 = vmatprep.mubr.f32.mxu0 %v7066_v9  ;;  %5921 = vmatpush1.bf16.msra.mxu0 %v5920_v48  ;;  %v7405_v9 = vld [vmem:[%s6913_s22 + $0x22] sm:$0xff]  ;;  %v5926_v48 = vpack.c.bf16 %v1243_v58, %v1242_v54 }
  0xd5   : > { %5922 = vmatprep.subr.bf16.mxu0 %v9482_v44  ;;  %v1249_v54 = vld [vmem:[%s9443_s1 + $0x268] sm:$0xff] }
  0xd7   : > { %1623 = vmatmul.mubr.f32.gmra.mrb[4].mxu0 %v7393_v3 }
  0xd8   : > { %1627 = vmatprep.mubr.f32.mxu0 %v7085_v15  ;;  %5924 = vmatpush1.bf16.msra.mxu0 %v5923_v4  ;;  %v5929_v15 = vpack.c.bf16 %v1245_v63, %v1244_v51  ;;  %v1248_v4 = vld [vmem:[%s9443_s1 + $0x260] sm:$0xff]  ;;  %v1251_v51 = vld [vmem:[%s9443_s1 + $0x278] sm:$0xff] }
  0xd9   : > { %5925 = vmatprep.subr.bf16.mxu0 %v9482_v44  ;;  %v5935_v58 = vpack.c.bf16 %v1249_v54, %v1248_v4  ;;  %v1255_v4 = vld [vmem:[%s9443_s1 + $0x298] sm:$0xff] }
  0xdb   : > { %1628 = vmatmul.mubr.f32.gmra.mrb[6].mxu0 %v7405_v9 }
  0xdc   : > { %1632 = vmatprep.mubr.f32.mxu0 %v7100_v20  ;;  %5927 = vmatpush1.bf16.msra.mxu0 %v5926_v48  ;;  %v5932_v20 = vpack.c.bf16 %v1247_v62, %v1246_v8  ;;  %v1250_v48 = vld [vmem:[%s9443_s1 + $0x270] sm:$0xff]  ;;  %v1253_v8 = vld [vmem:[%s9443_s1 + $0x288] sm:$0xff] }
  0xdd   : > { %5928 = vmatprep.subr.bf16.mxu0 %v9482_v44  ;;  %v5938_v63 = vpack.c.bf16 %v1251_v51, %v1250_v48  ;;  %v1257_v48 = vld [vmem:[%s9443_s1 + $0x2a8] sm:$0xff] }
  0xdf   : > { %1633 = vmatmul.mubr.f32.gmra.mrb[8].mxu0 %v7069_v11 }
  0xe0   : > { %1637 = vmatprep.mubr.f32.mxu0 %v7115_v25  ;;  %5930 = vmatpush1.bf16.msra.mxu0 %v5929_v15  ;;  %v7438_v25 = vld [vmem:[%s6913_s22 + $0x4a] sm:$0xff]  ;;  %v1252_v15 = vld [vmem:[%s9443_s1 + $0x280] sm:$0xff] }
  0xe1   : > { %5931 = vmatprep.subr.bf16.mxu0 %v9482_v44  ;;  %v5941_v62 = vpack.c.bf16 %v1253_v8, %v1252_v15  ;;  %v1259_v15 = vld [vmem:[%s9443_s1 + $0x2b8] sm:$0xff] }
  0xe3   : > { %1638 = vmatmul.mubr.f32.gmra.mrb[10].mxu0 %v7426_v5 }
  0xe4   : > { %1642 = vmatprep.mubr.f32.mxu0 %v7130_v30  ;;  %5933 = vmatpush1.bf16.msra.mxu0 %v5932_v20  ;;  %v7450_v30 = vld [vmem:[%s6913_s22 + $0x52] sm:$0xff] }
  0xe5   : > { %5934 = vmatprep.subr.bf16.mxu0 %v9482_v44  ;;  %v1254_v20 = vld [vmem:[%s9443_s1 + $0x290] sm:$0xff] }
  0xe6   : > { %v5944_v54 = vpack.c.bf16 %v1255_v4, %v1254_v20  ;;  %v1261_v20 = vld [vmem:[%s9443_s1 + $0x2c8] sm:$0xff] }
  0xe7   : > { %1643 = vmatmul.mubr.f32.gmra.mrb[12].mxu0 %v7438_v25 }
  0xe8   : > { %1647 = vmatprep.mubr.f32.mxu0 %v7145_v35  ;;  %5936 = vmatpush1.bf16.msra.mxu0 %v5935_v58  ;;  %v7462_v35 = vld [vmem:[%s6913_s22 + $0x62] sm:$0xff] }
  0xe9   : > { %5937 = vmatprep.subr.bf16.mxu0 %v9482_v44  ;;  %v1256_v58 = vld [vmem:[%s9443_s1 + $0x2a0] sm:$0xff] }
  0xea   : > { %v5947_v51 = vpack.c.bf16 %v1257_v48, %v1256_v58  ;;  %v1263_v58 = vld [vmem:[%s9443_s1 + $0x2d8] sm:$0xff] }
  0xeb   : > { %1648 = vmatmul.mubr.f32.gmra.mrb[14].mxu0 %v7450_v30 }
  0xec   : > { %1652 = vmatprep.mubr.f32.mxu0 %v7160_v40  ;;  %5939 = vmatpush1.bf16.msra.mxu0 %v5938_v63  ;;  %v7474_v40 = vld [vmem:[%s6913_s22 + $0x6a] sm:$0xff] }
  0xed   : > { %5940 = vmatprep.subr.bf16.mxu0 %v9482_v44  ;;  %v1258_v63 = vld [vmem:[%s9443_s1 + $0x2b0] sm:$0xff] }
  0xee   : > { %v5950_v8 = vpack.c.bf16 %v1259_v15, %v1258_v63  ;;  %v1265_v63 = vld [vmem:[%s9443_s1 + $0x2e8] sm:$0xff] }
  0xef   : > { %1653 = vmatmul.mubr.f32.gmra.mrb[16].mxu0 %v7462_v35 }
  0xf0   : > { %1657 = vmatprep.mubr.f32.mxu0 %v7175_v45  ;;  %5942 = vmatpush1.bf16.msra.mxu0 %v5941_v62  ;;  %v7486_v45 = vld [vmem:[%s6913_s22 + $0x7a] sm:$0xff] }
  0xf1   : > { %5943 = vmatprep.subr.bf16.mxu0 %v9482_v44  ;;  %v1260_v62 = vld [vmem:[%s9443_s1 + $0x2c0] sm:$0xff] }
  0xf2   : > { %v5953_v4 = vpack.c.bf16 %v1261_v20, %v1260_v62  ;;  %v1267_v62 = vld [vmem:[%s9443_s1 + $0x2f8] sm:$0xff] }
  0xf3   : > { %1658 = vmatmul.mubr.f32.gmra.mrb[18].mxu0 %v7474_v40 }
  0xf4   : > { %1662 = vmatprep.mubr.f32.mxu0 %v7190_v50  ;;  %5945 = vmatpush1.bf16.msra.mxu0 %v5944_v54  ;;  %v7498_v50 = vld [vmem:[%s6913_s22 + $0x82] sm:$0xff]  ;;  %v1262_v54 = vld [vmem:[%s9443_s1 + $0x2d0] sm:$0xff] }
  0xf5   : > { %5946 = vmatprep.subr.bf16.mxu0 %v9482_v44  ;;  %v5956_v48 = vpack.c.bf16 %v1263_v58, %v1262_v54  ;;  %v7563_v54 = vld [vmem:[%s6913_s22 + $0xda] sm:$0xff] }
  0xf6   : > { %v1300_v58 = vld [vmem:[%s9443_s1 + $0x400] sm:$0xff] }
  0xf7   : > { %1663 = vmatmul.mubr.f32.gmra.mrb[20].mxu0 %v7486_v45 }
  0xf8   : > { %1667 = vmatprep.mubr.f32.mxu0 %v7205_v55  ;;  %5948 = vmatpush1.bf16.msra.mxu0 %v5947_v51  ;;  %v7510_v55 = vld [vmem:[%s6913_s22 + $0x92] sm:$0xff]  ;;  %v1264_v51 = vld [vmem:[%s9443_s1 + $0x2e0] sm:$0xff] }
  0xf9   : > { %5949 = vmatprep.subr.bf16.mxu0 %v9482_v44  ;;  %v5959_v15 = vpack.c.bf16 %v1265_v63, %v1264_v51  ;;  %v1303_v51 = vld [vmem:[%s9443_s1 + $0x418] sm:$0xff] }
  0xfb   : > { %1668 = vmatmul.mubr.f32.gmra.mrb[22].mxu0 %v7498_v50 }
  0xfc   : > { %1672 = vmatprep.mubr.f32.mxu0 %v7220_v61  ;;  %5951 = vmatpush1.bf16.msra.mxu0 %v5950_v8  ;;  %v7522_v61 = vld [vmem:[%s6913_s22 + $0x9a] sm:$0xff]  ;;  %v1266_v8 = vld [vmem:[%s9443_s1 + $0x2f0] sm:$0xff] }
  0xfd   : > { %5952 = vmatprep.subr.bf16.mxu0 %v9482_v44  ;;  %v5962_v20 = vpack.c.bf16 %v1267_v62, %v1266_v8  ;;  %v1305_v8 = vld [vmem:[%s9443_s1 + $0x428] sm:$0xff] }
  0xff   : > { %1673 = vmatmul.mubr.f32.gmra.mrb[24].mxu0 %v7510_v55 }
 0x100   : > { %1677 = vmatprep.mubr.f32.mxu0 %v7235_v7  ;;  %5954 = vmatpush1.bf16.msra.mxu0 %v5953_v4  ;;  %v7534_v7 = vld [vmem:[%s6913_s22 + $0xaa] sm:$0xff]  ;;  %v7552_v4 = vld [vmem:[%s6913_s22 + $0xc2] sm:$0xff] }
 0x101   : > { %5955 = vmatprep.subr.bf16.mxu0 %v9482_v44 }
 0x103   : > { %1678 = vmatmul.mubr.f32.gmra.mrb[26].mxu0 %v7522_v61 }
 0x104   : > { %1682 = vmatprep.mubr.f32.mxu0 %v7244_v13  ;;  %5957 = vmatpush1.bf16.msra.mxu0 %v5956_v48  ;;  %v7546_v13 = vld [vmem:[%s6913_s22 + $0xb2] sm:$0xff] }
 0x105   : > { %5958 = vmatprep.subr.bf16.mxu0 %v9482_v44 }
 0x107   : > { %1683 = vmatmul.mubr.f32.gmra.mrb[28].mxu0 %v7534_v7 }
 0x108   : > { %1687 = vmatprep.mubr.f32.mxu0 %v7253_v16  ;;  %5960 = vmatpush1.bf16.msra.mxu0 %v5959_v15  ;;  %v7558_v16 = vld [vmem:[%s6913_s22 + $0xca] sm:$0xff]  ;;  %v7615_v15 = vld [vmem:[%s6913_s22 + $0x13a] sm:$0xff] }
 0x109   : > { %5961 = vmatprep.subr.bf16.mxu0 %v9482_v44 }
 0x10b   : > { %1688 = vmatmul.mubr.f32.gmra.mrb[30].mxu0 %v7546_v13 }
 0x10c   : > { %1692 = vmatprep.mubr.f32.mxu0 %v7261_v19  ;;  %5963 = vmatpush1.bf16.msra.mxu0 %v5962_v20  ;;  %v7568_v19 = vld [vmem:[%s6913_s22 + $0xe2] sm:$0xff] }
 0x10d   : > { %5964 = vmatprep.subr.bf16.mxu0 %v9482_v44  ;;  %v7626_v20 = vld [vmem:[%s6913_s22 + $0x142] sm:$0xff] }
 0x10f   : > { %1693 = vmatmul.mubr.f32.gmra.mrb[32].mxu0 %v7552_v4 }
 0x110   : > { %1697 = vmatprep.mubr.f32.mxu0 %v7269_v23  ;;  %v7573_v23 = vld [vmem:[%s6913_s22 + $0xf2] sm:$0xff] }
 0x113   : > { %1698 = vmatmul.mubr.f32.gmra.mrb[34].mxu0 %v7558_v16 }
 0x114   : > { %1702 = vmatprep.mubr.f32.mxu0 %v7277_v26  ;;  %v7578_v26 = vld [vmem:[%s6913_s22 + $0xfa] sm:$0xff] }
 0x117   : > { %1703 = vmatmul.mubr.f32.gmra.mrb[36].mxu0 %v7563_v54 }
 0x118   : > { %1707 = vmatprep.mubr.f32.mxu0 %v7285_v29  ;;  %v7583_v29 = vld [vmem:[%s6913_s22 + $0x10a] sm:$0xff] }
 0x11b   : > { %1708 = vmatmul.mubr.f32.gmra.mrb[38].mxu0 %v7568_v19 }
 0x11c   : > { %1712 = vmatprep.mubr.f32.mxu0 %v7293_v33  ;;  %v7588_v33 = vld [vmem:[%s6913_s22 + $0x112] sm:$0xff] }
 0x11f   : > { %1713 = vmatmul.mubr.f32.gmra.mrb[40].mxu0 %v7573_v23 }
 0x120   : > { %1717 = vmatprep.mubr.f32.mxu0 %v7301_v36  ;;  %v7593_v36 = vld [vmem:[%s6913_s22 + $0x122] sm:$0xff] }
 0x123   : > { %1718 = vmatmul.mubr.f32.gmra.mrb[42].mxu0 %v7578_v26 }
 0x124   : > { %1722 = vmatprep.mubr.f32.mxu0 %v7309_v39  ;;  %v1301_v39 = vld [vmem:[%s9443_s1 + $0x408] sm:$0xff] }
 0x125   : > { %v6012_v48 = vpack.c.bf16 %v1301_v39, %v1300_v58  ;;  %v1307_v58 = vld [vmem:[%s9443_s1 + $0x438] sm:$0xff] }
 0x127   : > { %1723 = vmatmul.mubr.f32.gmra.mrb[44].mxu0 %v7583_v29  ;;  %6013 = vmatprep.subr.bf16.mxu1 %v6012_v48 }
 0x128   : > { %1727 = vmatprep.mubr.f32.mxu0 %v7317_v43  ;;  %v7604_v43 = vld [vmem:[%s6913_s22 + $0x12a] sm:$0xff]  ;;  %6015 = vmatpush3.bf16.msra.mxu1 %v6012_v48  ;;  %v1308_v48 = vld [vmem:[%s9443_s1 + $0x440] sm:$0xff] }
 0x12b   : > { %1728 = vmatmul.mubr.f32.gmra.mrb[46].mxu0 %v7588_v33 }
 0x12c   : > { %1732 = vmatprep.mubr.f32.mxu0 %v7325_v46  ;;  %v1302_v46 = vld [vmem:[%s9443_s1 + $0x410] sm:$0xff] }
 0x12d   : > { %v6016_v63 = vpack.c.bf16 %v1303_v51, %v1302_v46  ;;  %v1309_v46 = vld [vmem:[%s9443_s1 + $0x448] sm:$0xff] }
 0x12e   : > { %v6028_v51 = vpack.c.bf16 %v1309_v46, %v1308_v48  ;;  %v7676_v46 = vld [vmem:[%s6913_s22 + $0x172] sm:$0xff] }
 0x12f   : > { %1733 = vmatmul.mubr.f32.gmra.mrb[48].mxu0 %v7593_v36  ;;  %6017 = vmatprep.subr.bf16.mxu1 %v6016_v63 }
 0x130   : > { %1737 = vmatprep.mubr.f32.mxu0 %v7333_v49  ;;  %6019 = vmatpush3.bf16.msra.mxu1 %v6016_v63  ;;  %v1304_v49 = vld [vmem:[%s9443_s1 + $0x420] sm:$0xff]  ;;  %v1310_v63 = vld [vmem:[%s9443_s1 + $0x450] sm:$0xff] }
 0x131   : > { %v6020_v62 = vpack.c.bf16 %v1305_v8, %v1304_v49  ;;  %v1311_v49 = vld [vmem:[%s9443_s1 + $0x458] sm:$0xff]  ;;  %v7657_v8 = vld [vmem:[%s6913_s22 + $0x180] sm:$0xff] }
 0x133   : > { %1738 = vmatmul.mubr.f32.gmra.mrb[50].mxu0 %v7604_v43  ;;  %6021 = vmatprep.subr.bf16.mxu1 %v6020_v62 }
 0x134   : > { %1742 = vmatprep.mubr.f32.mxu0 %v7341_v53  ;;  %6023 = vmatpush3.bf16.msra.mxu1 %v6020_v62  ;;  %v1306_v53 = vld [vmem:[%s9443_s1 + $0x430] sm:$0xff]  ;;  %v6032_v62 = vpack.c.bf16 %v1311_v49, %v1310_v63  ;;  %v1315_v63 = vld [vmem:[%s9443_s1 + $0x478] sm:$0xff]  ;;  %v1268_v49 = vld [vmem:[%s9443_s1 + $0x300] sm:$0xff] }
 0x135   : > { %v6024_v39 = vpack.c.bf16 %v1307_v58, %v1306_v53  ;;  %v1312_v53 = vld [vmem:[%s9443_s1 + $0x460] sm:$0xff]  ;;  %v1313_v58 = vld [vmem:[%s9443_s1 + $0x468] sm:$0xff] }
 0x136   : > { %v6036_v48 = vpack.c.bf16 %v1313_v58, %v1312_v53 }
 0x137   : > { %1743 = vmatmul.mubr.f32.gmra.mrb[52].mxu0 %v7615_v15  ;;  %6025 = vmatprep.subr.bf16.mxu1 %v6024_v39 }
 0x138   : > { %1747 = vmatprep.mubr.f32.mxu0 %v7349_v56  ;;  %v7637_v56 = vld [vmem:[%s6913_s22 + $0x152] sm:$0xff]  ;;  %6027 = vmatpush3.bf16.msra.mxu1 %v6024_v39  ;;  %v7671_v39 = vld [vmem:[%s6913_s22 + $0x188] sm:$0xff] }
 0x139   : > { %6029 = vmatprep.subr.bf16.mxu1 %v6028_v51  ;;  %9483 = vst [vmem:[#allocation10_spill] sm:$0xff] %v7671_v39 }
 0x13b   : > { %1748 = vmatmul.mubr.f32.gmra.mrb[54].mxu0 %v7626_v20 }
 0x13c   : > { %1752 = vmatprep.mubr.f32.mxu0 %v7357_v60  ;;  %v7648_v60 = vld [vmem:[%s6913_s22 + $0x15a] sm:$0xff]  ;;  %6031 = vmatpush3.bf16.msra.mxu1 %v6028_v51  ;;  %v1314_v51 = vld [vmem:[%s9443_s1 + $0x470] sm:$0xff] }
 0x13d   : > { %6033 = vmatprep.subr.bf16.mxu1 %v6032_v62  ;;  %v6040_v53 = vpack.c.bf16 %v1315_v63, %v1314_v51  ;;  %v1272_v51 = vld [vmem:[%s9443_s1 + $0x320] sm:$0xff]  ;;  %v1273_v63 = vld [vmem:[%s9443_s1 + $0x328] sm:$0xff] }
 0x13f   : > { %1753 = vmatmul.mubr.f32.gmra.mrb[56].mxu0 %v7637_v56 }
 0x140   : > { %1757 = vmatprep.mubr.f32.mxu0 %v7365_v2  ;;  %v7662_v2 = vld [vmem:[%s6913_s22 + $0x16a] sm:$0xff]  ;;  %6035 = vmatpush3.bf16.msra.mxu1 %v6032_v62 }
 0x141   : > { %6037 = vmatprep.subr.bf16.mxu1 %v6036_v48  ;;  %v1269_v62 = vld [vmem:[%s9443_s1 + $0x308] sm:$0xff] }
 0x142   : > { %v5965_v58 = vpack.c.bf16 %v1269_v62, %v1268_v49  ;;  %v1277_v49 = vld [vmem:[%s9443_s1 + $0x348] sm:$0xff]  ;;  %v1279_v62 = vld [vmem:[%s9443_s1 + $0x358] sm:$0xff] }
 0x143   : > { %1758 = vmatmul.mubr.f32.gmra.mrb[58].mxu0 %v7648_v60 }
 0x144   : > { %1762 = vmatprep.mubr.f32.mxu0 %v7657_v8  ;;  %6039 = vmatpush3.bf16.msra.mxu1 %v6036_v48  ;;  %v1270_v48 = vld [vmem:[%s9443_s1 + $0x310] sm:$0xff] }
 0x145   : > { %6041 = vmatprep.subr.bf16.mxu1 %v6040_v53 }
 0x147   : > { %1763 = vmatmul.mubr.f32.gmra.mrb[60].mxu0 %v7662_v2 }
 0x148   : > { %1767 = vmatprep.mubr.f32.mxu0 %v7671_v39  ;;  %6043 = vmatpush3.bf16.msra.mxu1 %v6040_v53  ;;  %v1271_v39 = vld [vmem:[%s9443_s1 + $0x318] sm:$0xff]  ;;  %v1281_v53 = vld [vmem:[%s9443_s1 + $0x368] sm:$0xff] }
 0x149   : > { %6044 = vmatprep.subr.bf16.mxu1 %v9482_v44 }
 0x14b   : > { %1768 = vmatmul.mubr.f32.gmra.mrb[62].mxu0 %v7676_v46  ;;  %5649 = vmatmul.mubr.f32.vlgmr.msra.gmra.mrb[0].mxu1 %v7426_v5 }
 0x14c   : > { %1837 = vmatprep.mubr.f32.mxu0 %v7393_v3  ;;  %v5968_v3 = vpack.c.bf16 %v1271_v39, %v1270_v48  ;;  %5651 = vmatprep.mubr.f32.mxu1 %v7438_v25  ;;  %v1275_v39 = vld [vmem:[%s9443_s1 + $0x338] sm:$0xff]  ;;  %v1285_v48 = vld [vmem:[%s9443_s1 + $0x388] sm:$0xff] }
 0x14f   : > { %1838 = vmatmul.mubr.f32.vlgmr.msra.gmra.mrb[0].mxu0 %v7025_v59  ;;  %5652 = vmatmul.mubr.f32.gmra.mrb[2].mxu1 %v7450_v30  ;;  %v5971_v59 = vpack.c.bf16 %v1273_v63, %v1272_v51  ;;  %v1289_v51 = vld [vmem:[%s9443_s1 + $0x3a8] sm:$0xff]  ;;  %v1291_v63 = vld [vmem:[%s9443_s1 + $0x3b8] sm:$0xff] }
 0x150   : > { %5966 = vmatpush1.bf16.msra.mxu0 %v5965_v58  ;;  %1842 = vmatprep.mubr.f32.mxu0 %v7405_v9  ;;  %v1274_v9 = vld [vmem:[%s9443_s1 + $0x330] sm:$0xff]  ;;  %v1283_v58 = vld [vmem:[%s9443_s1 + $0x378] sm:$0xff] }
 0x151   : > { %5967 = vmatprep.subr.bf16.mxu0 %v9482_v44  ;;  %5654 = vmatprep.mubr.f32.mxu1 %v7462_v35 }
 0x153   : > { %1843 = vmatmul.mubr.f32.gmra.mrb[2].mxu0 %v7039_v0  ;;  %5655 = vmatmul.mubr.f32.gmra.mrb[4].mxu1 %v7474_v40  ;;  %v5974_v0 = vpack.c.bf16 %v1275_v39, %v1274_v9  ;;  %v1295_v9 = vld [vmem:[%s9443_s1 + $0x3d8] sm:$0xff]  ;;  %v1297_v39 = vld [vmem:[%s9443_s1 + $0x3e8] sm:$0xff] }
 0x154   : > { %1847 = vmatprep.mubr.f32.mxu0 %v7069_v11  ;;  %5969 = vmatpush1.bf16.msra.mxu0 %v5968_v3  ;;  %v1276_v11 = vld [vmem:[%s9443_s1 + $0x340] sm:$0xff]  ;;  %v1287_v3 = vld [vmem:[%s9443_s1 + $0x398] sm:$0xff] }
 0x155   : > { %5970 = vmatprep.subr.bf16.mxu0 %v9482_v44  ;;  %5657 = vmatprep.mubr.f32.mxu1 %v7486_v45 }
 0x157   : > { %1848 = vmatmul.mubr.f32.gmra.mrb[4].mxu0 %v7054_v6  ;;  %5658 = vmatmul.mubr.f32.gmra.mrb[6].mxu1 %v7498_v50  ;;  %v5977_v6 = vpack.c.bf16 %v1277_v49, %v1276_v11  ;;  %v1299_v11 = vld [vmem:[%s9443_s1 + $0x3f8] sm:$0xff]  ;;  %v5249_v49 = vld [vmem:[%s6913_s22 + $0x18a] sm:$0xff] }
 0x158   : > { %1852 = vmatprep.mubr.f32.mxu0 %v7426_v5  ;;  %5972 = vmatpush1.bf16.msra.mxu0 %v5971_v59  ;;  %v1278_v5 = vld [vmem:[%s9443_s1 + $0x350] sm:$0xff]  ;;  %v1293_v59 = vld [vmem:[%s9443_s1 + $0x3c8] sm:$0xff] }
 0x159   : > { %5973 = vmatprep.subr.bf16.mxu0 %v9482_v44  ;;  %5660 = vmatprep.mubr.f32.mxu1 %v7510_v55 }
 0x15b   : > { %1853 = vmatmul.mubr.f32.gmra.mrb[6].mxu0 %v7072_v12  ;;  %5661 = vmatmul.mubr.f32.gmra.mrb[8].mxu1 %v7522_v61  ;;  %v5980_v12 = vpack.c.bf16 %v1279_v62, %v1278_v5  ;;  %v5252_v5 = vld [vmem:[%s6913_s22 + $0x48] sm:$0xff] }
 0x15c   : > { %1857 = vmatprep.mubr.f32.mxu0 %v7438_v25  ;;  %5975 = vmatpush1.bf16.msra.mxu0 %v5974_v0  ;;  %v1280_v25 = vld [vmem:[%s9443_s1 + $0x360] sm:$0xff]  ;;  %v1298_v0 = vld [vmem:[%s9443_s1 + $0x3f0] sm:$0xff]  ;;  %v3550_v62 = vld [vmem:[%s9445_s3 + $0x408] sm:$0xff] }
 0x15d   : > { %5976 = vmatprep.subr.bf16.mxu0 %v9482_v44  ;;  %5663 = vmatprep.mubr.f32.mxu1 %v7534_v7 }
 0x15f   : > { %1858 = vmatmul.mubr.f32.gmra.mrb[8].mxu0 %v7088_v17  ;;  %5664 = vmatmul.mubr.f32.gmra.mrb[10].mxu1 %v7546_v13  ;;  %v5983_v17 = vpack.c.bf16 %v1281_v53, %v1280_v25 }
 0x160   : > { %1862 = vmatprep.mubr.f32.mxu0 %v7450_v30  ;;  %5978 = vmatpush1.bf16.msra.mxu0 %v5977_v6  ;;  %v1282_v30 = vld [vmem:[%s9443_s1 + $0x370] sm:$0xff]  ;;  %v3549_v6 = vld [vmem:[%s9445_s3 + $0x400] sm:$0xff] }
 0x161   : > { %5979 = vmatprep.subr.bf16.mxu0 %v9482_v44  ;;  %5666 = vmatprep.mubr.f32.mxu1 %v7552_v4  ;;  %v6236_v25 = vpack.c.bf16 %v3550_v62, %v3549_v6  ;;  %v5265_v6 = vld [vmem:[%s6913_s22 + $0xe0] sm:$0xff]  ;;  %v5266_v62 = vld [vmem:[%s6913_s22 + $0xf0] sm:$0xff] }
 0x163   : > { %1863 = vmatmul.mubr.f32.gmra.mrb[10].mxu0 %v7103_v22  ;;  %5667 = vmatmul.mubr.f32.gmra.mrb[12].mxu1 %v7558_v16  ;;  %v5986_v22 = vpack.c.bf16 %v1283_v58, %v1282_v30  ;;  %v3430_v30 = vld [vmem:[%s9445_s3 + $0x48] sm:$0xff]  ;;  %v5253_v58 = vld [vmem:[%s6913_s22 + $0x50] sm:$0xff] }
 0x164   : > { %1867 = vmatprep.mubr.f32.mxu0 %v7462_v35  ;;  %5981 = vmatpush1.bf16.msra.mxu0 %v5980_v12  ;;  %v1284_v35 = vld [vmem:[%s9443_s1 + $0x380] sm:$0xff]  ;;  %v5285_v12 = vld [vmem:[%s6913_s22 + $0x51] sm:$0xff] }
 0x165   : > { %5982 = vmatprep.subr.bf16.mxu0 %v9482_v44  ;;  %5669 = vmatprep.mubr.f32.mxu1 %v7563_v54 }
 0x167   : > { %1868 = vmatmul.mubr.f32.gmra.mrb[12].mxu0 %v7118_v27  ;;  %5670 = vmatmul.mubr.f32.gmra.mrb[14].mxu1 %v7568_v19  ;;  %v5989_v27 = vpack.c.bf16 %v1285_v48, %v1284_v35  ;;  %v3431_v48 = vld [vmem:[%s9445_s3 + $0x50] sm:$0xff] }
 0x168   : > { %1872 = vmatprep.mubr.f32.mxu0 %v7474_v40  ;;  %5984 = vmatpush1.bf16.msra.mxu0 %v5983_v17  ;;  %v1286_v40 = vld [vmem:[%s9443_s1 + $0x390] sm:$0xff]  ;;  %v3429_v17 = vld [vmem:[%s9445_s3 + $0x40] sm:$0xff] }
 0x169   : > { %5985 = vmatprep.subr.bf16.mxu0 %v9482_v44  ;;  %5672 = vmatprep.mubr.f32.mxu1 %v7573_v23  ;;  %v6057_v35 = vpack.c.bf16 %v3430_v30, %v3429_v17  ;;  %v5268_v17 = vld [vmem:[%s6913_s22 + $0x108] sm:$0xff]  ;;  %v5301_v30 = vld [vmem:[%s6913_s22 + $0x111] sm:$0xff] }
 0x16b   : > { %1873 = vmatmul.mubr.f32.gmra.mrb[14].mxu0 %v7133_v32  ;;  %5673 = vmatmul.mubr.f32.gmra.mrb[16].mxu1 %v7578_v26  ;;  %v5992_v32 = vpack.c.bf16 %v1287_v3, %v1286_v40  ;;  %v5254_v40 = vld [vmem:[%s6913_s22 + $0x60] sm:$0xff]  ;;  %v5287_v3 = vld [vmem:[%s6913_s22 + $0x69] sm:$0xff] }
 0x16c   : > { %1877 = vmatprep.mubr.f32.mxu0 %v7486_v45  ;;  %5987 = vmatpush1.bf16.msra.mxu0 %v5986_v22  ;;  %v1288_v45 = vld [vmem:[%s9443_s1 + $0x3a0] sm:$0xff] }
 0x16d   : > { %5988 = vmatprep.subr.bf16.mxu0 %v9482_v44  ;;  %5675 = vmatprep.mubr.f32.mxu1 %v7583_v29  ;;  %v5286_v22 = vld [vmem:[%s6913_s22 + $0x61] sm:$0xff] }
 0x16f   : > { %1878 = vmatmul.mubr.f32.gmra.mrb[16].mxu0 %v7148_v37  ;;  %5676 = vmatmul.mubr.f32.gmra.mrb[18].mxu1 %v7588_v33  ;;  %v5995_v37 = vpack.c.bf16 %v1289_v51, %v1288_v45  ;;  %v3433_v45 = vld [vmem:[%s9445_s3 + $0x60] sm:$0xff]  ;;  %v3434_v51 = vld [vmem:[%s9445_s3 + $0x68] sm:$0xff] }
 0x170   : > { %1882 = vmatprep.mubr.f32.mxu0 %v7498_v50  ;;  %5990 = vmatpush1.bf16.msra.mxu0 %v5989_v27  ;;  %v1290_v50 = vld [vmem:[%s9443_s1 + $0x3b0] sm:$0xff]  ;;  %v3432_v27 = vld [vmem:[%s9445_s3 + $0x58] sm:$0xff] }
 0x171   : > { %5991 = vmatprep.subr.bf16.mxu0 %v9482_v44  ;;  %5678 = vmatprep.mubr.f32.mxu1 %v7593_v36 }
 0x173   : > { %1883 = vmatmul.mubr.f32.gmra.mrb[18].mxu0 %v7163_v42  ;;  %5679 = vmatmul.mubr.f32.gmra.mrb[20].mxu1 %v7604_v43  ;;  %v5998_v42 = vpack.c.bf16 %v1291_v63, %v1290_v50  ;;  %v5288_v50 = vld [vmem:[%s6913_s22 + $0x79] sm:$0xff]  ;;  %v6063_v63 = vpack.c.bf16 %v3434_v51, %v3433_v45  ;;  %v3451_v45 = vld [vmem:[%s9445_s3 + $0xf0] sm:$0xff] }
 0x174   : > { %1887 = vmatprep.mubr.f32.mxu0 %v7510_v55  ;;  %5993 = vmatpush1.bf16.msra.mxu0 %v5992_v32  ;;  %v1292_v55 = vld [vmem:[%s9443_s1 + $0x3c0] sm:$0xff]  ;;  %v6060_v32 = vpack.c.bf16 %v3432_v27, %v3431_v48  ;;  %v3450_v48 = vld [vmem:[%s9445_s3 + $0xe8] sm:$0xff]  ;;  %v3452_v51 = vld [vmem:[%s9445_s3 + $0xf8] sm:$0xff] }
 0x175   : > { %5994 = vmatprep.subr.bf16.mxu0 %v9482_v44  ;;  %5681 = vmatprep.mubr.f32.mxu1 %v7615_v15 }
 0x177   : > { %1888 = vmatmul.mubr.f32.gmra.mrb[20].mxu0 %v7178_v47  ;;  %5682 = vmatmul.mubr.f32.gmra.mrb[22].mxu1 %v7626_v20  ;;  %v6001_v47 = vpack.c.bf16 %v1293_v59, %v1292_v55  ;;  %v3436_v55 = vld [vmem:[%s9445_s3 + $0x78] sm:$0xff] }
 0x178   : > { %1892 = vmatprep.mubr.f32.mxu0 %v7522_v61  ;;  %5996 = vmatpush1.bf16.msra.mxu0 %v5995_v37  ;;  %v1294_v61 = vld [vmem:[%s9443_s1 + $0x3d0] sm:$0xff]  ;;  %v5255_v37 = vld [vmem:[%s6913_s22 + $0x68] sm:$0xff]  ;;  %v5256_v59 = vld [vmem:[%s6913_s22 + $0x78] sm:$0xff] }
 0x179   : > { %5997 = vmatprep.subr.bf16.mxu0 %v9482_v44  ;;  %5684 = vmatprep.mubr.f32.mxu1 %v7637_v56 }
 0x17b   : > { %1893 = vmatmul.mubr.f32.gmra.mrb[22].mxu0 %v7193_v52  ;;  %5685 = vmatmul.mubr.f32.gmra.mrb[24].mxu1 %v7648_v60  ;;  %v6004_v52 = vpack.c.bf16 %v1295_v9, %v1294_v61  ;;  %v3437_v9 = vld [vmem:[%s9445_s3 + $0x80] sm:$0xff] }
 0x17c   : > { %1897 = vmatprep.mubr.f32.mxu0 %v7534_v7  ;;  %5999 = vmatpush1.bf16.msra.mxu0 %v5998_v42  ;;  %v1296_v7 = vld [vmem:[%s9443_s1 + $0x3e0] sm:$0xff]  ;;  %v3435_v42 = vld [vmem:[%s9445_s3 + $0x70] sm:$0xff] }
 0x17d   : > { %6000 = vmatprep.subr.bf16.mxu0 %v9482_v44  ;;  %5687 = vmatprep.mubr.f32.mxu1 %v7662_v2  ;;  %v6066_v61 = vpack.c.bf16 %v3436_v55, %v3435_v42  ;;  %v5271_v42 = vld [vmem:[%s6913_s22 + $0x128] sm:$0xff] }
 0x17f   : > { %1898 = vmatmul.mubr.f32.gmra.mrb[24].mxu0 %v7208_v57  ;;  %5688 = vmatmul.mubr.f32.gmra.mrb[26].mxu1 %v7676_v46  ;;  %v6007_v57 = vpack.c.bf16 %v1297_v39, %v1296_v7  ;;  %v5257_v7 = vld [vmem:[%s6913_s22 + $0x80] sm:$0xff]  ;;  %v5290_v39 = vld [vmem:[%s6913_s22 + $0x91] sm:$0xff] }
 0x180   : > { %1902 = vmatprep.mubr.f32.mxu0 %v7546_v13  ;;  %6002 = vmatpush1.bf16.msra.mxu0 %v6001_v47  ;;  %v5248_v13 = vld [vmem:[%s6913_s22 + $0x182] sm:$0xff] }
 0x181   : > { %6003 = vmatprep.subr.bf16.mxu0 %v9482_v44  ;;  %5690 = vmatprep.mubr.f32.mxu1 %v5248_v13  ;;  %v5289_v47 = vld [vmem:[%s6913_s22 + $0x81] sm:$0xff] }
 0x183   : > { %1903 = vmatmul.mubr.f32.gmra.mrb[26].mxu0 %v7223_v1  ;;  %5691 = vmatmul.mubr.f32.gmra.mrb[28].mxu1 %v5249_v49  ;;  %v6010_v1 = vpack.c.bf16 %v1299_v11, %v1298_v0  ;;  %v3440_v0 = vld [vmem:[%s9445_s3 + $0x98] sm:$0xff]  ;;  %v5258_v11 = vld [vmem:[%s6913_s22 + $0x90] sm:$0xff] }
 0x184   : > { %1907 = vmatprep.mubr.f32.mxu0 %v7552_v4  ;;  %6005 = vmatpush1.bf16.msra.mxu0 %v6004_v52  ;;  %v5282_v4 = vld [vmem:[%s6913_s22 + $0x31] sm:$0xff]  ;;  %v3438_v52 = vld [vmem:[%s9445_s3 + $0x88] sm:$0xff] }
 0x185   : > { %6006 = vmatprep.subr.bf16.mxu0 %v9482_v44 }
 0x187   : > { %1908 = vmatmul.mubr.f32.gmra.mrb[28].mxu0 %v7238_v10  ;;  %v9484_v10 = vld [vmem:[#allocation4_spill] sm:$0xff] }
 0x188   : > { %1912 = vmatprep.mubr.f32.mxu0 %v7558_v16  ;;  %6008 = vmatpush1.bf16.msra.mxu0 %v6007_v57  ;;  %v3421_v16 = vld [vmem:[%s9445_s3] sm:$0xff]  ;;  %v6069_v57 = vpack.c.bf16 %v3438_v52, %v3437_v9 }
 0x189   : > { %6009 = vmatprep.subr.bf16.mxu0 %v9482_v44  ;;  %v3553_v52 = vld [vmem:[%s9445_s3 + $0x420] sm:$0xff] }
 0x18b   : > { %1913 = vmatmul.mubr.f32.gmra.mrb[30].mxu0 %v7247_v14  ;;  %v9485_v14 = vld [vmem:[#allocation5_spill] sm:$0xff] }
 0x18c   : > { %1917 = vmatprep.mubr.f32.mxu0 %v7563_v54  ;;  %6011 = vmatpush1.bf16.msra.mxu0 %v6010_v1  ;;  %v3422_v54 = vld [vmem:[%s9445_s3 + $0x8] sm:$0xff] }
 0x18d   : > { %6237 = vmatprep.subr.bf16.mxu0 %v6236_v25 }
 0x18f   : > { %1918 = vmatmul.mubr.f32.gmra.mrb[32].mxu0 %v7256_v18  ;;  %v9486_v18 = vld [vmem:[#allocation6_spill] sm:$0xff] }
 0x190   : > { %1922 = vmatprep.mubr.f32.mxu0 %v7568_v19  ;;  %v3423_v19 = vld [vmem:[%s9445_s3 + $0x10] sm:$0xff] }
 0x193   : > { %1923 = vmatmul.mubr.f32.gmra.mrb[34].mxu0 %v7264_v21  ;;  %v9487_v21 = vld [vmem:[#allocation7_spill] sm:$0xff] }
 0x194   : > { %1927 = vmatprep.mubr.f32.mxu0 %v7573_v23  ;;  %v5250_v23 = vld [vmem:[%s6913_s22 + $0x30] sm:$0xff] }
 0x197   : > { %1928 = vmatmul.mubr.f32.gmra.mrb[36].mxu0 %v7272_v24  ;;  %v9488_v24 = vld [vmem:[#allocation8_spill] sm:$0xff] }
 0x198   : > { %1932 = vmatprep.mubr.f32.mxu0 %v7578_v26  ;;  %v6045_v26 = vpack.c.bf16 %v3422_v54, %v3421_v16  ;;  %v3445_v54 = vld [vmem:[%s9445_s3 + $0xc0] sm:$0xff] }
 0x19a   : > { %6046 = vmatpush1.bf16.msra.mxu1 %v6045_v26  ;;  %v5294_v26 = vld [vmem:[%s6913_s22 + $0xc1] sm:$0xff] }
 0x19b   : > { %1933 = vmatmul.mubr.f32.gmra.mrb[38].mxu0 %v7280_v28  ;;  %v9489_v28 = vld [vmem:[#allocation9_spill] sm:$0xff]  ;;  %6047 = vmatprep.subr.bf16.mxu1 %v9482_v44 }
 0x19c   : > { %1937 = vmatprep.mubr.f32.mxu0 %v7583_v29  ;;  %v3424_v29 = vld [vmem:[%s9445_s3 + $0x18] sm:$0xff] }
 0x19f   : > { %1938 = vmatmul.mubr.f32.gmra.mrb[40].mxu0 %v7288_v31  ;;  %v7887_v31 = vld [vmem:[%s6913_s22 + $0x181] sm:$0xff] }
 0x1a0   : > { %1942 = vmatprep.mubr.f32.mxu0 %v7588_v33  ;;  %v5283_v33 = vld [vmem:[%s6913_s22 + $0x39] sm:$0xff] }
 0x1a3   : > { %1943 = vmatmul.mubr.f32.gmra.mrb[42].mxu0 %v7296_v34  ;;  %v5344_v34 = vld [vmem:[%s6913_s22 + $0x19a] sm:$0xff] }
 0x1a4   : > { %1947 = vmatprep.mubr.f32.mxu0 %v7593_v36  ;;  %5693 = vmatprep.mubr.f32.mxu1 %v5344_v34  ;;  %v6048_v36 = vpack.c.bf16 %v3424_v29, %v3423_v19  ;;  %v3444_v34 = vld [vmem:[%s9445_s3 + $0xb8] sm:$0xff]  ;;  %v3446_v19 = vld [vmem:[%s9445_s3 + $0xc8] sm:$0xff] }
 0x1a5   : > { %v6081_v29 = vpack.c.bf16 %v3446_v19, %v3445_v54  ;;  %v3559_v54 = vld [vmem:[%s9445_s3 + $0x450] sm:$0xff]  ;;  %v3560_v19 = vld [vmem:[%s9445_s3 + $0x458] sm:$0xff] }
 0x1a6   : > { %6049 = vmatpush1.bf16.msra.mxu1 %v6048_v36  ;;  %v3448_v36 = vld [vmem:[%s9445_s3 + $0xd8] sm:$0xff] }
 0x1a7   : > { %1948 = vmatmul.mubr.f32.gmra.mrb[44].mxu0 %v7304_v38  ;;  %v5345_v38 = vld [vmem:[%s6913_s22 + $0x1a2] sm:$0xff]  ;;  %6050 = vmatprep.subr.bf16.mxu1 %v9482_v44 }
 0x1a8   : > { %1952 = vmatprep.mubr.f32.mxu0 %v7604_v43  ;;  %5694 = vmatmul.mubr.f32.gmra.mrb[30].mxu1 %v5345_v38  ;;  %v3425_v43 = vld [vmem:[%s9445_s3 + $0x20] sm:$0xff]  ;;  %v5260_v38 = vld [vmem:[%s6913_s22 + $0xa8] sm:$0xff] }
 0x1ab   : > { %1953 = vmatmul.mubr.f32.gmra.mrb[46].mxu0 %v7312_v41  ;;  %v7893_v41 = vld [vmem:[%s6913_s22 + $0x189] sm:$0xff] }
 0x1ac   : > { %1957 = vmatprep.mubr.f32.mxu0 %v7615_v15  ;;  %v3426_v15 = vld [vmem:[%s9445_s3 + $0x28] sm:$0xff] }
 0x1af   : > { %1958 = vmatmul.mubr.f32.gmra.mrb[48].mxu0 %v9484_v10  ;;  %v3441_v10 = vld [vmem:[%s9445_s3 + $0xa0] sm:$0xff] }
 0x1b0   : > { %1962 = vmatprep.mubr.f32.mxu0 %v7626_v20  ;;  %v5251_v20 = vld [vmem:[%s6913_s22 + $0x38] sm:$0xff] }
 0x1b3   : > { %1963 = vmatmul.mubr.f32.gmra.mrb[50].mxu0 %v9485_v14  ;;  %v3442_v14 = vld [vmem:[%s9445_s3 + $0xa8] sm:$0xff] }
 0x1b4   : > { %1967 = vmatprep.mubr.f32.mxu0 %v7637_v56  ;;  %v5284_v56 = vld [vmem:[%s6913_s22 + $0x49] sm:$0xff] }
 0x1b7   : > { %1968 = vmatmul.mubr.f32.gmra.mrb[52].mxu0 %v9486_v18  ;;  %v5259_v18 = vld [vmem:[%s6913_s22 + $0x98] sm:$0xff] }
 0x1b8   : > { %1972 = vmatprep.mubr.f32.mxu0 %v7648_v60  ;;  %v6051_v60 = vpack.c.bf16 %v3426_v15, %v3425_v43  ;;  %v5262_v43 = vld [vmem:[%s6913_s22 + $0xc0] sm:$0xff]  ;;  %v5295_v15 = vld [vmem:[%s6913_s22 + $0xc9] sm:$0xff] }
 0x1ba   : > { %6052 = vmatpush1.bf16.msra.mxu1 %v6051_v60  ;;  %v5296_v60 = vld [vmem:[%s6913_s22 + $0xd9] sm:$0xff] }
 0x1bb   : > { %1973 = vmatmul.mubr.f32.gmra.mrb[54].mxu0 %v9487_v21  ;;  %6053 = vmatprep.subr.bf16.mxu1 %v9482_v44  ;;  %v5292_v21 = vld [vmem:[%s6913_s22 + $0xa9] sm:$0xff] }
 0x1bc   : > { %1977 = vmatprep.mubr.f32.mxu0 %v7662_v2  ;;  %v3427_v2 = vld [vmem:[%s9445_s3 + $0x30] sm:$0xff] }
 0x1bf   : > { %1978 = vmatmul.mubr.f32.gmra.mrb[56].mxu0 %v9488_v24  ;;  %v6075_v24 = vpack.c.bf16 %v3442_v14, %v3441_v10  ;;  %v5273_v10 = vld [vmem:[%s6913_s22 + $0x140] sm:$0xff] }
 0x1c0   : > { %1982 = vmatprep.mubr.f32.mxu0 %v7676_v46  ;;  %v3428_v46 = vld [vmem:[%s9445_s3 + $0x38] sm:$0xff] }
 0x1c1   : > { %v6054_v53 = vpack.c.bf16 %v3428_v46, %v3427_v2  ;;  %v5264_v2 = vld [vmem:[%s6913_s22 + $0xd8] sm:$0xff]  ;;  %v5297_v46 = vld [vmem:[%s6913_s22 + $0xe1] sm:$0xff] }
 0x1c3   : > { %1983 = vmatmul.mubr.f32.gmra.mrb[58].mxu0 %v9489_v28  ;;  %6055 = vmatpush1.bf16.msra.mxu1 %v6054_v53  ;;  %v3443_v28 = vld [vmem:[%s9445_s3 + $0xb0] sm:$0xff] }
 0x1c4   : > { %1987 = vmatprep.mubr.f32.mxu0 %v5248_v13  ;;  %6056 = vmatprep.subr.bf16.mxu1 %v9482_v44  ;;  %v3439_v13 = vld [vmem:[%s9445_s3 + $0x90] sm:$0xff]  ;;  %v6078_v16 = vpack.c.bf16 %v3444_v34, %v3443_v28  ;;  %v3557_v28 = vld [vmem:[%s9445_s3 + $0x440] sm:$0xff]  ;;  %v3558_v34 = vld [vmem:[%s9445_s3 + $0x448] sm:$0xff] }
 0x1c5   : > { %v6072_v1 = vpack.c.bf16 %v3440_v0, %v3439_v13  ;;  %v5300_v53 = vld [vmem:[%s6913_s22 + $0x109] sm:$0xff]  ;;  %v5305_v0 = vld [vmem:[%s6913_s22 + $0x141] sm:$0xff] }
 0x1c7   : > { %1988 = vmatmul.mubr.f32.gmra.mrb[60].mxu0 %v7887_v31  ;;  %6058 = vmatpush1.bf16.msra.mxu1 %v6057_v35  ;;  %v3449_v35 = vld [vmem:[%s9445_s3 + $0xe0] sm:$0xff] }
 0x1c8   : > { %1992 = vmatprep.mubr.f32.mxu0 %v5249_v49  ;;  %6059 = vmatprep.subr.bf16.mxu1 %v9482_v44  ;;  %v5291_v49 = vld [vmem:[%s6913_s22 + $0x99] sm:$0xff]  ;;  %v6087_v27 = vpack.c.bf16 %v3450_v48, %v3449_v35 }
 0x1c9   : > { %v5312_v35 = vld [vmem:[%s6913_s22 + $0x199] sm:$0xff] }
 0x1ca   : > { %v3457_v48 = vld [vmem:[%s9445_s3 + $0x120] sm:$0xff] }
 0x1cb   : > { %1993 = vmatmul.mubr.f32.gmra.mrb[62].mxu0 %v7893_v41  ;;  %6061 = vmatpush1.bf16.msra.mxu1 %v6060_v32  ;;  %v5303_v32 = vld [vmem:[%s6913_s22 + $0x129] sm:$0xff] }
 0x1cc   : > { %2062 = vmatprep.mubr.f32.mxu0 %v5282_v4  ;;  %6062 = vmatprep.subr.bf16.mxu1 %v9482_v44  ;;  %v5293_v4 = vld [vmem:[%s6913_s22 + $0xb1] sm:$0xff] }
 0x1cf   : > { %2063 = vmatmul.mubr.f32.vlgmr.msra.gmra.mrb[0].mxu0 %v5250_v23  ;;  %6064 = vmatpush1.bf16.msra.mxu1 %v6063_v63  ;;  %v5261_v23 = vld [vmem:[%s6913_s22 + $0xb0] sm:$0xff]  ;;  %v6090_v63 = vpack.c.bf16 %v3452_v51, %v3451_v45  ;;  %v5281_v45 = vld [vmem:[%s6913_s22 + $0x1a0] sm:$0xff] }
 0x1d0   : > { %2067 = vmatprep.mubr.f32.mxu0 %v5283_v33  ;;  %6239 = vmatpush3.bf16.msra.mxu0 %v6236_v25  ;;  %v3447_v33 = vld [vmem:[%s9445_s3 + $0xd0] sm:$0xff]  ;;  %v5267_v25 = vld [vmem:[%s6913_s22 + $0xf8] sm:$0xff] }
 0x1d1   : > { %6065 = vmatprep.subr.bf16.mxu1 %v9482_v44  ;;  %v3459_v51 = vld [vmem:[%s9445_s3 + $0x130] sm:$0xff] }
 0x1d3   : > { %2068 = vmatmul.mubr.f32.gmra.mrb[2].mxu0 %v5251_v20  ;;  %6067 = vmatpush1.bf16.msra.mxu1 %v6066_v61  ;;  %v6084_v20 = vpack.c.bf16 %v3448_v36, %v3447_v33  ;;  %v3453_v33 = vld [vmem:[%s9445_s3 + $0x100] sm:$0xff]  ;;  %v3454_v36 = vld [vmem:[%s9445_s3 + $0x108] sm:$0xff] }
 0x1d4   : > { %2072 = vmatprep.mubr.f32.mxu0 %v5284_v56  ;;  %6068 = vmatprep.subr.bf16.mxu1 %v9482_v44  ;;  %v5263_v56 = vld [vmem:[%s6913_s22 + $0xc8] sm:$0xff] }
 0x1d7   : > { %2073 = vmatmul.mubr.f32.gmra.mrb[4].mxu0 %v5252_v5  ;;  %6070 = vmatpush1.bf16.msra.mxu1 %v6069_v57  ;;  %v5298_v5 = vld [vmem:[%s6913_s22 + $0xf1] sm:$0xff] }
 0x1d8   : > { %2077 = vmatprep.mubr.f32.mxu0 %v5285_v12  ;;  %6071 = vmatprep.subr.bf16.mxu1 %v9482_v44  ;;  %v5299_v12 = vld [vmem:[%s6913_s22 + $0xf9] sm:$0xff] }
 0x1d9   : > { %v5272_v57 = vld [vmem:[%s6913_s22 + $0x138] sm:$0xff] }
 0x1db   : > { %2078 = vmatmul.mubr.f32.gmra.mrb[6].mxu0 %v5253_v58  ;;  %6073 = vmatpush1.bf16.msra.mxu1 %v6072_v1  ;;  %v5269_v58 = vld [vmem:[%s6913_s22 + $0x110] sm:$0xff]  ;;  %v3556_v1 = vld [vmem:[%s9445_s3 + $0x438] sm:$0xff] }
 0x1dc   : > { %2082 = vmatprep.mubr.f32.mxu0 %v5286_v22  ;;  %6074 = vmatprep.subr.bf16.mxu1 %v9482_v44  ;;  %v5302_v22 = vld [vmem:[%s6913_s22 + $0x121] sm:$0xff] }
 0x1df   : > { %2083 = vmatmul.mubr.f32.gmra.mrb[8].mxu0 %v5254_v40  ;;  %6076 = vmatpush1.bf16.msra.mxu1 %v6075_v24  ;;  %v6833_v40 = vmov 0.0  }
 0x1e0   : > { %2087 = vmatprep.mubr.f32.mxu0 %v5287_v3  ;;  %6077 = vmatprep.subr.bf16.mxu1 %v9482_v44  ;;  %2480 = vst [vmem:[#allocation2] sm:$0xff] %v6833_v40  ;;  %2481 = vst [vmem:[#allocation2 + $0x8] sm:$0xff] %v6833_v40  ;;  %v5270_v3 = vld [vmem:[%s6913_s22 + $0x120] sm:$0xff] }
 0x1e1   : > { %2482 = vst [vmem:[#allocation2 + $0x10] sm:$0x3] %v6833_v40  ;;  %2484 = vst [vmem:[#allocation2 + $0x198] sm:$0xff] %v6833_v40 }
 0x1e2   : > { %2485 = vst [vmem:[#allocation2 + $0x1a0] sm:$0xff] %v6833_v40  ;;  %2486 = vst [vmem:[#allocation2 + $0x1a8] sm:$0x3] %v6833_v40 }
 0x1e3   : > { %2088 = vmatmul.mubr.f32.gmra.mrb[10].mxu0 %v5255_v37  ;;  %6079 = vmatpush1.bf16.msra.mxu1 %v6078_v16  ;;  %2488 = vst [vmem:[#allocation2 + $0x18] sm:$0x1] %v6833_v40  ;;  %2489 = vst [vmem:[#allocation2 + $0x30] sm:$0x1] %v6833_v40  ;;  %v3551_v37 = vld [vmem:[%s9445_s3 + $0x410] sm:$0xff]  ;;  %v5307_v16 = vld [vmem:[%s6913_s22 + $0x159] sm:$0xff] }
 0x1e4   : > { %2092 = vmatprep.mubr.f32.mxu0 %v5288_v50  ;;  %6080 = vmatprep.subr.bf16.mxu1 %v9482_v44  ;;  %2490 = vst [vmem:[#allocation2 + $0x48] sm:$0x1] %v6833_v40  ;;  %2491 = vst [vmem:[#allocation2 + $0x60] sm:$0x1] %v6833_v40  ;;  %v3552_v50 = vld [vmem:[%s9445_s3 + $0x418] sm:$0xff] }
 0x1e5   : > { %2492 = vst [vmem:[#allocation2 + $0x78] sm:$0x1] %v6833_v40  ;;  %2493 = vst [vmem:[#allocation2 + $0x90] sm:$0x1] %v6833_v40  ;;  %v6240_v55 = vpack.c.bf16 %v3552_v50, %v3551_v37  ;;  %v3460_v37 = vld [vmem:[%s9445_s3 + $0x138] sm:$0xff] }
 0x1e6   : > { %2494 = vst [vmem:[#allocation2 + $0xa8] sm:$0x1] %v6833_v40  ;;  %2495 = vst [vmem:[#allocation2 + $0xc0] sm:$0x1] %v6833_v40  ;;  %v6102_v50 = vpack.c.bf16 %v3460_v37, %v3459_v51 }
 0x1e7   : > { %2093 = vmatmul.mubr.f32.gmra.mrb[12].mxu0 %v5256_v59  ;;  %6082 = vmatpush1.bf16.msra.mxu1 %v6081_v29  ;;  %2496 = vst [vmem:[#allocation2 + $0xd8] sm:$0x1] %v6833_v40  ;;  %2497 = vst [vmem:[#allocation2 + $0xf0] sm:$0x1] %v6833_v40  ;;  %v5304_v59 = vld [vmem:[%s6913_s22 + $0x139] sm:$0xff]  ;;  %v2620_v61 = vld [vmem:[#allocation2 + $0x1] sm:$0xff] }
 0x1e8   : > { %2097 = vmatprep.mubr.f32.mxu0 %v5289_v47  ;;  %6083 = vmatprep.subr.bf16.mxu1 %v9482_v44  ;;  %2498 = vst [vmem:[#allocation2 + $0x108] sm:$0x1] %v6833_v40  ;;  %2499 = vst [vmem:[#allocation2 + $0x120] sm:$0x1] %v6833_v40  ;;  %v5308_v29 = vld [vmem:[%s6913_s22 + $0x169] sm:$0xff] }
 0x1e9   : > { %2500 = vst [vmem:[#allocation2 + $0x138] sm:$0x1] %v6833_v40  ;;  %2501 = vst [vmem:[#allocation2 + $0x150] sm:$0x1] %v6833_v40  ;;  %6241 = vmatprep.subr.bf16.mxu0 %v6240_v55  ;;  %3636 = vmatprep.mubr.f32.mxu1 %v2620_v61 }
 0x1ea   : > { %2502 = vst [vmem:[#allocation2 + $0x168] sm:$0x1] %v6833_v40  ;;  %2503 = vst [vmem:[#allocation2 + $0x180] sm:$0x1] %v6833_v40  ;;  %6243 = vmatpush3.bf16.msra.mxu0 %v6240_v55  ;;  %v3461_v55 = vld [vmem:[%s9445_s3 + $0x140] sm:$0xff] }
 0x1eb   : > { %2098 = vmatmul.mubr.f32.gmra.mrb[14].mxu0 %v5257_v7  ;;  %6085 = vmatpush1.bf16.msra.mxu1 %v6084_v20  ;;  %2506 = vst [vmem:[#allocation2 + $0x29] sm:$0x1] %v6833_v40  ;;  %2507 = vst [vmem:[#allocation2 + $0x41] sm:$0x1] %v6833_v40  ;;  %v3554_v7 = vld [vmem:[%s9445_s3 + $0x428] sm:$0xff] }
 0x1ec   : > { %2102 = vmatprep.mubr.f32.mxu0 %v5290_v39  ;;  %6086 = vmatprep.subr.bf16.mxu1 %v9482_v44  ;;  %2508 = vst [vmem:[#allocation2 + $0x59] sm:$0x1] %v6833_v40  ;;  %2509 = vst [vmem:[#allocation2 + $0x71] sm:$0x1] %v6833_v40  ;;  %v6244_v13 = vpack.c.bf16 %v3554_v7, %v3553_v52 }
 0x1ed   : > { %2510 = vst [vmem:[#allocation2 + $0x89] sm:$0x1] %v6833_v40  ;;  %2511 = vst [vmem:[#allocation2 + $0xa1] sm:$0x1] %v6833_v40 }
 0x1ee   : > { %2512 = vst [vmem:[#allocation2 + $0xb9] sm:$0x1] %v6833_v40  ;;  %2513 = vst [vmem:[#allocation2 + $0xd1] sm:$0x1] %v6833_v40  ;;  %6245 = vmatprep.subr.bf16.mxu0 %v6244_v13 }
 0x1ef   : > { %2103 = vmatmul.mubr.f32.gmra.mrb[16].mxu0 %v5258_v11  ;;  %2514 = vst [vmem:[#allocation2 + $0xe9] sm:$0x1] %v6833_v40  ;;  %2515 = vst [vmem:[#allocation2 + $0x101] sm:$0x1] %v6833_v40  ;;  %6088 = vmatpush1.bf16.msra.mxu1 %v6087_v27  ;;  %v2621_v11 = vld [vmem:[#allocation2 + $0x9] sm:$0xff] }
 0x1f0   : > { %2107 = vmatprep.mubr.f32.mxu0 %v5291_v49  ;;  %2516 = vst [vmem:[#allocation2 + $0x119] sm:$0x1] %v6833_v40  ;;  %2517 = vst [vmem:[#allocation2 + $0x131] sm:$0x1] %v6833_v40  ;;  %6089 = vmatprep.subr.bf16.mxu1 %v9482_v44  ;;  %v3555_v49 = vld [vmem:[%s9445_s3 + $0x430] sm:$0xff]  ;;  %v3458_v27 = vld [vmem:[%s9445_s3 + $0x128] sm:$0xff] }
 0x1f1   : > { %2518 = vst [vmem:[#allocation2 + $0x149] sm:$0x1] %v6833_v40  ;;  %2519 = vst [vmem:[#allocation2 + $0x161] sm:$0x1] %v6833_v40  ;;  %6247 = vmatpush3.bf16.msra.mxu0 %v6244_v13  ;;  %v6248_v14 = vpack.c.bf16 %v3556_v1, %v3555_v49  ;;  %v3465_v49 = vld [vmem:[%s9445_s3 + $0x160] sm:$0xff]  ;;  %v3466_v1 = vld [vmem:[%s9445_s3 + $0x168] sm:$0xff] }
 0x1f2   : > { %2520 = vst [vmem:[#allocation2 + $0x179] sm:$0x1] %v6833_v40  ;;  %2521 = vst [vmem:[#allocation2 + $0x191] sm:$0x1] %v6833_v40 }
 0x1f3   : > { %2108 = vmatmul.mubr.f32.gmra.mrb[18].mxu0 %v5259_v18  ;;  %2487 = vst [vmem:[#allocation2] sm:$0x1] %v6833_v40  ;;  %2504 = vst [vmem:[#allocation2 + $0x198] sm:$0x1] %v6833_v40  ;;  %6091 = vmatpush1.bf16.msra.mxu1 %v6090_v63  ;;  %v5306_v18 = vld [vmem:[%s6913_s22 + $0x151] sm:$0xff] }
 0x1f4   : > { %2112 = vmatprep.mubr.f32.mxu0 %v5292_v21  ;;  %2505 = vst [vmem:[#allocation2 + $0x11] sm:$0x1] %v6833_v40  ;;  %2522 = vst [vmem:[#allocation2 + $0x1a9] sm:$0x1] %v6833_v40  ;;  %6092 = vmatprep.subr.bf16.mxu1 %v9482_v44 }
 0x1f5   : > { %6249 = vmatprep.subr.bf16.mxu0 %v6248_v14 }
 0x1f6   : > { %6251 = vmatpush3.bf16.msra.mxu0 %v6248_v14 }
 0x1f7   : > { %2113 = vmatmul.mubr.f32.gmra.mrb[20].mxu0 %v5260_v38  ;;  %v5274_v38 = vld [vmem:[%s6913_s22 + $0x150] sm:$0xff] }
 0x1f8   : > { %2117 = vmatprep.mubr.f32.mxu0 %v5293_v4  ;;  %v6252_v4 = vpack.c.bf16 %v3558_v34, %v3557_v28  ;;  %v3467_v28 = vld [vmem:[%s9445_s3 + $0x170] sm:$0xff]  ;;  %v3468_v34 = vld [vmem:[%s9445_s3 + $0x178] sm:$0xff] }
 0x1fa   : > { %v2556_v39 = vld [vmem:[#allocation2] sm:$0xff]  ;;  %6253 = vmatprep.subr.bf16.mxu0 %v6252_v4 }
 0x1fb   : > { %2118 = vmatmul.mubr.f32.gmra.mrb[22].mxu0 %v5261_v23  ;;  %3637 = vmatmul.mubr.f32.vlgmr.msra.gmra.mrb[32].mxu1 %v2556_v39  ;;  %v5275_v23 = vld [vmem:[%s6913_s22 + $0x158] sm:$0xff]  ;;  %v3463_v39 = vld [vmem:[%s9445_s3 + $0x150] sm:$0xff] }
 0x1fc   : > { %2122 = vmatprep.mubr.f32.mxu0 %v5294_v26  ;;  %3641 = vmatprep.mubr.f32.mxu1 %v2621_v11  ;;  %v6256_v26 = vpack.c.bf16 %v3560_v19, %v3559_v54  ;;  %v3469_v54 = vld [vmem:[%s9445_s3 + $0x180] sm:$0xff]  ;;  %v3470_v19 = vld [vmem:[%s9445_s3 + $0x188] sm:$0xff] }
 0x1fd   : > { %6255 = vmatpush3.bf16.msra.mxu0 %v6252_v4 }
 0x1fe   : > { %6257 = vmatprep.subr.bf16.mxu0 %v6256_v26 }
 0x1ff   : > { %2123 = vmatmul.mubr.f32.gmra.mrb[24].mxu0 %v5262_v43  ;;  %3642 = vmatmul.mubr.f32.gmra.mrb[34].mxu1 %v6833_v40  ;;  %v6093_v43 = vpack.c.bf16 %v3454_v36, %v3453_v33  ;;  %v3471_v33 = vld [vmem:[%s9445_s3 + $0x190] sm:$0xff]  ;;  %v3472_v36 = vld [vmem:[%s9445_s3 + $0x198] sm:$0xff] }
 0x200   : > { %2127 = vmatprep.mubr.f32.mxu0 %v5295_v15 }
 0x201   : > { %6094 = vmatpush1.bf16.msra.mxu1 %v6093_v43  ;;  %6259 = vmatpush3.bf16.msra.mxu0 %v6256_v26  ;;  %v6120_v43 = vpack.c.bf16 %v3472_v36, %v3471_v33 }
 0x202   : > { %6095 = vmatprep.subr.bf16.mxu1 %v9482_v44 }
 0x203   : > { %2128 = vmatmul.mubr.f32.gmra.mrb[26].mxu0 %v5263_v56  ;;  %v3561_v56 = vld [vmem:[%s9445_s3 + $0x460] sm:$0xff] }
 0x204   : > { %2132 = vmatprep.mubr.f32.mxu0 %v5296_v60  ;;  %v3562_v60 = vld [vmem:[%s9445_s3 + $0x468] sm:$0xff] }
 0x207   : > { %2133 = vmatmul.mubr.f32.gmra.mrb[28].mxu0 %v5264_v2  ;;  %v5276_v2 = vld [vmem:[%s6913_s22 + $0x168] sm:$0xff] }
 0x208   : > { %2137 = vmatprep.mubr.f32.mxu0 %v5297_v46  ;;  %v6260_v46 = vpack.c.bf16 %v3562_v60, %v3561_v56 }
 0x20a   : > { %6261 = vmatprep.subr.bf16.mxu0 %v6260_v46 }
 0x20b   : > { %2138 = vmatmul.mubr.f32.gmra.mrb[30].mxu0 %v5265_v6  ;;  %v5309_v6 = vld [vmem:[%s6913_s22 + $0x171] sm:$0xff] }
 0x20c   : > { %2142 = vmatprep.mubr.f32.mxu0 %v5298_v5  ;;  %v3563_v5 = vld [vmem:[%s9445_s3 + $0x470] sm:$0xff]  ;;  %6263 = vmatpush3.bf16.msra.mxu0 %v6260_v46  ;;  %v3474_v46 = vld [vmem:[%s9445_s3 + $0x1a8] sm:$0xff] }
 0x20f   : > { %2143 = vmatmul.mubr.f32.gmra.mrb[32].mxu0 %v5266_v62  ;;  %v3564_v62 = vld [vmem:[%s9445_s3 + $0x478] sm:$0xff] }
 0x210   : > { %2147 = vmatprep.mubr.f32.mxu0 %v5299_v12  ;;  %v5277_v12 = vld [vmem:[%s6913_s22 + $0x170] sm:$0xff] }
 0x213   : > { %2148 = vmatmul.mubr.f32.gmra.mrb[34].mxu0 %v5267_v25  ;;  %v6264_v25 = vpack.c.bf16 %v3564_v62, %v3563_v5 }
 0x214   : > { %2152 = vmatprep.mubr.f32.mxu0 %v5300_v53  ;;  %v3455_v53 = vld [vmem:[%s9445_s3 + $0x110] sm:$0xff] }
 0x215   : > { %6265 = vmatprep.subr.bf16.mxu0 %v6264_v25 }
 0x216   : > { %6267 = vmatpush3.bf16.msra.mxu0 %v6264_v25  ;;  %v3476_v25 = vld [vmem:[%s9445_s3 + $0x1b8] sm:$0xff] }
 0x217   : > { %2153 = vmatmul.mubr.f32.gmra.mrb[36].mxu0 %v5268_v17  ;;  %v3456_v17 = vld [vmem:[%s9445_s3 + $0x118] sm:$0xff] }
 0x218   : > { %2157 = vmatprep.mubr.f32.mxu0 %v5301_v30  ;;  %v6096_v30 = vpack.c.bf16 %v3456_v17, %v3455_v53 }
 0x21a   : > { %6097 = vmatpush1.bf16.msra.mxu1 %v6096_v30 }
 0x21b   : > { %2158 = vmatmul.mubr.f32.gmra.mrb[38].mxu0 %v5269_v58  ;;  %6098 = vmatprep.subr.bf16.mxu1 %v9482_v44 }
 0x21c   : > { %2162 = vmatprep.mubr.f32.mxu0 %v5302_v22 }
 0x21e   : > { %v8106_v47 = vpop.f32.mrb[0].mxu1 }
 0x21f   : > { %2163 = vmatmul.mubr.f32.gmra.mrb[40].mxu0 %v5270_v3  ;;  %v8109_v9 = vpop.f32.mrb[1].mxu1  ;;  %v9490_v3 = vld [vmem:[#allocation10_spill] sm:$0xff] }
 0x220   : > { %2167 = vmatprep.mubr.f32.mxu0 %v5303_v32 }
 0x222   : > { %v8128_v21 = vpop.f32.mrb[2].mxu1 }
 0x223   : > { %2168 = vmatmul.mubr.f32.gmra.mrb[42].mxu0 %v5271_v42  ;;  %v8130_v24 = vpop.f32.mrb[3].mxu1 }
 0x224   : > { %2172 = vmatprep.mubr.f32.mxu0 %v5304_v59  ;;  %v3462_v59 = vld [vmem:[%s9445_s3 + $0x148] sm:$0xff] }
 0x225   : > { %v6105_v61 = vpack.c.bf16 %v3462_v59, %v3461_v55  ;;  %v3482_v55 = vld [vmem:[%s9445_s3 + $0x1e8] sm:$0xff] }
 0x226   : > { %v8154_v15 = vpop.f32.mrb[4].mxu1 }
 0x227   : > { %2173 = vmatmul.mubr.f32.gmra.mrb[44].mxu0 %v5272_v57  ;;  %v8156_v20 = vpop.f32.mrb[5].mxu1  ;;  %v3464_v57 = vld [vmem:[%s9445_s3 + $0x158] sm:$0xff] }
 0x228   : > { %2177 = vmatprep.mubr.f32.mxu0 %v5305_v0  ;;  %v6108_v13 = vpack.c.bf16 %v3464_v57, %v3463_v39 }
 0x22a   : > { %v8180_v58 = vpop.f32.mrb[6].mxu1 }
 0x22b   : > { %2178 = vmatmul.mubr.f32.gmra.mrb[46].mxu0 %v5273_v10  ;;  %v8182_v22 = vpop.f32.mrb[7].mxu1  ;;  %v6111_v10 = vpack.c.bf16 %v3466_v1, %v3465_v49  ;;  %v3483_v49 = vld [vmem:[%s9445_s3 + $0x1f0] sm:$0xff]  ;;  %v3484_v1 = vld [vmem:[%s9445_s3 + $0x1f8] sm:$0xff] }
 0x22c   : > { %2182 = vmatprep.mubr.f32.mxu0 %v5306_v18 }
 0x22e   : > { %v8195_v40 = vpop.f32.mrb[8].mxu1 }
 0x22f   : > { %2183 = vmatmul.mubr.f32.gmra.mrb[48].mxu0 %v5274_v38  ;;  %v8198_v32 = vpop.f32.mrb[9].mxu1  ;;  %v6114_v38 = vpack.c.bf16 %v3468_v34, %v3467_v28 }
 0x230   : > { %2187 = vmatprep.mubr.f32.mxu0 %v5307_v16 }
 0x232   : > { %v8210_v63 = vpop.f32.mrb[10].mxu1 }
 0x233   : > { %2188 = vmatmul.mubr.f32.gmra.mrb[50].mxu0 %v5275_v23  ;;  %v8212_v42 = vpop.f32.mrb[11].mxu1  ;;  %v6117_v23 = vpack.c.bf16 %v3470_v19, %v3469_v54 }
 0x234   : > { %2192 = vmatprep.mubr.f32.mxu0 %v5308_v29 }
 0x236   : > { %v8221_v52 = vpop.f32.mrb[12].mxu1 }
 0x237   : > { %2193 = vmatmul.mubr.f32.gmra.mrb[52].mxu0 %v5276_v2  ;;  %v8223_v7 = vpop.f32.mrb[13].mxu1  ;;  %v3473_v2 = vld [vmem:[%s9445_s3 + $0x1a0] sm:$0xff] }
 0x238   : > { %2197 = vmatprep.mubr.f32.mxu0 %v5309_v6  ;;  %v6123_v6 = vpack.c.bf16 %v3474_v46, %v3473_v2 }
 0x23a   : > { %v8232_v0 = vpop.f32.mrb[14].mxu1 }
 0x23b   : > { %2198 = vmatmul.mubr.f32.gmra.mrb[54].mxu0 %v5277_v12  ;;  %v8234_v11 = vpop.f32.mrb[15].mxu1  ;;  %v3475_v12 = vld [vmem:[%s9445_s3 + $0x1b0] sm:$0xff] }
 0x23c   : > { %2202 = vmatprep.mubr.f32.mxu0 %v7887_v31  ;;  %v6099_v31 = vpack.c.bf16 %v3458_v27, %v3457_v48  ;;  %v6126_v53 = vpack.c.bf16 %v3476_v25, %v3475_v12  ;;  %v3478_v48 = vld [vmem:[%s9445_s3 + $0x1c8] sm:$0xff] }
 0x23e   : > { %6100 = vmatpush1.bf16.msra.mxu1 %v6099_v31  ;;  %v8243_v14 = vpop.f32.mrb[16].mxu1 }
 0x23f   : > { %2203 = vmatmul.mubr.f32.gmra.mrb[56].mxu0 %v7657_v8  ;;  %v5280_v8 = vld [vmem:[%s6913_s22 + $0x198] sm:$0xff]  ;;  %6101 = vmatprep.subr.bf16.mxu1 %v9482_v44  ;;  %v8245_v18 = vpop.f32.mrb[17].mxu1 }
 0x240   : > { %2207 = vmatprep.mubr.f32.mxu0 %v7893_v41  ;;  %v5313_v41 = vld [vmem:[%s6913_s22 + $0x1a1] sm:$0xff] }
 0x242   : > { %6103 = vmatpush1.bf16.msra.mxu1 %v6102_v50  ;;  %v8254_v4 = vpop.f32.mrb[18].mxu1  ;;  %v3481_v50 = vld [vmem:[%s9445_s3 + $0x1e0] sm:$0xff] }
 0x243   : > { %2208 = vmatmul.mubr.f32.gmra.mrb[58].mxu0 %v9490_v3  ;;  %6104 = vmatprep.subr.bf16.mxu1 %v9482_v44  ;;  %v8256_v16 = vpop.f32.mrb[19].mxu1  ;;  %v6135_v59 = vpack.c.bf16 %v3482_v55, %v3481_v50 }
 0x244   : > { %2212 = vmatprep.mubr.f32.mxu0 %v5312_v35  ;;  %v3477_v35 = vld [vmem:[%s9445_s3 + $0x1c0] sm:$0xff] }
 0x245   : > { %v6129_v27 = vpack.c.bf16 %v3478_v48, %v3477_v35 }
 0x246   : > { %6106 = vmatpush1.bf16.msra.mxu1 %v6105_v61  ;;  %v8265_v26 = vpop.f32.mrb[20].mxu1  ;;  %v8334_v61 = vld [vmem:[%s9444_s2] ss:$0 sm:$0xff] }
 0x247   : > { %2213 = vmatmul.mubr.f32.gmra.mrb[60].mxu0 %v5280_v8  ;;  %6107 = vmatprep.subr.bf16.mxu1 %v9482_v44  ;;  %v8267_v29 = vpop.f32.mrb[21].mxu1  ;;  %v3479_v8 = vld [vmem:[%s9445_s3 + $0x1d0] sm:$0xff] }
 0x248   : > { %2217 = vmatprep.mubr.f32.mxu0 %v5313_v41  ;;  %v3480_v41 = vld [vmem:[%s9445_s3 + $0x1d8] sm:$0xff] }
 0x24a   : > { %6109 = vmatpush1.bf16.msra.mxu1 %v6108_v13  ;;  %v8276_v56 = vpop.f32.mrb[22].mxu1 }
 0x24b   : > { %2218 = vmatmul.mubr.f32.gmra.mrb[62].mxu0 %v5281_v45  ;;  %6110 = vmatprep.subr.bf16.mxu1 %v9482_v44  ;;  %v8278_v60 = vpop.f32.mrb[23].mxu1  ;;  %v6132_v45 = vpack.c.bf16 %v3480_v41, %v3479_v8 }
 0x24e   : > { %6112 = vmatpush1.bf16.msra.mxu1 %v6111_v10  ;;  %v8287_v5 = vpop.f32.mrb[24].mxu1  ;;  %v6138_v10 = vpack.c.bf16 %v3484_v1, %v3483_v49 }
 0x24f   : > { %6113 = vmatprep.subr.bf16.mxu1 %v9482_v44  ;;  %v8289_v62 = vpop.f32.mrb[25].mxu1 }
 0x252   : > { %6115 = vmatpush1.bf16.msra.mxu1 %v6114_v38  ;;  %v8298_v17 = vpop.f32.mrb[26].mxu1 }
 0x253   : > { %6116 = vmatprep.subr.bf16.mxu1 %v9482_v44  ;;  %v8300_v30 = vpop.f32.mrb[27].mxu1 }
 0x256   : > { %6118 = vmatpush1.bf16.msra.mxu1 %v6117_v23  ;;  %v8309_v31 = vpop.f32.mrb[28].mxu1 }
 0x257   : > { %6119 = vmatprep.subr.bf16.mxu1 %v9482_v44  ;;  %v8311_v3 = vpop.f32.mrb[29].mxu1 }
 0x25a   : > { %6121 = vmatpush1.bf16.msra.mxu1 %v6120_v43 }
 0x25b   : > { %6122 = vmatprep.subr.bf16.mxu1 %v9482_v44 }
 0x25e   : > { %6124 = vmatpush1.bf16.msra.mxu1 %v6123_v6 }
 0x25f   : > { %6125 = vmatprep.subr.bf16.mxu1 %v9482_v44 }
 0x262   : > { %6127 = vmatpush1.bf16.msra.mxu1 %v6126_v53 }
 0x263   : > { %6128 = vmatprep.subr.bf16.mxu1 %v9482_v44 }
 0x266   : > { %6130 = vmatpush1.bf16.msra.mxu1 %v6129_v27 }
 0x267   : > { %6131 = vmatprep.subr.bf16.mxu1 %v9482_v44 }
 0x26a   : > { %6133 = vmatpush1.bf16.msra.mxu1 %v6132_v45 }
 0x26b   : > { %6134 = vmatprep.subr.bf16.mxu1 %v9482_v44 }
 0x26e   : > { %6136 = vmatpush1.bf16.msra.mxu1 %v6135_v59 }
 0x26f   : > { %6137 = vmatprep.subr.bf16.mxu1 %v9482_v44 }
 0x272   : > { %6139 = vmatpush1.bf16.msra.mxu1 %v6138_v10 }
 0x273   : > { %6140 = vmatprep.subr.bf16.mxu1 %v9482_v44 }
 0x27b   : > { %v8320_v51 = vpop.f32.mrb[30].mxu1 }
 0x27c   : > { %v8322_v37 = vpop.f32.mrb[31].mxu1 }
 0x2a2   : > { %v2064_v39 = vpop.f32.mrb[0].mxu0 }
 0x2a3   : > { %v6364_v57 = vadd.f32 %v8334_v61, %v2064_v39  ;;  %v2066_v13 = vpop.f32.mrb[1].mxu0 }
 0x2a5   : > { %v2290_v28 = vadd.f32 %v6364_v57, %v8109_v9 }
 0x2a6   : > { %v2069_v34 = vpop.f32.mrb[2].mxu0 }
 0x2a7   : > { %v2448_v38 = vmax.f32 %v2290_v28, 0.0  ;;  %v6365_v54 = vadd.f32 %v8334_v61, %v2069_v34  ;;  %v2071_v19 = vpop.f32.mrb[3].mxu0 }
 0x2a9   : > { %2524 = vst [vmem:[#allocation2 + $0x19] sm:$0xff] %v2448_v38  ;;  %v2295_v23 = vadd.f32 %v6365_v54, %v8106_v47  ;;  %3646 = vmatprep.mubr.f32.mxu1 %v2448_v38 }
 0x2aa   : > { %v2074_v33 = vpop.f32.mrb[4].mxu0 }
 0x2ab   : > { %v2449_v36 = vmax.f32 %v2295_v23, 0.0  ;;  %v6366_v43 = vadd.f32 %v8334_v61, %v2074_v33  ;;  %v2076_v2 = vpop.f32.mrb[5].mxu0 }
 0x2ad   : > { %2525 = vst [vmem:[#allocation2 + $0x21] sm:$0xff] %v2449_v36  ;;  %v2300_v9 = vadd.f32 %v6366_v43, %v8130_v24 }
 0x2ae   : > { %v2079_v46 = vpop.f32.mrb[6].mxu0 }
 0x2af   : > { %v2450_v6 = vmax.f32 %v2300_v9, 0.0  ;;  %v6367_v12 = vadd.f32 %v8334_v61, %v2079_v46  ;;  %v2081_v25 = vpop.f32.mrb[7].mxu0 }
 0x2b0   : > { %v8351_v53 = vld [vmem:[#allocation2 + $0x18] sm:$0xff] }
 0x2b1   : > { %2526 = vst [vmem:[#allocation2 + $0x31] sm:$0xff] %v2450_v6  ;;  %v2305_v35 = vadd.f32 %v6367_v12, %v8128_v21  ;;  %3647 = vmatmul.mubr.f32.gmra.mrb[36].mxu1 %v8351_v53 }
 0x2b2   : > { %v2084_v47 = vpop.f32.mrb[8].mxu0  ;;  %3651 = vmatprep.mubr.f32.mxu1 %v2449_v36 }
 0x2b3   : > { %v2451_v48 = vmax.f32 %v2305_v35, 0.0  ;;  %v6368_v27 = vadd.f32 %v8334_v61, %v2084_v47  ;;  %v2086_v8 = vpop.f32.mrb[9].mxu0 }
 0x2b4   : > { %v8356_v41 = vld [vmem:[#allocation2 + $0x20] sm:$0xff] }
 0x2b5   : > { %2527 = vst [vmem:[#allocation2 + $0x39] sm:$0xff] %v2451_v48  ;;  %v2310_v24 = vadd.f32 %v6368_v27, %v8156_v20  ;;  %3652 = vmatmul.mubr.f32.gmra.mrb[38].mxu1 %v8356_v41 }
 0x2b6   : > { %v2089_v45 = vpop.f32.mrb[10].mxu0  ;;  %3656 = vmatprep.mubr.f32.mxu1 %v2450_v6 }
 0x2b7   : > { %v2452_v50 = vmax.f32 %v2310_v24, 0.0  ;;  %v6369_v21 = vadd.f32 %v8334_v61, %v2089_v45  ;;  %v2091_v55 = vpop.f32.mrb[11].mxu0 }
 0x2b8   : > { %v8361_v59 = vld [vmem:[#allocation2 + $0x30] sm:$0xff] }
 0x2b9   : > { %2528 = vst [vmem:[#allocation2 + $0x49] sm:$0xff] %v2452_v50  ;;  %v2315_v39 = vadd.f32 %v6369_v21, %v8154_v15  ;;  %3657 = vmatmul.mubr.f32.gmra.mrb[40].mxu1 %v8361_v59 }
 0x2ba   : > { %v2094_v57 = vpop.f32.mrb[12].mxu0  ;;  %3661 = vmatprep.mubr.f32.mxu1 %v2451_v48 }
 0x2bb   : > { %v2453_v13 = vmax.f32 %v2315_v39, 0.0  ;;  %v6370_v20 = vadd.f32 %v8334_v61, %v2094_v57  ;;  %v2096_v49 = vpop.f32.mrb[13].mxu0 }
 0x2bc   : > { %v8366_v1 = vld [vmem:[#allocation2 + $0x32] sm:$0xff]  ;;  %v8370_v28 = vld [vmem:[#allocation2 + $0x3a] sm:$0xff] }
 0x2bd   : > { %v8368_v10 = vld [vmem:[#allocation2 + $0x38] sm:$0xff]  ;;  %2529 = vst [vmem:[#allocation2 + $0x51] sm:$0xff] %v2453_v13  ;;  %v2320_v34 = vadd.f32 %v6370_v20, %v8182_v22  ;;  %5728 = vmatprep.mubr.f32.mxu0 %v8366_v1 }
 0x2be   : > { %3662 = vmatmul.mubr.f32.gmra.mrb[42].mxu1 %v8368_v10  ;;  %v2099_v15 = vpop.f32.mrb[14].mxu0  ;;  %5729 = vmatmul.mubr.f32.vlgmr.msra.gmra.mrb[64].mxu0 %v8370_v28 }
 0x2bf   : > { %3666 = vmatprep.mubr.f32.mxu1 %v2452_v50  ;;  %v2454_v38 = vmax.f32 %v2320_v34, 0.0  ;;  %v6371_v54 = vadd.f32 %v8334_v61, %v2099_v15  ;;  %v2101_v19 = vpop.f32.mrb[15].mxu0 }
 0x2c0   : > { %v8377_v23 = vld [vmem:[#allocation2 + $0x48] sm:$0xff] }
 0x2c1   : > { %2530 = vst [vmem:[#allocation2 + $0x61] sm:$0xff] %v2454_v38  ;;  %v2325_v33 = vadd.f32 %v6371_v54, %v8180_v58 }
 0x2c2   : > { %3667 = vmatmul.mubr.f32.gmra.mrb[44].mxu1 %v8377_v23  ;;  %v2104_v22 = vpop.f32.mrb[16].mxu0 }
 0x2c3   : > { %3671 = vmatprep.mubr.f32.mxu1 %v2453_v13  ;;  %v2455_v36 = vmax.f32 %v2325_v33, 0.0  ;;  %v6372_v43 = vadd.f32 %v8334_v61, %v2104_v22  ;;  %v2106_v2 = vpop.f32.mrb[17].mxu0 }
 0x2c4   : > { %v8382_v9 = vld [vmem:[#allocation2 + $0x4a] sm:$0xff]  ;;  %v8386_v6 = vld [vmem:[#allocation2 + $0x52] sm:$0xff] }
 0x2c5   : > { %v8384_v46 = vld [vmem:[#allocation2 + $0x50] sm:$0xff]  ;;  %2531 = vst [vmem:[#allocation2 + $0x69] sm:$0xff] %v2455_v36  ;;  %v2330_v12 = vadd.f32 %v6372_v43, %v8198_v32  ;;  %5731 = vmatprep.mubr.f32.mxu0 %v8382_v9 }
 0x2c6   : > { %3672 = vmatmul.mubr.f32.gmra.mrb[46].mxu1 %v8384_v46  ;;  %v2109_v58 = vpop.f32.mrb[18].mxu0  ;;  %5732 = vmatmul.mubr.f32.gmra.mrb[66].mxu0 %v8386_v6 }
 0x2c7   : > { %3676 = vmatprep.mubr.f32.mxu1 %v2454_v38  ;;  %v2456_v25 = vmax.f32 %v2330_v12, 0.0  ;;  %v6373_v35 = vadd.f32 %v8334_v61, %v2109_v58  ;;  %v2111_v47 = vpop.f32.mrb[19].mxu0 }
 0x2c8   : > { %v8393_v48 = vld [vmem:[#allocation2 + $0x60] sm:$0xff] }
 0x2c9   : > { %2532 = vst [vmem:[#allocation2 + $0x79] sm:$0xff] %v2456_v25  ;;  %v2335_v27 = vadd.f32 %v6373_v35, %v8195_v40 }
 0x2ca   : > { %3677 = vmatmul.mubr.f32.gmra.mrb[48].mxu1 %v8393_v48  ;;  %v2114_v32 = vpop.f32.mrb[20].mxu0 }
 0x2cb   : > { %3681 = vmatprep.mubr.f32.mxu1 %v2455_v36  ;;  %v2457_v8 = vmax.f32 %v2335_v27, 0.0  ;;  %v6374_v24 = vadd.f32 %v8334_v61, %v2114_v32  ;;  %v2116_v45 = vpop.f32.mrb[21].mxu0 }
 0x2cc   : > { %v8398_v50 = vld [vmem:[#allocation2 + $0x62] sm:$0xff]  ;;  %v8402_v55 = vld [vmem:[#allocation2 + $0x6a] sm:$0xff] }
 0x2cd   : > { %v8400_v21 = vld [vmem:[#allocation2 + $0x68] sm:$0xff]  ;;  %2533 = vst [vmem:[#allocation2 + $0x81] sm:$0xff] %v2457_v8  ;;  %v2340_v39 = vadd.f32 %v6374_v24, %v8212_v42  ;;  %5734 = vmatprep.mubr.f32.mxu0 %v8398_v50 }
 0x2ce   : > { %3682 = vmatmul.mubr.f32.gmra.mrb[50].mxu1 %v8400_v21  ;;  %v2119_v40 = vpop.f32.mrb[22].mxu0  ;;  %5735 = vmatmul.mubr.f32.gmra.mrb[68].mxu0 %v8402_v55 }
 0x2cf   : > { %3686 = vmatprep.mubr.f32.mxu1 %v2456_v25  ;;  %v2458_v57 = vmax.f32 %v2340_v39, 0.0  ;;  %v6375_v13 = vadd.f32 %v8334_v61, %v2119_v40  ;;  %v2121_v20 = vpop.f32.mrb[23].mxu0 }
 0x2d0   : > { %v8409_v49 = vld [vmem:[#allocation2 + $0x78] sm:$0xff] }
 0x2d1   : > { %2534 = vst [vmem:[#allocation2 + $0x91] sm:$0xff] %v2458_v57  ;;  %v2345_v34 = vadd.f32 %v6375_v13, %v8210_v63 }
 0x2d2   : > { %3687 = vmatmul.mubr.f32.gmra.mrb[52].mxu1 %v8409_v49  ;;  %v2124_v42 = vpop.f32.mrb[24].mxu0 }
 0x2d3   : > { %3691 = vmatprep.mubr.f32.mxu1 %v2457_v8  ;;  %v2459_v15 = vmax.f32 %v2345_v34, 0.0  ;;  %v6376_v38 = vadd.f32 %v8334_v61, %v2124_v42  ;;  %v2126_v54 = vpop.f32.mrb[25].mxu0 }
 0x2d4   : > { %v8414_v19 = vld [vmem:[#allocation2 + $0x7a] sm:$0xff]  ;;  %v8418_v22 = vld [vmem:[#allocation2 + $0x82] sm:$0xff] }
 0x2d5   : > { %v8416_v33 = vld [vmem:[#allocation2 + $0x80] sm:$0xff]  ;;  %2535 = vst [vmem:[#allocation2 + $0x99] sm:$0xff] %v2459_v15  ;;  %v2350_v36 = vadd.f32 %v6376_v38, %v8223_v7  ;;  %5737 = vmatprep.mubr.f32.mxu0 %v8414_v19 }
 0x2d6   : > { %3692 = vmatmul.mubr.f32.gmra.mrb[54].mxu1 %v8416_v33  ;;  %v2129_v63 = vpop.f32.mrb[26].mxu0  ;;  %5738 = vmatmul.mubr.f32.gmra.mrb[70].mxu0 %v8418_v22 }
 0x2d7   : > { %3696 = vmatprep.mubr.f32.mxu1 %v2458_v57  ;;  %v2460_v43 = vmax.f32 %v2350_v36, 0.0  ;;  %v6377_v2 = vadd.f32 %v8334_v61, %v2129_v63  ;;  %v2131_v12 = vpop.f32.mrb[27].mxu0 }
 0x2d8   : > { %v8425_v58 = vld [vmem:[#allocation2 + $0x90] sm:$0xff] }
 0x2d9   : > { %2536 = vst [vmem:[#allocation2 + $0xa9] sm:$0xff] %v2460_v43  ;;  %v2355_v25 = vadd.f32 %v6377_v2, %v8221_v52 }
 0x2da   : > { %3697 = vmatmul.mubr.f32.gmra.mrb[56].mxu1 %v8425_v58  ;;  %v2134_v7 = vpop.f32.mrb[28].mxu0 }
 0x2db   : > { %3701 = vmatprep.mubr.f32.mxu1 %v2459_v15  ;;  %v2461_v35 = vmax.f32 %v2355_v25, 0.0  ;;  %v6378_v47 = vadd.f32 %v8334_v61, %v2134_v7  ;;  %v2136_v27 = vpop.f32.mrb[29].mxu0 }
 0x2dc   : > { %v8430_v32 = vld [vmem:[#allocation2 + $0x92] sm:$0xff]  ;;  %v8434_v24 = vld [vmem:[#allocation2 + $0x9a] sm:$0xff] }
 0x2dd   : > { %v8432_v8 = vld [vmem:[#allocation2 + $0x98] sm:$0xff]  ;;  %2537 = vst [vmem:[#allocation2 + $0xb1] sm:$0xff] %v2461_v35  ;;  %v2360_v45 = vadd.f32 %v6378_v47, %v8234_v11  ;;  %5740 = vmatprep.mubr.f32.mxu0 %v8430_v32 }
 0x2de   : > { %3702 = vmatmul.mubr.f32.gmra.mrb[58].mxu1 %v8432_v8  ;;  %v2139_v52 = vpop.f32.mrb[30].mxu0  ;;  %5741 = vmatmul.mubr.f32.gmra.mrb[72].mxu0 %v8434_v24 }
 0x2df   : > { %3706 = vmatprep.mubr.f32.mxu1 %v2460_v43  ;;  %v2462_v39 = vmax.f32 %v2360_v45, 0.0  ;;  %v6379_v40 = vadd.f32 %v8334_v61, %v2139_v52  ;;  %v2141_v57 = vpop.f32.mrb[31].mxu0 }
 0x2e0   : > { %v8441_v13 = vld [vmem:[#allocation2 + $0xa8] sm:$0xff] }
 0x2e1   : > { %2538 = vst [vmem:[#allocation2 + $0xc1] sm:$0xff] %v2462_v39  ;;  %v2365_v20 = vadd.f32 %v6379_v40, %v8232_v0 }
 0x2e2   : > { %3707 = vmatmul.mubr.f32.gmra.mrb[60].mxu1 %v8441_v13  ;;  %v2144_v11 = vpop.f32.mrb[32].mxu0 }
 0x2e3   : > { %3711 = vmatprep.mubr.f32.mxu1 %v2461_v35  ;;  %v2463_v34 = vmax.f32 %v2365_v20, 0.0  ;;  %v6380_v42 = vadd.f32 %v8334_v61, %v2144_v11  ;;  %v2146_v15 = vpop.f32.mrb[33].mxu0 }
 0x2e4   : > { %v8446_v38 = vld [vmem:[#allocation2 + $0xaa] sm:$0xff]  ;;  %v8450_v36 = vld [vmem:[#allocation2 + $0xb2] sm:$0xff] }
 0x2e5   : > { %v8448_v54 = vld [vmem:[#allocation2 + $0xb0] sm:$0xff]  ;;  %2539 = vst [vmem:[#allocation2 + $0xc9] sm:$0xff] %v2463_v34  ;;  %v2370_v63 = vadd.f32 %v6380_v42, %v8245_v18  ;;  %5743 = vmatprep.mubr.f32.mxu0 %v8446_v38 }
 0x2e6   : > { %3712 = vmatmul.mubr.f32.gmra.mrb[62].mxu1 %v8448_v54  ;;  %v2149_v0 = vpop.f32.mrb[34].mxu0  ;;  %5744 = vmatmul.mubr.f32.gmra.mrb[74].mxu0 %v8450_v36 }
 0x2e7   : > { %3716 = vmatprep.mubr.f32.mxu1 %v2462_v39  ;;  %v2464_v43 = vmax.f32 %v2370_v63, 0.0  ;;  %v6381_v2 = vadd.f32 %v8334_v61, %v2149_v0  ;;  %v2151_v12 = vpop.f32.mrb[35].mxu0 }
 0x2e8   : > { %v8457_v25 = vld [vmem:[#allocation2 + $0xc0] sm:$0xff] }
 0x2e9   : > { %2540 = vst [vmem:[#allocation2 + $0xd9] sm:$0xff] %v2464_v43  ;;  %v2375_v7 = vadd.f32 %v6381_v2, %v8243_v14 }
 0x2ea   : > { %3717 = vmatmul.mubr.f32.gmra.mrb[64].mxu1 %v8457_v25  ;;  %v2154_v18 = vpop.f32.mrb[36].mxu0 }
 0x2eb   : > { %3721 = vmatprep.mubr.f32.mxu1 %v2463_v34  ;;  %v2465_v35 = vmax.f32 %v2375_v7, 0.0  ;;  %v6382_v47 = vadd.f32 %v8334_v61, %v2154_v18  ;;  %v2156_v27 = vpop.f32.mrb[37].mxu0 }
 0x2ec   : > { %v8462_v45 = vld [vmem:[#allocation2 + $0xc2] sm:$0xff]  ;;  %v8466_v39 = vld [vmem:[#allocation2 + $0xca] sm:$0xff] }
 0x2ed   : > { %v8464_v52 = vld [vmem:[#allocation2 + $0xc8] sm:$0xff]  ;;  %2541 = vst [vmem:[#allocation2 + $0xe1] sm:$0xff] %v2465_v35  ;;  %v2380_v40 = vadd.f32 %v6382_v47, %v8256_v16  ;;  %5746 = vmatprep.mubr.f32.mxu0 %v8462_v45 }
 0x2ee   : > { %3722 = vmatmul.mubr.f32.gmra.mrb[66].mxu1 %v8464_v52  ;;  %v2159_v14 = vpop.f32.mrb[38].mxu0  ;;  %5747 = vmatmul.mubr.f32.gmra.mrb[76].mxu0 %v8466_v39 }
 0x2ef   : > { %3726 = vmatprep.mubr.f32.mxu1 %v2464_v43  ;;  %v2466_v57 = vmax.f32 %v2380_v40, 0.0  ;;  %v6383_v20 = vadd.f32 %v8334_v61, %v2159_v14  ;;  %v2161_v11 = vpop.f32.mrb[39].mxu0 }
 0x2f0   : > { %v8473_v34 = vld [vmem:[#allocation2 + $0xd8] sm:$0xff] }
 0x2f1   : > { %2542 = vst [vmem:[#allocation2 + $0xf1] sm:$0xff] %v2466_v57  ;;  %v2385_v42 = vadd.f32 %v6383_v20, %v8254_v4 }
 0x2f2   : > { %3727 = vmatmul.mubr.f32.gmra.mrb[68].mxu1 %v8473_v34  ;;  %v2164_v16 = vpop.f32.mrb[40].mxu0 }
 0x2f3   : > { %3731 = vmatprep.mubr.f32.mxu1 %v2465_v35  ;;  %v2467_v15 = vmax.f32 %v2385_v42, 0.0  ;;  %v6384_v63 = vadd.f32 %v8334_v61, %v2164_v16  ;;  %v2166_v0 = vpop.f32.mrb[41].mxu0 }
 0x2f4   : > { %v8478_v2 = vld [vmem:[#allocation2 + $0xda] sm:$0xff]  ;;  %v8482_v12 = vld [vmem:[#allocation2 + $0xe2] sm:$0xff] }
 0x2f5   : > { %v8480_v43 = vld [vmem:[#allocation2 + $0xe0] sm:$0xff]  ;;  %2543 = vst [vmem:[#allocation2 + $0xf9] sm:$0xff] %v2467_v15  ;;  %v2390_v7 = vadd.f32 %v6384_v63, %v8267_v29  ;;  %5749 = vmatprep.mubr.f32.mxu0 %v8478_v2 }
 0x2f6   : > { %3732 = vmatmul.mubr.f32.gmra.mrb[70].mxu1 %v8480_v43  ;;  %v2169_v4 = vpop.f32.mrb[42].mxu0  ;;  %5750 = vmatmul.mubr.f32.gmra.mrb[78].mxu0 %v8482_v12 }
 0x2f7   : > { %3736 = vmatprep.mubr.f32.mxu1 %v2466_v57  ;;  %v2468_v18 = vmax.f32 %v2390_v7, 0.0  ;;  %v6385_v35 = vadd.f32 %v8334_v61, %v2169_v4  ;;  %v2171_v47 = vpop.f32.mrb[43].mxu0 }
 0x2f8   : > { %v8489_v27 = vld [vmem:[#allocation2 + $0xf0] sm:$0xff] }
 0x2f9   : > { %2544 = vst [vmem:[#allocation2 + $0x109] sm:$0xff] %v2468_v18  ;;  %v2395_v40 = vadd.f32 %v6385_v35, %v8265_v26 }
 0x2fa   : > { %3737 = vmatmul.mubr.f32.gmra.mrb[72].mxu1 %v8489_v27  ;;  %v2174_v29 = vpop.f32.mrb[44].mxu0 }
 0x2fb   : > { %3741 = vmatprep.mubr.f32.mxu1 %v2467_v15  ;;  %v2469_v14 = vmax.f32 %v2395_v40, 0.0  ;;  %v6386_v20 = vadd.f32 %v8334_v61, %v2174_v29  ;;  %v2176_v11 = vpop.f32.mrb[45].mxu0 }
 0x2fc   : > { %v8494_v42 = vld [vmem:[#allocation2 + $0xf2] sm:$0xff]  ;;  %v8498_v16 = vld [vmem:[#allocation2 + $0xfa] sm:$0xff] }
 0x2fd   : > { %v8496_v57 = vld [vmem:[#allocation2 + $0xf8] sm:$0xff]  ;;  %2545 = vst [vmem:[#allocation2 + $0x111] sm:$0xff] %v2469_v14  ;;  %v2400_v63 = vadd.f32 %v6386_v20, %v8278_v60  ;;  %5752 = vmatprep.mubr.f32.mxu0 %v8494_v42 }
 0x2fe   : > { %3742 = vmatmul.mubr.f32.gmra.mrb[74].mxu1 %v8496_v57  ;;  %v2179_v26 = vpop.f32.mrb[46].mxu0  ;;  %5753 = vmatmul.mubr.f32.gmra.mrb[80].mxu0 %v8498_v16 }
 0x2ff   : > { %3746 = vmatprep.mubr.f32.mxu1 %v2468_v18  ;;  %v2470_v15 = vmax.f32 %v2400_v63, 0.0  ;;  %v6387_v0 = vadd.f32 %v8334_v61, %v2179_v26  ;;  %v2181_v7 = vpop.f32.mrb[47].mxu0 }
 0x300   : > { %v8505_v4 = vld [vmem:[#allocation2 + $0x108] sm:$0xff] }
 0x301   : > { %2546 = vst [vmem:[#allocation2 + $0x121] sm:$0xff] %v2470_v15  ;;  %v2405_v35 = vadd.f32 %v6387_v0, %v8276_v56 }
 0x302   : > { %3747 = vmatmul.mubr.f32.gmra.mrb[76].mxu1 %v8505_v4  ;;  %v2184_v60 = vpop.f32.mrb[48].mxu0 }
 0x303   : > { %3751 = vmatprep.mubr.f32.mxu1 %v2469_v14  ;;  %v2471_v47 = vmax.f32 %v2405_v35, 0.0  ;;  %v6388_v40 = vadd.f32 %v8334_v61, %v2184_v60  ;;  %v2186_v29 = vpop.f32.mrb[49].mxu0 }
 0x304   : > { %v8510_v20 = vld [vmem:[#allocation2 + $0x10a] sm:$0xff]  ;;  %v8514_v11 = vld [vmem:[#allocation2 + $0x112] sm:$0xff] }
 0x305   : > { %9491 = vst [vmem:[#allocation4_spill] sm:$0xff] %v8510_v20  ;;  %v8512_v18 = vld [vmem:[#allocation2 + $0x110] sm:$0xff]  ;;  %2547 = vst [vmem:[#allocation2 + $0x129] sm:$0xff] %v2471_v47  ;;  %v2410_v63 = vadd.f32 %v6388_v40, %v8289_v62  ;;  %5755 = vmatprep.mubr.f32.mxu0 %v8510_v20 }
 0x306   : > { %3752 = vmatmul.mubr.f32.gmra.mrb[78].mxu1 %v8512_v18  ;;  %v2189_v56 = vpop.f32.mrb[50].mxu0  ;;  %5756 = vmatmul.mubr.f32.gmra.mrb[82].mxu0 %v8514_v11 }
 0x307   : > { %3756 = vmatprep.mubr.f32.mxu1 %v2470_v15  ;;  %v2472_v14 = vmax.f32 %v2410_v63, 0.0  ;;  %v6389_v26 = vadd.f32 %v8334_v61, %v2189_v56  ;;  %v2191_v0 = vpop.f32.mrb[51].mxu0 }
 0x308   : > { %v8521_v7 = vld [vmem:[#allocation2 + $0x120] sm:$0xff] }
 0x309   : > { %2548 = vst [vmem:[#allocation2 + $0x139] sm:$0xff] %v2472_v14  ;;  %v2415_v35 = vadd.f32 %v6389_v26, %v8287_v5 }
 0x30a   : > { %3757 = vmatmul.mubr.f32.gmra.mrb[80].mxu1 %v8521_v7  ;;  %v2194_v62 = vpop.f32.mrb[52].mxu0 }
 0x30b   : > { %3761 = vmatprep.mubr.f32.mxu1 %v2471_v47  ;;  %v2473_v60 = vmax.f32 %v2415_v35, 0.0  ;;  %v6390_v40 = vadd.f32 %v8334_v61, %v2194_v62  ;;  %v2196_v29 = vpop.f32.mrb[53].mxu0 }
 0x30c   : > { %v8526_v20 = vld [vmem:[#allocation2 + $0x122] sm:$0xff]  ;;  %v8530_v63 = vld [vmem:[#allocation2 + $0x12a] sm:$0xff] }
 0x30d   : > { %v8528_v15 = vld [vmem:[#allocation2 + $0x128] sm:$0xff]  ;;  %9492 = vst [vmem:[#allocation5_spill] sm:$0xff] %v8530_v63  ;;  %2549 = vst [vmem:[#allocation2 + $0x141] sm:$0xff] %v2473_v60  ;;  %v2420_v56 = vadd.f32 %v6390_v40, %v8300_v30  ;;  %5758 = vmatprep.mubr.f32.mxu0 %v8526_v20 }
 0x30e   : > { %3762 = vmatmul.mubr.f32.gmra.mrb[82].mxu1 %v8528_v15  ;;  %v2199_v5 = vpop.f32.mrb[54].mxu0  ;;  %5759 = vmatmul.mubr.f32.gmra.mrb[84].mxu0 %v8530_v63 }
 0x30f   : > { %3766 = vmatprep.mubr.f32.mxu1 %v2472_v14  ;;  %v8536_v47 = vmax.f32 %v2420_v56, 0.0  ;;  %v6391_v26 = vadd.f32 %v8334_v61, %v2199_v5  ;;  %v2201_v0 = vpop.f32.mrb[55].mxu0 }
 0x310   : > { %v8539_v35 = vld [vmem:[#allocation2 + $0x138] sm:$0xff] }
 0x311   : > { %9493 = vst [vmem:[#allocation6_spill] sm:$0xff] %v8536_v47  ;;  %2550 = vst [vmem:[#allocation2 + $0x151] sm:$0xff] %v8536_v47  ;;  %v2425_v62 = vadd.f32 %v6391_v26, %v8298_v17 }
 0x312   : > { %3767 = vmatmul.mubr.f32.gmra.mrb[84].mxu1 %v8539_v35  ;;  %v2204_v30 = vpop.f32.mrb[56].mxu0 }
 0x313   : > { %3771 = vmatprep.mubr.f32.mxu1 %v2473_v60  ;;  %v8544_v40 = vmax.f32 %v2425_v62, 0.0  ;;  %v6392_v29 = vadd.f32 %v8334_v61, %v2204_v30  ;;  %v2206_v14 = vpop.f32.mrb[57].mxu0 }
 0x314   : > { %v8547_v56 = vld [vmem:[#allocation2 + $0x13a] sm:$0xff]  ;;  %v8551_v5 = vld [vmem:[#allocation2 + $0x142] sm:$0xff] }
 0x315   : > { %9494 = vst [vmem:[#allocation7_spill] sm:$0xff] %v8544_v40  ;;  %v8549_v63 = vld [vmem:[#allocation2 + $0x140] sm:$0xff]  ;;  %9495 = vst [vmem:[#allocation8_spill] sm:$0xff] %v8551_v5  ;;  %v2430_v0 = vadd.f32 %v6392_v29, %v8311_v3  ;;  %5761 = vmatprep.mubr.f32.mxu0 %v8547_v56 }
 0x316   : > { %2551 = vst [vmem:[#allocation2 + $0x159] sm:$0xff] %v8544_v40  ;;  %3772 = vmatmul.mubr.f32.gmra.mrb[86].mxu1 %v8549_v63  ;;  %v2209_v17 = vpop.f32.mrb[58].mxu0  ;;  %5762 = vmatmul.mubr.f32.gmra.mrb[86].mxu0 %v8551_v5 }
 0x317   : > { %3776 = vmatprep.mubr.f32.mxu1 %v8536_v47  ;;  %v8559_v60 = vmax.f32 %v2430_v0, 0.0  ;;  %v6393_v26 = vadd.f32 %v8334_v61, %v2209_v17  ;;  %v2211_v62 = vpop.f32.mrb[59].mxu0 }
 0x318   : > { %v8562_v30 = vld [vmem:[#allocation2 + $0x150] sm:$0xff] }
 0x319   : > { %9496 = vst [vmem:[#allocation9_spill] sm:$0xff] %v8559_v60  ;;  %2552 = vst [vmem:[#allocation2 + $0x169] sm:$0xff] %v8559_v60  ;;  %v2435_v3 = vadd.f32 %v6393_v26, %v8309_v31 }
 0x31a   : > { %3777 = vmatmul.mubr.f32.gmra.mrb[88].mxu1 %v8562_v30  ;;  %v2214_v29 = vpop.f32.mrb[60].mxu0 }
 0x31b   : > { %3781 = vmatprep.mubr.f32.mxu1 %v8544_v40  ;;  %v8568_v14 = vmax.f32 %v2435_v3, 0.0  ;;  %v6394_v47 = vadd.f32 %v8334_v61, %v2214_v29  ;;  %v2216_v0 = vpop.f32.mrb[61].mxu0 }
 0x31d   : > { %9497 = vst [vmem:[#allocation10_spill] sm:$0xff] %v8568_v14  ;;  %v8571_v5 = vld [vmem:[#allocation2 + $0x152] sm:$0xff]  ;;  %v8575_v62 = vld [vmem:[#allocation2 + $0x15a] sm:$0xff]  ;;  %2553 = vst [vmem:[#allocation2 + $0x171] sm:$0xff] %v8568_v14  ;;  %v8579_v31 = vadd.f32 %v6394_v47, %v8322_v37 }
 0x31e   : > { %v8573_v17 = vld [vmem:[#allocation2 + $0x158] sm:$0xff]  ;;  %5764 = vmatprep.mubr.f32.mxu0 %v8571_v5  ;;  %v2219_v26 = vpop.f32.mrb[62].mxu0 }
 0x31f   : > { %9498 = vst [vmem:[#allocation11_spill] sm:$0xff] %v8579_v31  ;;  %3782 = vmatmul.mubr.f32.gmra.mrb[90].mxu1 %v8573_v17  ;;  %5765 = vmatmul.mubr.f32.gmra.mrb[88].mxu0 %v8575_v62  ;;  %v9469_v3 = vmax.f32 %v8579_v31, 0.0  ;;  %v6395_v29 = vadd.f32 %v8334_v61, %v2219_v26  ;;  %v2221_v0 = vpop.f32.mrb[63].mxu0  ;;  %v3486_v61 = vld [vmem:[%s9445_s3 + $0x208] sm:$0xff]  ;;  %v3487_v31 = vld [vmem:[%s9445_s3 + $0x210] sm:$0xff] }
 0x320   : > { %3786 = vmatprep.mubr.f32.mxu1 %v8559_v60  ;;  %v8587_v40 = vld [vmem:[#allocation2 + $0x168] sm:$0xff]  ;;  %v3485_v60 = vld [vmem:[%s9445_s3 + $0x200] sm:$0xff] }
 0x321   : > { %2554 = vst [vmem:[#allocation2 + $0x181] sm:$0xff] %v9469_v3  ;;  %v8592_v37 = vadd.f32 %v6395_v29, %v8320_v51  ;;  %v2684_v29 = vld [vmem:[#allocation2 + $0x2] sm:$0xff]  ;;  %v6141_v3 = vpack.c.bf16 %v3486_v61, %v3485_v60 }
 0x323   : > { %9499 = vst [vmem:[#allocation12_spill] sm:$0xff] %v8592_v37  ;;  %3787 = vmatmul.mubr.f32.gmra.mrb[92].mxu1 %v8587_v40  ;;  %v9472_v47 = vmax.f32 %v8592_v37, 0.0 }
 0x324   : > { %3791 = vmatprep.mubr.f32.mxu1 %v8568_v14  ;;  %v8603_v26 = vld [vmem:[#allocation2 + $0x16a] sm:$0xff]  ;;  %v8607_v51 = vld [vmem:[#allocation2 + $0x172] sm:$0xff] }
 0x325   : > { %v8605_v0 = vld [vmem:[#allocation2 + $0x170] sm:$0xff]  ;;  %9500 = vst [vmem:[#allocation13_spill] sm:$0xff] %v8607_v51  ;;  %2555 = vst [vmem:[#allocation2 + $0x189] sm:$0xff] %v9472_v47  ;;  %5767 = vmatprep.mubr.f32.mxu0 %v8603_v26  ;;  %v3488_v14 = vld [vmem:[%s9445_s3 + $0x218] sm:$0xff] }
 0x326   : > { %5768 = vmatmul.mubr.f32.gmra.mrb[90].mxu0 %v8607_v51  ;;  %v2685_v47 = vld [vmem:[#allocation2 + $0xa] sm:$0xff]  ;;  %v6144_v37 = vpack.c.bf16 %v3488_v14, %v3487_v31  ;;  %v8636_v14 = vld [vmem:[#allocation2 + $0x1a] sm:$0xff] }
 0x327   : > { %3792 = vmatmul.mubr.f32.gmra.mrb[94].mxu1 %v8605_v0  ;;  %v3490_v51 = vld [vmem:[%s9445_s3 + $0x228] sm:$0xff]  ;;  %v3491_v31 = vld [vmem:[%s9445_s3 + $0x230] sm:$0xff] }
 0x328   : > { %3861 = vmatprep.mubr.f32.mxu1 %v8351_v53  ;;  %v3489_v53 = vld [vmem:[%s9445_s3 + $0x220] sm:$0xff] }
 0x32b   : > { %3862 = vmatmul.mubr.f32.vlgmr.msra.gmra.mrb[32].mxu1 %v2684_v29  ;;  %v3495_v29 = vld [vmem:[%s9445_s3 + $0x250] sm:$0xff] }
 0x32c   : > { %3866 = vmatprep.mubr.f32.mxu1 %v8356_v41  ;;  %6142 = vmatpush1.bf16.msra.mxu1 %v6141_v3  ;;  %v8626_v60 = vld [vmem:[#allocation2 + $0x182] sm:$0xff]  ;;  %v8628_v61 = vld [vmem:[#allocation2 + $0x18a] sm:$0xff]  ;;  %v6147_v41 = vpack.c.bf16 %v3490_v51, %v3489_v53  ;;  %v3492_v3 = vld [vmem:[%s9445_s3 + $0x238] sm:$0xff] }
 0x32d   : > { %6143 = vmatprep.subr.bf16.mxu1 %v9482_v44  ;;  %5770 = vmatprep.mubr.f32.mxu0 %v8626_v60  ;;  %v3494_v51 = vld [vmem:[%s9445_s3 + $0x248] sm:$0xff]  ;;  %v3496_v53 = vld [vmem:[%s9445_s3 + $0x258] sm:$0xff] }
 0x32e   : > { %5771 = vmatmul.mubr.f32.gmra.mrb[92].mxu0 %v8628_v61 }
 0x32f   : > { %3867 = vmatmul.mubr.f32.gmra.mrb[34].mxu1 %v2685_v47  ;;  %v3493_v47 = vld [vmem:[%s9445_s3 + $0x240] sm:$0xff] }
 0x330   : > { %3871 = vmatprep.mubr.f32.mxu1 %v8361_v59  ;;  %6145 = vmatpush1.bf16.msra.mxu1 %v6144_v37  ;;  %v6150_v59 = vpack.c.bf16 %v3492_v3, %v3491_v31  ;;  %v8647_v37 = vld [vmem:[#allocation2 + $0x22] sm:$0xff]  ;;  %v3500_v3 = vld [vmem:[%s9445_s3 + $0x278] sm:$0xff] }
 0x331   : > { %6146 = vmatprep.subr.bf16.mxu1 %v9482_v44  ;;  %v3498_v31 = vld [vmem:[%s9445_s3 + $0x268] sm:$0xff] }
 0x333   : > { %3872 = vmatmul.mubr.f32.gmra.mrb[36].mxu1 %v8636_v14 }
 0x334   : > { %3876 = vmatprep.mubr.f32.mxu1 %v8368_v10  ;;  %6148 = vmatpush1.bf16.msra.mxu1 %v6147_v41  ;;  %v6153_v10 = vpack.c.bf16 %v3494_v51, %v3493_v47  ;;  %v6156_v41 = vpack.c.bf16 %v3496_v53, %v3495_v29  ;;  %v3504_v47 = vld [vmem:[%s9445_s3 + $0x298] sm:$0xff]  ;;  %v3506_v51 = vld [vmem:[%s9445_s3 + $0x2a8] sm:$0xff] }
 0x335   : > { %6149 = vmatprep.subr.bf16.mxu1 %v9482_v44  ;;  %v3510_v29 = vld [vmem:[%s9445_s3 + $0x2c8] sm:$0xff]  ;;  %v3512_v53 = vld [vmem:[%s9445_s3 + $0x2d8] sm:$0xff] }
 0x337   : > { %3877 = vmatmul.mubr.f32.gmra.mrb[38].mxu1 %v8647_v37 }
 0x338   : > { %3881 = vmatprep.mubr.f32.mxu1 %v8377_v23  ;;  %6151 = vmatpush1.bf16.msra.mxu1 %v6150_v59  ;;  %v3497_v23 = vld [vmem:[%s9445_s3 + $0x260] sm:$0xff]  ;;  %v3502_v59 = vld [vmem:[%s9445_s3 + $0x288] sm:$0xff] }
 0x339   : > { %6152 = vmatprep.subr.bf16.mxu1 %v9482_v44 }
 0x33b   : > { %3882 = vmatmul.mubr.f32.gmra.mrb[40].mxu1 %v8366_v1  ;;  %v6159_v1 = vpack.c.bf16 %v3498_v31, %v3497_v23  ;;  %v3516_v23 = vld [vmem:[%s9445_s3 + $0x2f8] sm:$0xff]  ;;  %v2813_v31 = vld [vmem:[#allocation2 + $0x21] sm:$0xff] }
 0x33c   : > { %3886 = vmatprep.mubr.f32.mxu1 %v8384_v46  ;;  %6154 = vmatpush1.bf16.msra.mxu1 %v6153_v10  ;;  %v3499_v46 = vld [vmem:[%s9445_s3 + $0x270] sm:$0xff]  ;;  %v3508_v10 = vld [vmem:[%s9445_s3 + $0x2b8] sm:$0xff] }
 0x33d   : > { %6155 = vmatprep.subr.bf16.mxu1 %v9482_v44 }
 0x33f   : > { %3887 = vmatmul.mubr.f32.gmra.mrb[42].mxu1 %v8370_v28  ;;  %v6162_v28 = vpack.c.bf16 %v3500_v3, %v3499_v46  ;;  %v3524_v3 = vld [vmem:[%s9445_s3 + $0x338] sm:$0xff] }
 0x340   : > { %3891 = vmatprep.mubr.f32.mxu1 %v8393_v48  ;;  %6157 = vmatpush1.bf16.msra.mxu1 %v6156_v41  ;;  %v3501_v48 = vld [vmem:[%s9445_s3 + $0x280] sm:$0xff]  ;;  %v3514_v41 = vld [vmem:[%s9445_s3 + $0x2e8] sm:$0xff] }
 0x341   : > { %6158 = vmatprep.subr.bf16.mxu1 %v9482_v44 }
 0x343   : > { %3892 = vmatmul.mubr.f32.gmra.mrb[44].mxu1 %v8382_v9  ;;  %v6165_v9 = vpack.c.bf16 %v3502_v59, %v3501_v48  ;;  %v2879_v59 = vld [vmem:[#allocation2 + $0x3a] sm:$0xff] }
 0x344   : > { %3896 = vmatprep.mubr.f32.mxu1 %v8400_v21  ;;  %6160 = vmatpush1.bf16.msra.mxu1 %v6159_v1  ;;  %v3503_v21 = vld [vmem:[%s9445_s3 + $0x290] sm:$0xff] }
 0x345   : > { %6161 = vmatprep.subr.bf16.mxu1 %v9482_v44  ;;  %v2878_v1 = vld [vmem:[#allocation2 + $0x32] sm:$0xff] }
 0x347   : > { %3897 = vmatmul.mubr.f32.gmra.mrb[46].mxu1 %v8386_v6  ;;  %v6168_v6 = vpack.c.bf16 %v3504_v47, %v3503_v21  ;;  %v3525_v47 = vld [vmem:[%s9445_s3 + $0x340] sm:$0xff] }
 0x348   : > { %3901 = vmatprep.mubr.f32.mxu1 %v8409_v49  ;;  %6163 = vmatpush1.bf16.msra.mxu1 %v6162_v28  ;;  %v3505_v49 = vld [vmem:[%s9445_s3 + $0x2a0] sm:$0xff]  ;;  %v8840_v28 = vld [vmem:[#allocation2 + $0x31] sm:$0xff] }
 0x349   : > { %6164 = vmatprep.subr.bf16.mxu1 %v9482_v44 }
 0x34b   : > { %3902 = vmatmul.mubr.f32.gmra.mrb[48].mxu1 %v8398_v50  ;;  %v6171_v50 = vpack.c.bf16 %v3506_v51, %v3505_v49  ;;  %v8854_v49 = vld [vmem:[#allocation2 + $0x39] sm:$0xff]  ;;  %v2880_v51 = vld [vmem:[#allocation2 + $0x4a] sm:$0xff] }
 0x34c   : > { %3906 = vmatprep.mubr.f32.mxu1 %v8416_v33  ;;  %6166 = vmatpush1.bf16.msra.mxu1 %v6165_v9  ;;  %v3507_v33 = vld [vmem:[%s9445_s3 + $0x2b0] sm:$0xff] }
 0x34d   : > { %6167 = vmatprep.subr.bf16.mxu1 %v9482_v44 }
 0x34f   : > { %3907 = vmatmul.mubr.f32.gmra.mrb[50].mxu1 %v8402_v55  ;;  %v6174_v55 = vpack.c.bf16 %v3508_v10, %v3507_v33  ;;  %v3527_v33 = vld [vmem:[%s9445_s3 + $0x350] sm:$0xff]  ;;  %v3528_v10 = vld [vmem:[%s9445_s3 + $0x358] sm:$0xff] }
 0x350   : > { %3911 = vmatprep.mubr.f32.mxu1 %v8425_v58  ;;  %6169 = vmatpush1.bf16.msra.mxu1 %v6168_v6  ;;  %v3509_v58 = vld [vmem:[%s9445_s3 + $0x2c0] sm:$0xff]  ;;  %v3526_v6 = vld [vmem:[%s9445_s3 + $0x348] sm:$0xff] }
 0x351   : > { %6170 = vmatprep.subr.bf16.mxu1 %v9482_v44 }
 0x353   : > { %3912 = vmatmul.mubr.f32.gmra.mrb[52].mxu1 %v8414_v19  ;;  %v6177_v19 = vpack.c.bf16 %v3510_v29, %v3509_v58  ;;  %v2881_v29 = vld [vmem:[#allocation2 + $0x52] sm:$0xff] }
 0x354   : > { %3916 = vmatprep.mubr.f32.mxu1 %v8432_v8  ;;  %6172 = vmatpush1.bf16.msra.mxu1 %v6171_v50  ;;  %v3511_v8 = vld [vmem:[%s9445_s3 + $0x2d0] sm:$0xff]  ;;  %v6201_v50 = vpack.c.bf16 %v3526_v6, %v3525_v47  ;;  %v3537_v47 = vld [vmem:[%s9445_s3 + $0x3a0] sm:$0xff]  ;;  %v3538_v6 = vld [vmem:[%s9445_s3 + $0x3a8] sm:$0xff] }
 0x355   : > { %6173 = vmatprep.subr.bf16.mxu1 %v9482_v44 }
 0x357   : > { %3917 = vmatmul.mubr.f32.gmra.mrb[54].mxu1 %v8418_v22  ;;  %v6180_v22 = vpack.c.bf16 %v3512_v53, %v3511_v8  ;;  %v6204_v8 = vpack.c.bf16 %v3528_v10, %v3527_v33  ;;  %v3529_v53 = vld [vmem:[%s9445_s3 + $0x360] sm:$0xff]  ;;  %v6219_v33 = vpack.c.bf16 %v3538_v6, %v3537_v47  ;;  %v3539_v10 = vld [vmem:[%s9445_s3 + $0x3b0] sm:$0xff]  ;;  %v3546_v6 = vld [vmem:[%s9445_s3 + $0x3e8] sm:$0xff] }
 0x358   : > { %3921 = vmatprep.mubr.f32.mxu1 %v8441_v13  ;;  %6175 = vmatpush1.bf16.msra.mxu1 %v6174_v55  ;;  %v3513_v13 = vld [vmem:[%s9445_s3 + $0x2e0] sm:$0xff]  ;;  %v8864_v55 = vld [vmem:[#allocation2 + $0x49] sm:$0xff] }
 0x359   : > { %6176 = vmatprep.subr.bf16.mxu1 %v9482_v44  ;;  %v3545_v47 = vld [vmem:[%s9445_s3 + $0x3e0] sm:$0xff] }
 0x35b   : > { %3922 = vmatmul.mubr.f32.gmra.mrb[56].mxu1 %v8430_v32  ;;  %v6183_v32 = vpack.c.bf16 %v3514_v41, %v3513_v13  ;;  %v8878_v13 = vld [vmem:[#allocation2 + $0x51] sm:$0xff]  ;;  %v2882_v41 = vld [vmem:[#allocation2 + $0x62] sm:$0xff] }
 0x35c   : > { %3926 = vmatprep.mubr.f32.mxu1 %v8448_v54  ;;  %6178 = vmatpush1.bf16.msra.mxu1 %v6177_v19  ;;  %v3515_v54 = vld [vmem:[%s9445_s3 + $0x2f0] sm:$0xff] }
 0x35d   : > { %6179 = vmatprep.subr.bf16.mxu1 %v9482_v44 }
 0x35f   : > { %3927 = vmatmul.mubr.f32.gmra.mrb[58].mxu1 %v8434_v24  ;;  %v6186_v24 = vpack.c.bf16 %v3516_v23, %v3515_v54  ;;  %v3531_v54 = vld [vmem:[%s9445_s3 + $0x370] sm:$0xff]  ;;  %v3532_v23 = vld [vmem:[%s9445_s3 + $0x378] sm:$0xff] }
 0x360   : > { %3931 = vmatprep.mubr.f32.mxu1 %v8457_v25  ;;  %6181 = vmatpush1.bf16.msra.mxu1 %v6180_v22  ;;  %v3530_v22 = vld [vmem:[%s9445_s3 + $0x368] sm:$0xff] }
 0x361   : > { %6182 = vmatprep.subr.bf16.mxu1 %v9482_v44 }
 0x363   : > { %3932 = vmatmul.mubr.f32.gmra.mrb[60].mxu1 %v8446_v38  ;;  %v9501_v38 = vld [vmem:[#allocation4_spill] sm:$0xff] }
 0x364   : > { %3936 = vmatprep.mubr.f32.mxu1 %v8464_v52  ;;  %6184 = vmatpush1.bf16.msra.mxu1 %v6183_v32  ;;  %v9503_v52 = vld [vmem:[#allocation8_spill] sm:$0xff]  ;;  %v6207_v32 = vpack.c.bf16 %v3530_v22, %v3529_v53  ;;  %v2887_v22 = vld [vmem:[#allocation2 + $0x9a] sm:$0xff] }
 0x365   : > { %6185 = vmatprep.subr.bf16.mxu1 %v9482_v44 }
 0x367   : > { %3937 = vmatmul.mubr.f32.gmra.mrb[62].mxu1 %v8450_v36  ;;  %v9502_v36 = vld [vmem:[#allocation5_spill] sm:$0xff] }
 0x368   : > { %3941 = vmatprep.mubr.f32.mxu1 %v8473_v34  ;;  %6187 = vmatpush1.bf16.msra.mxu1 %v6186_v24  ;;  %v8888_v24 = vld [vmem:[#allocation2 + $0x61] sm:$0xff] }
 0x369   : > { %6188 = vmatprep.subr.bf16.mxu1 %v9482_v44 }
 0x36b   : > { %3942 = vmatmul.mubr.f32.gmra.mrb[64].mxu1 %v8462_v45 }
 0x36c   : > { %3946 = vmatprep.mubr.f32.mxu1 %v8480_v43 }
 0x36f   : > { %3947 = vmatmul.mubr.f32.gmra.mrb[66].mxu1 %v8466_v39 }
 0x370   : > { %3951 = vmatprep.mubr.f32.mxu1 %v8489_v27 }
 0x373   : > { %3952 = vmatmul.mubr.f32.gmra.mrb[68].mxu1 %v8478_v2  ;;  %v8796_v2 = vld [vmem:[#allocation2 + $0x180] sm:$0xff] }
 0x374   : > { %3956 = vmatprep.mubr.f32.mxu1 %v8496_v57  ;;  %v3517_v57 = vld [vmem:[%s9445_s3 + $0x300] sm:$0xff] }
 0x377   : > { %3957 = vmatmul.mubr.f32.gmra.mrb[70].mxu1 %v8482_v12  ;;  %v8802_v12 = vld [vmem:[#allocation2 + $0x188] sm:$0xff] }
 0x378   : > { %3961 = vmatprep.mubr.f32.mxu1 %v8505_v4  ;;  %v3518_v4 = vld [vmem:[%s9445_s3 + $0x308] sm:$0xff] }
 0x37b   : > { %3962 = vmatmul.mubr.f32.gmra.mrb[72].mxu1 %v8494_v42 }
 0x37c   : > { %3966 = vmatprep.mubr.f32.mxu1 %v8512_v18  ;;  %v9504_v18 = vld [vmem:[#allocation13_spill] sm:$0xff] }
 0x37f   : > { %3967 = vmatmul.mubr.f32.gmra.mrb[74].mxu1 %v8498_v16 }
 0x380   : > { %3971 = vmatprep.mubr.f32.mxu1 %v8521_v7  ;;  %v6189_v7 = vpack.c.bf16 %v3518_v4, %v3517_v57  ;;  %v2883_v4 = vld [vmem:[#allocation2 + $0x6a] sm:$0xff] }
 0x383   : > { %3972 = vmatmul.mubr.f32.gmra.mrb[76].mxu1 %v9501_v38 }
 0x384   : > { %3976 = vmatprep.mubr.f32.mxu1 %v8528_v15  ;;  %v3519_v15 = vld [vmem:[%s9445_s3 + $0x310] sm:$0xff] }
 0x387   : > { %3977 = vmatmul.mubr.f32.gmra.mrb[78].mxu1 %v8514_v11 }
 0x388   : > { %3981 = vmatprep.mubr.f32.mxu1 %v8539_v35  ;;  %v2812_v35 = vld [vmem:[#allocation2 + $0x19] sm:$0xff] }
 0x38b   : > { %3982 = vmatmul.mubr.f32.gmra.mrb[80].mxu1 %v8526_v20 }
 0x38c   : > { %3986 = vmatprep.mubr.f32.mxu1 %v8549_v63  ;;  %v3520_v63 = vld [vmem:[%s9445_s3 + $0x318] sm:$0xff] }
 0x38f   : > { %3987 = vmatmul.mubr.f32.gmra.mrb[82].mxu1 %v9502_v36 }
 0x390   : > { %3991 = vmatprep.mubr.f32.mxu1 %v8562_v30 }
 0x391   : > { %v8781_v25 = vpop.f32.mrb[64].mxu0 }
 0x392   : > { %v8784_v45 = vpop.f32.mrb[65].mxu0 }
 0x393   : > { %3992 = vmatmul.mubr.f32.gmra.mrb[84].mxu1 %v8547_v56 }
 0x394   : > { %3996 = vmatprep.mubr.f32.mxu1 %v8573_v17  ;;  %v6192_v17 = vpack.c.bf16 %v3520_v63, %v3519_v15  ;;  %v6210_v15 = vpack.c.bf16 %v3532_v23, %v3531_v54  ;;  %v3533_v63 = vld [vmem:[%s9445_s3 + $0x380] sm:$0xff]  ;;  %v3542_v23 = vld [vmem:[%s9445_s3 + $0x3c8] sm:$0xff] }
 0x395   : > { %v3541_v54 = vld [vmem:[%s9445_s3 + $0x3c0] sm:$0xff] }
 0x397   : > { %3997 = vmatmul.mubr.f32.gmra.mrb[86].mxu1 %v9503_v52 }
 0x398   : > { %4001 = vmatprep.mubr.f32.mxu1 %v8587_v40 }
 0x399   : > { %v8789_v39 = vpop.f32.mrb[66].mxu0 }
 0x39a   : > { %v8792_v34 = vpop.f32.mrb[67].mxu0 }
 0x39b   : > { %4002 = vmatmul.mubr.f32.gmra.mrb[88].mxu1 %v8571_v5 }
 0x39c   : > { %4006 = vmatprep.mubr.f32.mxu1 %v8605_v0  ;;  %v3521_v0 = vld [vmem:[%s9445_s3 + $0x320] sm:$0xff] }
 0x39f   : > { %4007 = vmatmul.mubr.f32.gmra.mrb[90].mxu1 %v8575_v62 }
 0x3a0   : > { %4011 = vmatprep.mubr.f32.mxu1 %v8796_v2 }
 0x3a1   : > { %v8799_v43 = vpop.f32.mrb[68].mxu0 }
 0x3a2   : > { %v8804_v27 = vpop.f32.mrb[69].mxu0 }
 0x3a3   : > { %4012 = vmatmul.mubr.f32.gmra.mrb[92].mxu1 %v8603_v26 }
 0x3a4   : > { %4016 = vmatprep.mubr.f32.mxu1 %v8802_v12 }
 0x3a7   : > { %4017 = vmatmul.mubr.f32.gmra.mrb[94].mxu1 %v9504_v18 }
 0x3a8   : > { %4086 = vmatprep.mubr.f32.mxu1 %v8636_v14  ;;  %v3522_v14 = vld [vmem:[%s9445_s3 + $0x328] sm:$0xff] }
 0x3a9   : > { %v8821_v40 = vpop.f32.mrb[70].mxu0  ;;  %v6195_v46 = vpack.c.bf16 %v3522_v14, %v3521_v0  ;;  %v2884_v0 = vld [vmem:[#allocation2 + $0x7a] sm:$0xff] }
 0x3aa   : > { %v8823_v30 = vpop.f32.mrb[71].mxu0 }
 0x3ab   : > { %4087 = vmatmul.mubr.f32.vlgmr.msra.gmra.mrb[32].mxu1 %v2812_v35  ;;  %v3534_v35 = vld [vmem:[%s9445_s3 + $0x388] sm:$0xff] }
 0x3ac   : > { %4091 = vmatprep.mubr.f32.mxu1 %v8647_v37  ;;  %6190 = vmatpush1.bf16.msra.mxu1 %v6189_v7  ;;  %v3523_v37 = vld [vmem:[%s9445_s3 + $0x330] sm:$0xff]  ;;  %v6213_v14 = vpack.c.bf16 %v3534_v35, %v3533_v63  ;;  %v6225_v63 = vpack.c.bf16 %v3542_v23, %v3541_v54  ;;  %v5364_v54 = vld [vmem:[%s6913_s22 + $0xd9] sm:$0xff]  ;;  %v5365_v23 = vld [vmem:[%s6913_s22 + $0xe1] sm:$0xff] }
 0x3ad   : > { %6191 = vmatprep.subr.bf16.mxu1 %v9482_v44  ;;  %v6198_v21 = vpack.c.bf16 %v3524_v3, %v3523_v37  ;;  %v2885_v3 = vld [vmem:[#allocation2 + $0x82] sm:$0xff]  ;;  %v3543_v35 = vld [vmem:[%s9445_s3 + $0x3d0] sm:$0xff] }
 0x3af   : > { %4092 = vmatmul.mubr.f32.gmra.mrb[34].mxu1 %v2813_v31  ;;  %v3535_v31 = vld [vmem:[%s9445_s3 + $0x390] sm:$0xff] }
 0x3b0   : > { %4096 = vmatprep.mubr.f32.mxu1 %v2878_v1  ;;  %6193 = vmatpush1.bf16.msra.mxu1 %v6192_v17  ;;  %v8902_v17 = vld [vmem:[#allocation2 + $0x69] sm:$0xff]  ;;  %v3536_v1 = vld [vmem:[%s9445_s3 + $0x398] sm:$0xff] }
 0x3b1   : > { %6194 = vmatprep.subr.bf16.mxu1 %v9482_v44  ;;  %v8842_v48 = vpop.f32.mrb[72].mxu0 }
 0x3b2   : > { %v8845_v9 = vpop.f32.mrb[73].mxu0 }
 0x3b3   : > { %4097 = vmatmul.mubr.f32.gmra.mrb[36].mxu1 %v8840_v28 }
 0x3b4   : > { %4101 = vmatprep.mubr.f32.mxu1 %v2879_v59  ;;  %6196 = vmatpush1.bf16.msra.mxu1 %v6195_v46  ;;  %v8912_v46 = vld [vmem:[#allocation2 + $0x79] sm:$0xff] }
 0x3b5   : > { %6197 = vmatprep.subr.bf16.mxu1 %v9482_v44 }
 0x3b7   : > { %4102 = vmatmul.mubr.f32.gmra.mrb[38].mxu1 %v8854_v49 }
 0x3b8   : > { %4106 = vmatprep.mubr.f32.mxu1 %v2880_v51  ;;  %6199 = vmatpush1.bf16.msra.mxu1 %v6198_v21  ;;  %v6216_v21 = vpack.c.bf16 %v3536_v1, %v3535_v31  ;;  %v8926_v51 = vld [vmem:[#allocation2 + $0x81] sm:$0xff]  ;;  %v2889_v1 = vld [vmem:[#allocation2 + $0xb2] sm:$0xff] }
 0x3b9   : > { %6200 = vmatprep.subr.bf16.mxu1 %v9482_v44  ;;  %v8866_v58 = vpop.f32.mrb[74].mxu0 }
 0x3ba   : > { %v8869_v19 = vpop.f32.mrb[75].mxu0 }
 0x3bb   : > { %4107 = vmatmul.mubr.f32.gmra.mrb[40].mxu1 %v8864_v55 }
 0x3bc   : > { %4111 = vmatprep.mubr.f32.mxu1 %v2881_v29  ;;  %6202 = vmatpush1.bf16.msra.mxu1 %v6201_v50  ;;  %v2886_v50 = vld [vmem:[#allocation2 + $0x92] sm:$0xff] }
 0x3bd   : > { %6203 = vmatprep.subr.bf16.mxu1 %v9482_v44  ;;  %v3540_v29 = vld [vmem:[%s9445_s3 + $0x3b8] sm:$0xff] }
 0x3bf   : > { %4112 = vmatmul.mubr.f32.gmra.mrb[42].mxu1 %v8878_v13 }
 0x3c0   : > { %4116 = vmatprep.mubr.f32.mxu1 %v2882_v41  ;;  %6205 = vmatpush1.bf16.msra.mxu1 %v6204_v8  ;;  %v8936_v8 = vld [vmem:[#allocation2 + $0x91] sm:$0xff] }
 0x3c1   : > { %6206 = vmatprep.subr.bf16.mxu1 %v9482_v44  ;;  %v8890_v57 = vpop.f32.mrb[76].mxu0 }
 0x3c2   : > { %v8893_v7 = vpop.f32.mrb[77].mxu0 }
 0x3c3   : > { %4117 = vmatmul.mubr.f32.gmra.mrb[44].mxu1 %v8888_v24 }
 0x3c4   : > { %4121 = vmatprep.mubr.f32.mxu1 %v2883_v4  ;;  %6208 = vmatpush1.bf16.msra.mxu1 %v6207_v32  ;;  %v6222_v32 = vpack.c.bf16 %v3540_v29, %v3539_v10  ;;  %v8950_v4 = vld [vmem:[#allocation2 + $0x99] sm:$0xff]  ;;  %v6231_v10 = vpack.c.bf16 %v3546_v6, %v3545_v47  ;;  %v3547_v29 = vld [vmem:[%s9445_s3 + $0x3f0] sm:$0xff] }
 0x3c5   : > { %6209 = vmatprep.subr.bf16.mxu1 %v9482_v44  ;;  %v2892_v47 = vld [vmem:[#allocation2 + $0xda] sm:$0xff] }
 0x3c6   : > { %v8997_v6 = vld [vmem:[#allocation2 + $0xd9] sm:$0xff] }
 0x3c7   : > { %4122 = vmatmul.mubr.f32.gmra.mrb[46].mxu1 %v8902_v17 }
 0x3c8   : > { %4126 = vmatprep.mubr.f32.mxu1 %v2884_v0  ;;  %6211 = vmatpush1.bf16.msra.mxu1 %v6210_v15  ;;  %v2888_v15 = vld [vmem:[#allocation2 + $0xaa] sm:$0xff]  ;;  %v3544_v0 = vld [vmem:[%s9445_s3 + $0x3d8] sm:$0xff] }
 0x3c9   : > { %6212 = vmatprep.subr.bf16.mxu1 %v9482_v44  ;;  %v8914_v37 = vpop.f32.mrb[78].mxu0 }
 0x3ca   : > { %v8917_v59 = vpop.f32.mrb[79].mxu0 }
 0x3cb   : > { %4127 = vmatmul.mubr.f32.gmra.mrb[48].mxu1 %v8912_v46 }
 0x3cc   : > { %4131 = vmatprep.mubr.f32.mxu1 %v2885_v3  ;;  %6214 = vmatpush1.bf16.msra.mxu1 %v6213_v14  ;;  %v8960_v14 = vld [vmem:[#allocation2 + $0xa9] sm:$0xff] }
 0x3cd   : > { %6215 = vmatprep.subr.bf16.mxu1 %v9482_v44 }
 0x3cf   : > { %4132 = vmatmul.mubr.f32.gmra.mrb[50].mxu1 %v8926_v51 }
 0x3d0   : > { %4136 = vmatprep.mubr.f32.mxu1 %v2886_v50  ;;  %6217 = vmatpush1.bf16.msra.mxu1 %v6216_v21  ;;  %v6228_v21 = vpack.c.bf16 %v3544_v0, %v3543_v35  ;;  %v8974_v50 = vld [vmem:[#allocation2 + $0xb1] sm:$0xff] }
 0x3d1   : > { %6218 = vmatprep.subr.bf16.mxu1 %v9482_v44  ;;  %v8938_v53 = vpop.f32.mrb[80].mxu0 }
 0x3d2   : > { %v8941_v41 = vpop.f32.mrb[81].mxu0 }
 0x3d3   : > { %4137 = vmatmul.mubr.f32.gmra.mrb[52].mxu1 %v8936_v8 }
 0x3d4   : > { %4141 = vmatprep.mubr.f32.mxu1 %v2887_v22  ;;  %6220 = vmatpush1.bf16.msra.mxu1 %v6219_v33  ;;  %v2890_v33 = vld [vmem:[#allocation2 + $0xc2] sm:$0xff]  ;;  %v3548_v22 = vld [vmem:[%s9445_s3 + $0x3f8] sm:$0xff] }
 0x3d5   : > { %6221 = vmatprep.subr.bf16.mxu1 %v9482_v44  ;;  %v6234_v0 = vpack.c.bf16 %v3548_v22, %v3547_v29  ;;  %v9008_v29 = vld [vmem:[#allocation2 + $0xf1] sm:$0xff] }
 0x3d7   : > { %4142 = vmatmul.mubr.f32.gmra.mrb[54].mxu1 %v8950_v4 }
 0x3d8   : > { %4146 = vmatprep.mubr.f32.mxu1 %v2888_v15  ;;  %6223 = vmatpush1.bf16.msra.mxu1 %v6222_v32  ;;  %v8984_v32 = vld [vmem:[#allocation2 + $0xc1] sm:$0xff] }
 0x3d9   : > { %6224 = vmatprep.subr.bf16.mxu1 %v9482_v44  ;;  %v8962_v31 = vpop.f32.mrb[82].mxu0 }
 0x3da   : > { %v8965_v3 = vpop.f32.mrb[83].mxu0 }
 0x3db   : > { %4147 = vmatmul.mubr.f32.gmra.mrb[56].mxu1 %v8960_v14 }
 0x3dc   : > { %4151 = vmatprep.mubr.f32.mxu1 %v2889_v1  ;;  %6226 = vmatpush1.bf16.msra.mxu1 %v6225_v63  ;;  %v2891_v63 = vld [vmem:[#allocation2 + $0xca] sm:$0xff]  ;;  %v6268_v1 = vpack.c.bf16 %v5365_v23, %v5364_v54  ;;  %v9016_v23 = vld [vmem:[#allocation2 + $0xf9] sm:$0xff] }
 0x3dd   : > { %6227 = vmatprep.subr.bf16.mxu1 %v9482_v44 }
 0x3df   : > { %4152 = vmatmul.mubr.f32.gmra.mrb[58].mxu1 %v8974_v50 }
 0x3e0   : > { %4156 = vmatprep.mubr.f32.mxu1 %v2890_v33  ;;  %6229 = vmatpush1.bf16.msra.mxu1 %v6228_v21  ;;  %v8994_v21 = vld [vmem:[#allocation2 + $0xc9] sm:$0xff] }
 0x3e1   : > { %6230 = vmatprep.subr.bf16.mxu1 %v9482_v44  ;;  %v8988_v15 = vpop.f32.mrb[84].mxu0 }
 0x3e2   : > { %v8991_v35 = vpop.f32.mrb[85].mxu0 }
 0x3e3   : > { %4157 = vmatmul.mubr.f32.gmra.mrb[60].mxu1 %v8984_v32 }
 0x3e4   : > { %4161 = vmatprep.mubr.f32.mxu1 %v2891_v63  ;;  %6232 = vmatpush1.bf16.msra.mxu1 %v6231_v10  ;;  %v2893_v63 = vld [vmem:[#allocation2 + $0xe2] sm:$0xff] }
 0x3e5   : > { %6233 = vmatprep.subr.bf16.mxu1 %v9482_v44  ;;  %v9004_v44 = vld [vmem:[#allocation2 + $0xe1] sm:$0xff] }
 0x3e7   : > { %4162 = vmatmul.mubr.f32.gmra.mrb[62].mxu1 %v8994_v21 }
 0x3e8   : > { %4166 = vmatprep.mubr.f32.mxu1 %v2892_v47  ;;  %6235 = vmatpush1.bf16.msra.mxu1 %v6234_v0  ;;  %v9020_v0 = vld [vmem:[#allocation2 + $0x109] sm:$0xff]  ;;  %v9028_v47 = vld [vmem:[#allocation2 + $0x111] sm:$0xff] }
 0x3e9   : > { %6269 = vmatprep.subr.bf16.mxu1 %v6268_v1  ;;  %v8999_v33 = vpop.f32.mrb[86].mxu0 }
 0x3ea   : > { %v9002_v10 = vpop.f32.mrb[87].mxu0 }
 0x3eb   : > { %4167 = vmatmul.mubr.f32.gmra.mrb[64].mxu1 %v8997_v6 }
 0x3ec   : > { %4171 = vmatprep.mubr.f32.mxu1 %v2893_v63 }
 0x3ef   : > { %4172 = vmatmul.mubr.f32.gmra.mrb[66].mxu1 %v9004_v44 }
 0x3f0   : > { %4176 = vmatprep.mubr.f32.mxu1 %v8494_v42 }
 0x3f2   : > { %v9010_v22 = vpop.f32.mrb[88].mxu0 }
 0x3f3   : > { %9505 = vst [vmem:[#allocation4_spill] sm:$0xff] %v9010_v22  ;;  %4177 = vmatmul.mubr.f32.gmra.mrb[68].mxu1 %v9008_v29  ;;  %v9013_v54 = vpop.f32.mrb[89].mxu0  ;;  %v5351_v22 = vld [vmem:[%s6913_s22 + $0x39] sm:$0xff] }
 0x3f4   : > { %9506 = vst [vmem:[#allocation5_spill] sm:$0xff] %v9013_v54  ;;  %4181 = vmatprep.mubr.f32.mxu1 %v8498_v16  ;;  %v9032_v16 = vld [vmem:[#allocation2 + $0x121] sm:$0xff]  ;;  %v5369_v54 = vld [vmem:[%s6913_s22 + $0x111] sm:$0xff] }
 0x3f7   : > { %4182 = vmatmul.mubr.f32.gmra.mrb[70].mxu1 %v9016_v23 }
 0x3f8   : > { %4186 = vmatprep.mubr.f32.mxu1 %v9501_v38 }
 0x3f9   : > { %v9022_v1 = vpop.f32.mrb[90].mxu0 }
 0x3fa   : > { %9507 = vst [vmem:[#allocation8_spill] sm:$0xff] %v9022_v1  ;;  %v9025_v42 = vpop.f32.mrb[91].mxu0  ;;  %v9040_v1 = vld [vmem:[#allocation2 + $0x129] sm:$0xff] }
 0x3fb   : > { %4187 = vmatmul.mubr.f32.gmra.mrb[72].mxu1 %v9020_v0  ;;  %9508 = vst [vmem:[#allocation13_spill] sm:$0xff] %v9025_v42 }
 0x3fc   : > { %4191 = vmatprep.mubr.f32.mxu1 %v8514_v11  ;;  %v9044_v11 = vld [vmem:[#allocation2 + $0x139] sm:$0xff] }
 0x3ff   : > { %4192 = vmatmul.mubr.f32.gmra.mrb[74].mxu1 %v9028_v47 }
 0x400   : > { %4196 = vmatprep.mubr.f32.mxu1 %v8526_v20  ;;  %v9048_v20 = vld [vmem:[#allocation2 + $0x141] sm:$0xff] }
 0x401   : > { %v9034_v63 = vpop.f32.mrb[92].mxu0 }
 0x402   : > { %9509 = vst [vmem:[#allocation14_spill] sm:$0xff] %v9034_v63  ;;  %v9037_v38 = vpop.f32.mrb[93].mxu0  ;;  %v9513_v63 = vld [vmem:[#allocation9_spill] sm:$0xff] }
 0x403   : > { %4197 = vmatmul.mubr.f32.gmra.mrb[76].mxu1 %v9032_v16  ;;  %9510 = vst [vmem:[#allocation15_spill] sm:$0xff] %v9037_v38 }
 0x404   : > { %4201 = vmatprep.mubr.f32.mxu1 %v9502_v36  ;;  %v9511_v36 = vld [vmem:[#allocation6_spill] sm:$0xff] }
 0x407   : > { %4202 = vmatmul.mubr.f32.gmra.mrb[78].mxu1 %v9040_v1 }
 0x408   : > { %4206 = vmatprep.mubr.f32.mxu1 %v8547_v56  ;;  %v9512_v56 = vld [vmem:[#allocation7_spill] sm:$0xff] }
 0x40b   : > { %4207 = vmatmul.mubr.f32.gmra.mrb[80].mxu1 %v9044_v11 }
 0x40c   : > { %4211 = vmatprep.mubr.f32.mxu1 %v9503_v52  ;;  %v9514_v52 = vld [vmem:[#allocation10_spill] sm:$0xff] }
 0x40f   : > { %4212 = vmatmul.mubr.f32.gmra.mrb[82].mxu1 %v9048_v20 }
 0x410   : > { %4216 = vmatprep.mubr.f32.mxu1 %v8571_v5  ;;  %v9515_v5 = vld [vmem:[#allocation11_spill] sm:$0xff] }
 0x411   : > { %v9516_v38 = vmax.f32 %v9515_v5, 0.0  ;;  %v5350_v5 = vld [vmem:[%s6913_s22 + $0x31] sm:$0xff] }
 0x413   : > { %4217 = vmatmul.mubr.f32.gmra.mrb[84].mxu1 %v9511_v36  ;;  %v3099_v36 = vld [vmem:[#allocation2 + $0x19a] sm:$0xff] }
 0x414   : > { %4221 = vmatprep.mubr.f32.mxu1 %v8575_v62  ;;  %v3100_v62 = vld [vmem:[#allocation2 + $0x1a2] sm:$0xff]  ;;  %5773 = vmatprep.mubr.f32.mxu0 %v3099_v36 }
 0x415   : > { %5774 = vmatmul.mubr.f32.gmra.mrb[94].mxu0 %v3100_v62  ;;  %v5368_v36 = vld [vmem:[%s6913_s22 + $0x109] sm:$0xff]  ;;  %v6274_v62 = vpack.c.bf16 %v5351_v22, %v5350_v5  ;;  %v5354_v22 = vld [vmem:[%s6913_s22 + $0x61] sm:$0xff] }
 0x416   : > { %v5373_v5 = vld [vmem:[%s6913_s22 + $0x141] sm:$0xff] }
 0x417   : > { %4222 = vmatmul.mubr.f32.gmra.mrb[86].mxu1 %v9512_v56  ;;  %v5367_v56 = vld [vmem:[%s6913_s22 + $0xf9] sm:$0xff] }
 0x418   : > { %4226 = vmatprep.mubr.f32.mxu1 %v8603_v26  ;;  %v5348_v26 = vld [vmem:[%s6913_s22 + $0x19] sm:$0xff] }
 0x41b   : > { %4227 = vmatmul.mubr.f32.gmra.mrb[88].mxu1 %v9513_v63  ;;  %v5349_v63 = vld [vmem:[%s6913_s22 + $0x21] sm:$0xff] }
 0x41c   : > { %4231 = vmatprep.mubr.f32.mxu1 %v9504_v18  ;;  %v5366_v18 = vld [vmem:[%s6913_s22 + $0xf1] sm:$0xff] }
 0x41f   : > { %4232 = vmatmul.mubr.f32.gmra.mrb[90].mxu1 %v9514_v52  ;;  %v9517_v52 = vld [vmem:[#allocation12_spill] sm:$0xff] }
 0x420   : > { %4236 = vmatprep.mubr.f32.mxu1 %v8626_v60  ;;  %v9518_v42 = vmax.f32 %v9517_v52, 0.0  ;;  %v6270_v60 = vpack.c.bf16 %v5349_v63, %v5348_v26  ;;  %v5353_v26 = vld [vmem:[%s6913_s22 + $0x51] sm:$0xff] }
 0x421   : > { %v2942_v63 = vld [vmem:[#allocation2 + $0x38] sm:$0xff] }
 0x423   : > { %4237 = vmatmul.mubr.f32.gmra.mrb[92].mxu1 %v9516_v38  ;;  %v6272_v38 = vpack.c.bf16 %v5367_v56, %v5366_v18  ;;  %v5370_v18 = vld [vmem:[%s6913_s22 + $0x121] sm:$0xff]  ;;  %v5371_v56 = vld [vmem:[%s6913_s22 + $0x129] sm:$0xff] }
 0x424   : > { %4241 = vmatprep.mubr.f32.mxu1 %v8628_v61  ;;  %v2941_v61 = vld [vmem:[#allocation2 + $0x30] sm:$0xff]  ;;  %v6280_v52 = vpack.c.bf16 %v5371_v56, %v5370_v18  ;;  %v5359_v56 = vld [vmem:[%s6913_s22 + $0x99] sm:$0xff] }
 0x425   : > { %v5358_v18 = vld [vmem:[%s6913_s22 + $0x91] sm:$0xff] }
 0x427   : > { %4242 = vmatmul.mubr.f32.gmra.mrb[94].mxu1 %v9518_v42  ;;  %v6276_v42 = vpack.c.bf16 %v5369_v54, %v5368_v36  ;;  %v2943_v54 = vld [vmem:[#allocation2 + $0x48] sm:$0xff]  ;;  %v5356_v36 = vld [vmem:[%s6913_s22 + $0x79] sm:$0xff] }
 0x428   : > { %4311 = vmatprep.mubr.f32.mxu1 %v8840_v28  ;;  %v5352_v28 = vld [vmem:[%s6913_s22 + $0x49] sm:$0xff] }
 0x42b   : > { %4312 = vmatmul.mubr.f32.vlgmr.msra.gmra.mrb[32].mxu1 %v2941_v61 }
 0x42c   : > { %4316 = vmatprep.mubr.f32.mxu1 %v8854_v49  ;;  %6271 = vmatpush3.bf16.msra.mxu1 %v6270_v60  ;;  %v6278_v49 = vpack.c.bf16 %v5353_v26, %v5352_v28  ;;  %v5355_v60 = vld [vmem:[%s6913_s22 + $0x69] sm:$0xff]  ;;  %v5374_v28 = vld [vmem:[%s6913_s22 + $0x151] sm:$0xff]  ;;  %v5375_v26 = vld [vmem:[%s6913_s22 + $0x159] sm:$0xff] }
 0x42d   : > { %6273 = vmatprep.subr.bf16.mxu1 %v6272_v38  ;;  %v5372_v38 = vld [vmem:[%s6913_s22 + $0x139] sm:$0xff] }
 0x42e   : > { %v6284_v61 = vpack.c.bf16 %v5373_v5, %v5372_v38  ;;  %v5361_v38 = vld [vmem:[%s6913_s22 + $0xb1] sm:$0xff]  ;;  %v2946_v5 = vld [vmem:[#allocation2 + $0x68] sm:$0xff] }
 0x42f   : > { %4317 = vmatmul.mubr.f32.gmra.mrb[34].mxu1 %v2942_v63  ;;  %v6288_v63 = vpack.c.bf16 %v5375_v26, %v5374_v28  ;;  %v2947_v28 = vld [vmem:[#allocation2 + $0x78] sm:$0xff] }
 0x430   : > { %4321 = vmatprep.mubr.f32.mxu1 %v8864_v55  ;;  %6275 = vmatpush3.bf16.msra.mxu1 %v6274_v62  ;;  %v6282_v55 = vpack.c.bf16 %v5355_v60, %v5354_v22  ;;  %v5357_v62 = vld [vmem:[%s6913_s22 + $0x81] sm:$0xff]  ;;  %v5377_v22 = vld [vmem:[%s6913_s22 + $0x171] sm:$0xff] }
 0x431   : > { %6277 = vmatprep.subr.bf16.mxu1 %v6276_v42  ;;  %v2944_v42 = vld [vmem:[#allocation2 + $0x50] sm:$0xff] }
 0x433   : > { %4322 = vmatmul.mubr.f32.gmra.mrb[36].mxu1 %v2943_v54  ;;  %v5360_v54 = vld [vmem:[%s6913_s22 + $0xa9] sm:$0xff] }
 0x434   : > { %4326 = vmatprep.mubr.f32.mxu1 %v8878_v13  ;;  %6279 = vmatpush3.bf16.msra.mxu1 %v6278_v49  ;;  %v6286_v13 = vpack.c.bf16 %v5357_v62, %v5356_v36  ;;  %v2945_v49 = vld [vmem:[#allocation2 + $0x60] sm:$0xff]  ;;  %v6294_v36 = vpack.c.bf16 %v5361_v38, %v5360_v54  ;;  %v2971_v38 = vld [vmem:[#allocation2 + $0x198] sm:$0xff] }
 0x435   : > { %6281 = vmatprep.subr.bf16.mxu1 %v6280_v52  ;;  %v5376_v52 = vld [vmem:[%s6913_s22 + $0x169] sm:$0xff]  ;;  %v3035_v54 = vld [vmem:[#allocation2 + $0x199] sm:$0xff] }
 0x436   : > { %v6292_v60 = vpack.c.bf16 %v5377_v22, %v5376_v52  ;;  %v3030_v52 = vld [vmem:[#allocation2 + $0x159] sm:$0xff]  ;;  %v3031_v22 = vld [vmem:[#allocation2 + $0x169] sm:$0xff] }
 0x437   : > { %4327 = vmatmul.mubr.f32.gmra.mrb[38].mxu1 %v2944_v42  ;;  %v5362_v42 = vld [vmem:[%s6913_s22 + $0xc1] sm:$0xff] }
 0x438   : > { %4331 = vmatprep.mubr.f32.mxu1 %v8888_v24  ;;  %6283 = vmatpush3.bf16.msra.mxu1 %v6282_v55  ;;  %v6290_v24 = vpack.c.bf16 %v5359_v56, %v5358_v18  ;;  %v5378_v55 = vld [vmem:[%s6913_s22 + $0x181] sm:$0xff] }
 0x439   : > { %6285 = vmatprep.subr.bf16.mxu1 %v6284_v61  ;;  %v5379_v61 = vld [vmem:[%s6913_s22 + $0x189] sm:$0xff]  ;;  %v2953_v56 = vld [vmem:[#allocation2 + $0xc0] sm:$0xff] }
 0x43a   : > { %v6296_v62 = vpack.c.bf16 %v5379_v61, %v5378_v55  ;;  %v2951_v18 = vld [vmem:[#allocation2 + $0xa8] sm:$0xff] }
 0x43b   : > { %4332 = vmatmul.mubr.f32.gmra.mrb[40].mxu1 %v2945_v49  ;;  %v3029_v49 = vld [vmem:[#allocation2 + $0x151] sm:$0xff]  ;;  %v4698_v55 = vld [vmem:[%s9449_s7 + $0x8] sm:$0xff] }
 0x43c   : > { %4336 = vmatprep.mubr.f32.mxu1 %v8902_v17  ;;  %6287 = vmatpush3.bf16.msra.mxu1 %v6286_v13  ;;  %v5363_v17 = vld [vmem:[%s6913_s22 + $0xc9] sm:$0xff]  ;;  %v2948_v13 = vld [vmem:[#allocation2 + $0x80] sm:$0xff] }
 0x43d   : > { %6289 = vmatprep.subr.bf16.mxu1 %v6288_v63  ;;  %v6298_v26 = vpack.c.bf16 %v5363_v17, %v5362_v42  ;;  %v2949_v63 = vld [vmem:[#allocation2 + $0x90] sm:$0xff]  ;;  %v6823_v61 = vld [vmem:[#allocation2 + $0x8] sm:$0xff]  ;;  %v9151_v42 = vld [vmem:[%s9449_s7 + $0x20] sm:$0xff] }
 0x43e   : > { %v9156_v17 = vld [vmem:[%s9449_s7 + $0x38] sm:$0xff] }
 0x43f   : > { %4337 = vmatmul.mubr.f32.gmra.mrb[42].mxu1 %v2946_v5  ;;  %v3036_v5 = vld [vmem:[#allocation2 + $0x1a1] sm:$0xff] }
 0x440   : > { %4341 = vmatprep.mubr.f32.mxu1 %v8912_v46  ;;  %6291 = vmatpush3.bf16.msra.mxu1 %v6290_v24  ;;  %v2950_v46 = vld [vmem:[#allocation2 + $0x98] sm:$0xff] }
 0x441   : > { %6293 = vmatprep.subr.bf16.mxu1 %v6292_v60  ;;  %v3032_v24 = vld [vmem:[#allocation2 + $0x171] sm:$0xff]  ;;  %v3033_v60 = vld [vmem:[#allocation2 + $0x181] sm:$0xff] }
 0x443   : > { %4342 = vmatmul.mubr.f32.gmra.mrb[44].mxu1 %v2947_v28  ;;  %v9163_v28 = vld [vmem:[%s9449_s7 + $0x30] sm:$0xff] }
 0x444   : > { %4346 = vmatprep.mubr.f32.mxu1 %v8926_v51  ;;  %6295 = vmatpush3.bf16.msra.mxu1 %v6294_v36  ;;  %v2952_v51 = vld [vmem:[#allocation2 + $0xb0] sm:$0xff] }
 0x445   : > { %6297 = vmatprep.subr.bf16.mxu1 %v6296_v62  ;;  %v9139_v36 = vld [vmem:[%s9449_s7 + $0x10] sm:$0xff]  ;;  %v9144_v62 = vld [vmem:[%s9449_s7 + $0x28] sm:$0xff] }
 0x447   : > { %4347 = vmatmul.mubr.f32.gmra.mrb[46].mxu1 %v2948_v13  ;;  %v9175_v13 = vld [vmem:[%s9449_s7 + $0x40] sm:$0xff] }
 0x448   : > { %4351 = vmatprep.mubr.f32.mxu1 %v8936_v8  ;;  %6299 = vmatpush3.bf16.msra.mxu1 %v6298_v26  ;;  %v2954_v8 = vld [vmem:[#allocation2 + $0xc8] sm:$0xff] }
 0x449   : > { %v9168_v26 = vld [vmem:[%s9449_s7 + $0x48] sm:$0xff] }
 0x44b   : > { %4352 = vmatmul.mubr.f32.gmra.mrb[48].mxu1 %v2949_v63  ;;  %v9180_v63 = vld [vmem:[%s9449_s7 + $0x58] sm:$0xff] }
 0x44c   : > { %4356 = vmatprep.mubr.f32.mxu1 %v8950_v4  ;;  %v2955_v4 = vld [vmem:[#allocation2 + $0xd8] sm:$0xff] }
 0x44f   : > { %4357 = vmatmul.mubr.f32.gmra.mrb[50].mxu1 %v2950_v46  ;;  %v9187_v46 = vld [vmem:[%s9449_s7 + $0x50] sm:$0xff] }
 0x450   : > { %4361 = vmatprep.mubr.f32.mxu1 %v8960_v14  ;;  %v2956_v14 = vld [vmem:[#allocation2 + $0xe0] sm:$0xff] }
 0x453   : > { %4362 = vmatmul.mubr.f32.gmra.mrb[52].mxu1 %v2951_v18  ;;  %v9192_v18 = vld [vmem:[%s9449_s7 + $0x68] sm:$0xff] }
 0x454   : > { %4366 = vmatprep.mubr.f32.mxu1 %v8974_v50  ;;  %v2957_v50 = vld [vmem:[#allocation2 + $0xf0] sm:$0xff] }
 0x457   : > { %4367 = vmatmul.mubr.f32.gmra.mrb[54].mxu1 %v2952_v51  ;;  %v9199_v51 = vld [vmem:[%s9449_s7 + $0x60] sm:$0xff] }
 0x458   : > { %4371 = vmatprep.mubr.f32.mxu1 %v8984_v32  ;;  %v2958_v32 = vld [vmem:[#allocation2 + $0xf8] sm:$0xff] }
 0x45b   : > { %4372 = vmatmul.mubr.f32.gmra.mrb[56].mxu1 %v2953_v56  ;;  %v9204_v56 = vld [vmem:[%s9449_s7 + $0x78] sm:$0xff] }
 0x45c   : > { %4376 = vmatprep.mubr.f32.mxu1 %v8994_v21  ;;  %v2959_v21 = vld [vmem:[#allocation2 + $0x108] sm:$0xff] }
 0x45f   : > { %4377 = vmatmul.mubr.f32.gmra.mrb[58].mxu1 %v2954_v8  ;;  %v9211_v8 = vld [vmem:[%s9449_s7 + $0x70] sm:$0xff] }
 0x460   : > { %4381 = vmatprep.mubr.f32.mxu1 %v8997_v6  ;;  %v2960_v6 = vld [vmem:[#allocation2 + $0x110] sm:$0xff] }
 0x463   : > { %4382 = vmatmul.mubr.f32.gmra.mrb[60].mxu1 %v2955_v4  ;;  %v4850_v4 = vld [vmem:[%s9447_s5] sm:$0xff] }
 0x464   : > { %4386 = vmatprep.mubr.f32.mxu1 %v9004_v44  ;;  %v2961_v44 = vld [vmem:[#allocation2 + $0x120] sm:$0xff] }
 0x467   : > { %4387 = vmatmul.mubr.f32.gmra.mrb[62].mxu1 %v2956_v14  ;;  %v4851_v14 = vld [vmem:[%s9447_s5 + $0x8] sm:$0xff] }
 0x468   : > { %4391 = vmatprep.mubr.f32.mxu1 %v9008_v29  ;;  %v2962_v29 = vld [vmem:[#allocation2 + $0x128] sm:$0xff] }
 0x46b   : > { %4392 = vmatmul.mubr.f32.gmra.mrb[64].mxu1 %v2957_v50  ;;  %v6300_v50 = vpack.c.bf16 %v4851_v14, %v4850_v4 }
 0x46c   : > { %4396 = vmatprep.mubr.f32.mxu1 %v9016_v23  ;;  %v2963_v23 = vld [vmem:[#allocation2 + $0x138] sm:$0xff] }
 0x46d   : > { %6301 = vmatprep.subr.bf16.mxu0 %v6300_v50 }
 0x46e   : > { %6303 = vmatpush3.bf16.msra.mxu0 %v6300_v50 }
 0x46f   : > { %4397 = vmatmul.mubr.f32.gmra.mrb[66].mxu1 %v2958_v32  ;;  %v4852_v32 = vld [vmem:[%s9447_s5 + $0x10] sm:$0xff] }
 0x470   : > { %4401 = vmatprep.mubr.f32.mxu1 %v9020_v0  ;;  %v2964_v0 = vld [vmem:[#allocation2 + $0x140] sm:$0xff] }
 0x473   : > { %4402 = vmatmul.mubr.f32.gmra.mrb[68].mxu1 %v2959_v21  ;;  %v4853_v21 = vld [vmem:[%s9447_s5 + $0x18] sm:$0xff] }
 0x474   : > { %4406 = vmatprep.mubr.f32.mxu1 %v9028_v47  ;;  %v2965_v47 = vld [vmem:[#allocation2 + $0x150] sm:$0xff] }
 0x477   : > { %4407 = vmatmul.mubr.f32.gmra.mrb[70].mxu1 %v2960_v6  ;;  %v6304_v6 = vpack.c.bf16 %v4853_v21, %v4852_v32  ;;  %v4864_v32 = vld [vmem:[%s9447_s5 + $0x70] sm:$0xff]  ;;  %v4865_v21 = vld [vmem:[%s9447_s5 + $0x78] sm:$0xff] }
 0x478   : > { %4411 = vmatprep.mubr.f32.mxu1 %v9032_v16  ;;  %v2966_v16 = vld [vmem:[#allocation2 + $0x158] sm:$0xff] }
 0x479   : > { %6305 = vmatprep.subr.bf16.mxu0 %v6304_v6 }
 0x47a   : > { %6307 = vmatpush3.bf16.msra.mxu0 %v6304_v6 }
 0x47b   : > { %4412 = vmatmul.mubr.f32.gmra.mrb[72].mxu1 %v2961_v44  ;;  %v4854_v44 = vld [vmem:[%s9447_s5 + $0x20] sm:$0xff] }
 0x47c   : > { %4416 = vmatprep.mubr.f32.mxu1 %v9040_v1  ;;  %v2967_v1 = vld [vmem:[#allocation2 + $0x168] sm:$0xff] }
 0x47f   : > { %4417 = vmatmul.mubr.f32.gmra.mrb[74].mxu1 %v2962_v29  ;;  %v4855_v29 = vld [vmem:[%s9447_s5 + $0x28] sm:$0xff] }
 0x480   : > { %4421 = vmatprep.mubr.f32.mxu1 %v9044_v11  ;;  %v2968_v11 = vld [vmem:[#allocation2 + $0x170] sm:$0xff] }
 0x483   : > { %4422 = vmatmul.mubr.f32.gmra.mrb[76].mxu1 %v2963_v23  ;;  %v6308_v23 = vpack.c.bf16 %v4855_v29, %v4854_v44  ;;  %v6328_v44 = vpack.c.bf16 %v4865_v21, %v4864_v32 }
 0x484   : > { %4426 = vmatprep.mubr.f32.mxu1 %v9048_v20  ;;  %v3034_v20 = vld [vmem:[#allocation2 + $0x189] sm:$0xff] }
 0x485   : > { %6309 = vmatprep.subr.bf16.mxu0 %v6308_v23 }
 0x486   : > { %6311 = vmatpush3.bf16.msra.mxu0 %v6308_v23 }
 0x487   : > { %4427 = vmatmul.mubr.f32.gmra.mrb[78].mxu1 %v2964_v0  ;;  %v4856_v0 = vld [vmem:[%s9447_s5 + $0x30] sm:$0xff] }
 0x488   : > { %4431 = vmatprep.mubr.f32.mxu1 %v3029_v49  ;;  %v4857_v49 = vld [vmem:[%s9447_s5 + $0x38] sm:$0xff] }
 0x48b   : > { %4432 = vmatmul.mubr.f32.gmra.mrb[80].mxu1 %v2965_v47  ;;  %v6312_v47 = vpack.c.bf16 %v4857_v49, %v4856_v0 }
 0x48c   : > { %4436 = vmatprep.mubr.f32.mxu1 %v3030_v52  ;;  %v4858_v52 = vld [vmem:[%s9447_s5 + $0x40] sm:$0xff] }
 0x48d   : > { %6313 = vmatprep.subr.bf16.mxu0 %v6312_v47 }
 0x48e   : > { %6315 = vmatpush3.bf16.msra.mxu0 %v6312_v47 }
 0x48f   : > { %4437 = vmatmul.mubr.f32.gmra.mrb[82].mxu1 %v2966_v16  ;;  %v4859_v16 = vld [vmem:[%s9447_s5 + $0x48] sm:$0xff] }
 0x490   : > { %4441 = vmatprep.mubr.f32.mxu1 %v3031_v22  ;;  %v6316_v22 = vpack.c.bf16 %v4859_v16, %v4858_v52 }
 0x492   : > { %6317 = vmatprep.subr.bf16.mxu0 %v6316_v22 }
 0x493   : > { %4442 = vmatmul.mubr.f32.gmra.mrb[84].mxu1 %v2967_v1  ;;  %6319 = vmatpush3.bf16.msra.mxu0 %v6316_v22 }
 0x494   : > { %4446 = vmatprep.mubr.f32.mxu1 %v3032_v24 }
 0x497   : > { %4447 = vmatmul.mubr.f32.gmra.mrb[86].mxu1 %v2968_v11  ;;  %v4860_v11 = vld [vmem:[%s9447_s5 + $0x50] sm:$0xff] }
 0x498   : > { %4451 = vmatprep.mubr.f32.mxu1 %v3033_v60  ;;  %v4861_v60 = vld [vmem:[%s9447_s5 + $0x58] sm:$0xff] }
 0x49b   : > { %4452 = vmatmul.mubr.f32.gmra.mrb[88].mxu1 %v8796_v2  ;;  %v9127_v2 = vld [vmem:[%s9449_s7] sm:$0xff] }
 0x49c   : > { %4456 = vmatprep.mubr.f32.mxu1 %v3034_v20  ;;  %v6320_v20 = vpack.c.bf16 %v4861_v60, %v4860_v11 }
 0x49e   : > { %6321 = vmatprep.subr.bf16.mxu0 %v6320_v20 }
 0x49f   : > { %4457 = vmatmul.mubr.f32.gmra.mrb[90].mxu1 %v8802_v12  ;;  %v9132_v12 = vld [vmem:[%s9449_s7 + $0x18] sm:$0xff]  ;;  %6323 = vmatpush3.bf16.msra.mxu0 %v6320_v20 }
 0x4a0   : > { %4461 = vmatprep.mubr.f32.mxu1 %v3035_v54  ;;  %v9257_v54 = vld [vmem:[%s9446_s4] ss:$0 sm:$0xff] }
 0x4a3   : > { %4462 = vmatmul.mubr.f32.gmra.mrb[92].mxu1 %v2971_v38  ;;  %v4862_v38 = vld [vmem:[%s9447_s5 + $0x60] sm:$0xff] }
 0x4a4   : > { %4466 = vmatprep.mubr.f32.mxu1 %v3036_v5  ;;  %v4863_v5 = vld [vmem:[%s9447_s5 + $0x68] sm:$0xff] }
 0x4a7   : > { %4467 = vmatmul.mubr.f32.gmra.mrb[94].mxu1 %v6823_v61  ;;  %v6324_v61 = vpack.c.bf16 %v4863_v5, %v4862_v38 }
 0x4a8   : > { %4809 = vmatprep.mubr.f32.mxu1 %v4698_v55 }
 0x4a9   : > { %6325 = vmatprep.subr.bf16.mxu0 %v6324_v61 }
 0x4aa   : > { %6327 = vmatpush3.bf16.msra.mxu0 %v6324_v61 }
 0x4ab   : > { %4810 = vmatmul.mubr.f32.vlgmr.msra.gmra.mrb[96].mxu1 %v9127_v2  ;;  %6329 = vmatprep.subr.bf16.mxu0 %v6328_v44 }
 0x4ac   : > { %4814 = vmatprep.mubr.f32.mxu1 %v9132_v12 }
 0x4ae   : > { %6331 = vmatpush3.bf16.msra.mxu0 %v6328_v44 }
 0x4af   : > { %4815 = vmatmul.mubr.f32.gmra.mrb[98].mxu1 %v9139_v36 }
 0x4b0   : > { %4819 = vmatprep.mubr.f32.mxu1 %v9144_v62 }
 0x4b3   : > { %4820 = vmatmul.mubr.f32.gmra.mrb[100].mxu1 %v9151_v42 }
 0x4b4   : > { %4824 = vmatprep.mubr.f32.mxu1 %v9156_v17 }
 0x4b7   : > { %4825 = vmatmul.mubr.f32.gmra.mrb[102].mxu1 %v9163_v28 }
 0x4b8   : > { %4829 = vmatprep.mubr.f32.mxu1 %v9168_v26 }
 0x4bb   : > { %4830 = vmatmul.mubr.f32.gmra.mrb[104].mxu1 %v9175_v13 }
 0x4bc   : > { %4834 = vmatprep.mubr.f32.mxu1 %v9180_v63 }
 0x4bf   : > { %4835 = vmatmul.mubr.f32.gmra.mrb[106].mxu1 %v9187_v46 }
 0x4c0   : > { %4839 = vmatprep.mubr.f32.mxu1 %v9192_v18 }
 0x4c3   : > { %4840 = vmatmul.mubr.f32.gmra.mrb[108].mxu1 %v9199_v51 }
 0x4c4   : > { %4844 = vmatprep.mubr.f32.mxu1 %v9204_v56 }
 0x4c7   : > { %4845 = vmatmul.mubr.f32.gmra.mrb[110].mxu1 %v9211_v8 }
 0x4c8   : > { %5042 = vmatprep.mubr.f32.mxu1 %v4698_v55 }
 0x4e8   : > { %v9244_v1 = vpop.f32.mrb[94].mxu0 }
 0x4e9   : > { %v9246_v24 = vpop.f32.mrb[95].mxu0 }
 0x4fe   : > { %v4313_v55 = vpop.f32.mrb[32].mxu1 }
 0x4ff   : > { %v6396_v4 = vadd.f32 %v9257_v54, %v4313_v55  ;;  %v4315_v14 = vpop.f32.mrb[33].mxu1 }
 0x501   : > { %v9267_v50 = vadd.f32 %v6396_v4, %v8784_v45 }
 0x502   : > { %v4318_v6 = vpop.f32.mrb[34].mxu1 }
 0x503   : > { %v6397_v29 = vadd.f32 %v9257_v54, %v4318_v6  ;;  %v4320_v23 = vpop.f32.mrb[35].mxu1 }
 0x505   : > { %v9277_v0 = vadd.f32 %v6397_v29, %v8781_v25 }
 0x506   : > { %v4323_v45 = vpop.f32.mrb[36].mxu1 }
 0x507   : > { %v6334_v49 = vpack.c.bf16 %v9277_v0, %v9267_v50  ;;  %v6398_v47 = vadd.f32 %v9257_v54, %v4323_v45  ;;  %v4325_v52 = vpop.f32.mrb[37].mxu1 }
 0x509   : > { %v9283_v16 = vadd.f32 %v6398_v47, %v8792_v34 }
 0x50a   : > { %v4328_v22 = vpop.f32.mrb[38].mxu1 }
 0x50b   : > { %v6399_v11 = vadd.f32 %v9257_v54, %v4328_v22  ;;  %v4330_v60 = vpop.f32.mrb[39].mxu1 }
 0x50d   : > { %v9287_v20 = vadd.f32 %v6399_v11, %v8789_v39 }
 0x50e   : > { %v4333_v25 = vpop.f32.mrb[40].mxu1 }
 0x50f   : > { %v6338_v38 = vpack.c.bf16 %v9287_v20, %v9283_v16  ;;  %v6400_v5 = vadd.f32 %v9257_v54, %v4333_v25  ;;  %v4335_v55 = vpop.f32.mrb[41].mxu1 }
 0x511   : > { %v9293_v61 = vadd.f32 %v6400_v5, %v8804_v27 }
 0x512   : > { %v4338_v4 = vpop.f32.mrb[42].mxu1 }
 0x513   : > { %v6401_v34 = vadd.f32 %v9257_v54, %v4338_v4  ;;  %v4340_v14 = vpop.f32.mrb[43].mxu1 }
 0x515   : > { %v9297_v32 = vadd.f32 %v6401_v34, %v8799_v43 }
 0x516   : > { %v4343_v21 = vpop.f32.mrb[44].mxu1 }
 0x517   : > { %v6342_v39 = vpack.c.bf16 %v9297_v32, %v9293_v61  ;;  %v6402_v6 = vadd.f32 %v9257_v54, %v4343_v21  ;;  %v4345_v44 = vpop.f32.mrb[45].mxu1 }
 0x519   : > { %v9303_v29 = vadd.f32 %v6402_v6, %v8823_v30 }
 0x51a   : > { %v4348_v23 = vpop.f32.mrb[46].mxu1 }
 0x51b   : > { %v6403_v27 = vadd.f32 %v9257_v54, %v4348_v23  ;;  %v4350_v45 = vpop.f32.mrb[47].mxu1 }
 0x51d   : > { %v9307_v47 = vadd.f32 %v6403_v27, %v8821_v40 }
 0x51e   : > { %v4353_v52 = vpop.f32.mrb[48].mxu1 }
 0x51f   : > { %v6346_v43 = vpack.c.bf16 %v9307_v47, %v9303_v29  ;;  %v6404_v22 = vadd.f32 %v9257_v54, %v4353_v52  ;;  %v4355_v11 = vpop.f32.mrb[49].mxu1 }
 0x521   : > { %v9313_v60 = vadd.f32 %v6404_v22, %v8845_v9 }
 0x522   : > { %v4358_v25 = vpop.f32.mrb[50].mxu1 }
 0x523   : > { %v6405_v30 = vadd.f32 %v9257_v54, %v4358_v25  ;;  %v4360_v5 = vpop.f32.mrb[51].mxu1 }
 0x525   : > { %v9317_v55 = vadd.f32 %v6405_v30, %v8842_v48 }
 0x526   : > { %v4363_v4 = vpop.f32.mrb[52].mxu1 }
 0x527   : > { %v6350_v40 = vpack.c.bf16 %v9317_v55, %v9313_v60  ;;  %v6406_v34 = vadd.f32 %v9257_v54, %v4363_v4  ;;  %v4365_v14 = vpop.f32.mrb[53].mxu1 }
 0x529   : > { %v9323_v21 = vadd.f32 %v6406_v34, %v8869_v19 }
 0x52a   : > { %v4368_v6 = vpop.f32.mrb[54].mxu1 }
 0x52b   : > { %v6407_v9 = vadd.f32 %v9257_v54, %v4368_v6  ;;  %v4370_v44 = vpop.f32.mrb[55].mxu1 }
 0x52d   : > { %v9327_v23 = vadd.f32 %v6407_v9, %v8866_v58 }
 0x52e   : > { %v4373_v27 = vpop.f32.mrb[56].mxu1 }
 0x52f   : > { %v6354_v48 = vpack.c.bf16 %v9327_v23, %v9323_v21  ;;  %v6408_v45 = vadd.f32 %v9257_v54, %v4373_v27  ;;  %v4375_v52 = vpop.f32.mrb[57].mxu1 }
 0x531   : > { %v9333_v22 = vadd.f32 %v6408_v45, %v8893_v7 }
 0x532   : > { %v4378_v11 = vpop.f32.mrb[58].mxu1 }
 0x533   : > { %v6409_v19 = vadd.f32 %v9257_v54, %v4378_v11  ;;  %v4380_v25 = vpop.f32.mrb[59].mxu1 }
 0x535   : > { %v9337_v30 = vadd.f32 %v6409_v19, %v8890_v57 }
 0x536   : > { %v4383_v5 = vpop.f32.mrb[60].mxu1 }
 0x537   : > { %v6358_v58 = vpack.c.bf16 %v9337_v30, %v9333_v22  ;;  %v6410_v4 = vadd.f32 %v9257_v54, %v4383_v5  ;;  %v4385_v34 = vpop.f32.mrb[61].mxu1 }
 0x539   : > { %v9343_v14 = vadd.f32 %v6410_v4, %v8917_v59 }
 0x53a   : > { %v4388_v6 = vpop.f32.mrb[62].mxu1 }
 0x53b   : > { %v6411_v7 = vadd.f32 %v9257_v54, %v4388_v6  ;;  %v4390_v9 = vpop.f32.mrb[63].mxu1 }
 0x53d   : > { %v9347_v44 = vadd.f32 %v6411_v7, %v8914_v37 }
 0x53e   : > { %v4393_v27 = vpop.f32.mrb[64].mxu1 }
 0x53f   : > { %v6362_v57 = vpack.c.bf16 %v9347_v44, %v9343_v14  ;;  %v6412_v45 = vadd.f32 %v9257_v54, %v4393_v27  ;;  %v4395_v52 = vpop.f32.mrb[65].mxu1 }
 0x541   : > { %v4619_v11 = vadd.f32 %v6412_v45, %v8941_v41 }
 0x542   : > { %v4398_v19 = vpop.f32.mrb[66].mxu1 }
 0x543   : > { %v6413_v59 = vadd.f32 %v9257_v54, %v4398_v19  ;;  %v4400_v25 = vpop.f32.mrb[67].mxu1 }
 0x545   : > { %v4624_v5 = vadd.f32 %v6413_v59, %v8938_v53 }
 0x546   : > { %v4403_v4 = vpop.f32.mrb[68].mxu1 }
 0x547   : > { %v6414_v34 = vadd.f32 %v9257_v54, %v4403_v4  ;;  %v4405_v37 = vpop.f32.mrb[69].mxu1  ;;  %v6332_v6 = vpack.c.bf16 %v4624_v5, %v4619_v11 }
 0x549   : > { %v4629_v7 = vadd.f32 %v6414_v34, %v8965_v3  ;;  %6333 = vmatprep.subr.bf16.mxu1 %v6332_v6 }
 0x54a   : > { %v4408_v9 = vpop.f32.mrb[70].mxu1  ;;  %6335 = vmatpush3.bf16.msra.mxu1 %v6334_v49 }
 0x54b   : > { %v6415_v41 = vadd.f32 %v9257_v54, %v4408_v9  ;;  %v4410_v27 = vpop.f32.mrb[71].mxu1  ;;  %v9519_v9 = vld [vmem:[#allocation5_spill] sm:$0xff] }
 0x54d   : > { %v4634_v45 = vadd.f32 %v6415_v41, %v8962_v31 }
 0x54e   : > { %v4413_v52 = vpop.f32.mrb[72].mxu1 }
 0x54f   : > { %v6416_v53 = vadd.f32 %v9257_v54, %v4413_v52  ;;  %v4415_v19 = vpop.f32.mrb[73].mxu1  ;;  %v6336_v59 = vpack.c.bf16 %v4634_v45, %v4629_v7 }
 0x550   : > { %v9521_v19 = vld [vmem:[#allocation13_spill] sm:$0xff] }
 0x551   : > { %v4639_v11 = vadd.f32 %v6416_v53, %v8991_v35  ;;  %6337 = vmatprep.subr.bf16.mxu1 %v6336_v59 }
 0x552   : > { %v4418_v3 = vpop.f32.mrb[74].mxu1  ;;  %6339 = vmatpush3.bf16.msra.mxu1 %v6338_v38 }
 0x553   : > { %v6417_v50 = vadd.f32 %v9257_v54, %v4418_v3  ;;  %v4420_v0 = vpop.f32.mrb[75].mxu1 }
 0x555   : > { %v4644_v49 = vadd.f32 %v6417_v50, %v8988_v15 }
 0x556   : > { %v4423_v25 = vpop.f32.mrb[76].mxu1 }
 0x557   : > { %v6418_v31 = vadd.f32 %v9257_v54, %v4423_v25  ;;  %v4425_v5 = vpop.f32.mrb[77].mxu1  ;;  %v6340_v4 = vpack.c.bf16 %v4644_v49, %v4639_v11 }
 0x559   : > { %v4649_v34 = vadd.f32 %v6418_v31, %v9002_v10  ;;  %6341 = vmatprep.subr.bf16.mxu1 %v6340_v4  ;;  %v9523_v31 = vld [vmem:[#allocation15_spill] sm:$0xff] }
 0x55a   : > { %v4428_v35 = vpop.f32.mrb[78].mxu1  ;;  %6343 = vmatpush3.bf16.msra.mxu1 %v6342_v39  ;;  %v9520_v39 = vld [vmem:[#allocation4_spill] sm:$0xff] }
 0x55b   : > { %v6419_v16 = vadd.f32 %v9257_v54, %v4428_v35  ;;  %v4430_v20 = vpop.f32.mrb[79].mxu1 }
 0x55d   : > { %v4654_v38 = vadd.f32 %v6419_v16, %v8999_v33 }
 0x55e   : > { %v4433_v37 = vpop.f32.mrb[80].mxu1 }
 0x55f   : > { %v6420_v15 = vadd.f32 %v9257_v54, %v4433_v37  ;;  %v4435_v6 = vpop.f32.mrb[81].mxu1  ;;  %v6344_v7 = vpack.c.bf16 %v4654_v38, %v4649_v34 }
 0x561   : > { %v4659_v41 = vadd.f32 %v6420_v15, %v9519_v9  ;;  %6345 = vmatprep.subr.bf16.mxu1 %v6344_v7 }
 0x562   : > { %v4438_v10 = vpop.f32.mrb[82].mxu1  ;;  %6347 = vmatpush3.bf16.msra.mxu1 %v6346_v43  ;;  %v9522_v43 = vld [vmem:[#allocation8_spill] sm:$0xff] }
 0x563   : > { %v6421_v61 = vadd.f32 %v9257_v54, %v4438_v10  ;;  %v4440_v32 = vpop.f32.mrb[83].mxu1 }
 0x565   : > { %v4664_v27 = vadd.f32 %v6421_v61, %v9520_v39 }
 0x566   : > { %v4443_v45 = vpop.f32.mrb[84].mxu1 }
 0x567   : > { %v6422_v33 = vadd.f32 %v9257_v54, %v4443_v45  ;;  %v4445_v52 = vpop.f32.mrb[85].mxu1  ;;  %v6348_v53 = vpack.c.bf16 %v4664_v27, %v4659_v41 }
 0x569   : > { %v4669_v59 = vadd.f32 %v6422_v33, %v9521_v19  ;;  %6349 = vmatprep.subr.bf16.mxu1 %v6348_v53 }
 0x56a   : > { %v4448_v11 = vpop.f32.mrb[86].mxu1  ;;  %6351 = vmatpush3.bf16.msra.mxu1 %v6350_v40  ;;  %v9524_v40 = vld [vmem:[#allocation14_spill] sm:$0xff] }
 0x56b   : > { %v6423_v29 = vadd.f32 %v9257_v54, %v4448_v11  ;;  %v4450_v47 = vpop.f32.mrb[87].mxu1 }
 0x56d   : > { %v4674_v3 = vadd.f32 %v6423_v29, %v9522_v43 }
 0x56e   : > { %v4453_v50 = vpop.f32.mrb[88].mxu1 }
 0x56f   : > { %v6424_v0 = vadd.f32 %v9257_v54, %v4453_v50  ;;  %v4455_v49 = vpop.f32.mrb[89].mxu1  ;;  %v6352_v25 = vpack.c.bf16 %v4674_v3, %v4669_v59 }
 0x571   : > { %v4679_v5 = vadd.f32 %v6424_v0, %v9523_v31  ;;  %6353 = vmatprep.subr.bf16.mxu1 %v6352_v25 }
 0x572   : > { %v4458_v4 = vpop.f32.mrb[90].mxu1  ;;  %6355 = vmatpush3.bf16.msra.mxu1 %v6354_v48 }
 0x573   : > { %v6425_v60 = vadd.f32 %v9257_v54, %v4458_v4  ;;  %v4460_v55 = vpop.f32.mrb[91].mxu1 }
 0x575   : > { %v4684_v34 = vadd.f32 %v6425_v60, %v9524_v40 }
 0x576   : > { %v4463_v35 = vpop.f32.mrb[92].mxu1 }
 0x577   : > { %v6426_v16 = vadd.f32 %v9257_v54, %v4463_v35  ;;  %v4465_v20 = vpop.f32.mrb[93].mxu1  ;;  %v6356_v38 = vpack.c.bf16 %v4684_v34, %v4679_v5 }
 0x579   : > { %v4689_v37 = vadd.f32 %v6426_v16, %v9246_v24  ;;  %6357 = vmatprep.subr.bf16.mxu1 %v6356_v38 }
 0x57a   : > { %v4468_v15 = vpop.f32.mrb[94].mxu1  ;;  %6359 = vmatpush3.bf16.msra.mxu1 %v6358_v58 }
 0x57b   : > { %v6427_v21 = vadd.f32 %v9257_v54, %v4468_v15  ;;  %v4470_v23 = vpop.f32.mrb[95].mxu1 }
 0x57d   : > { %v4694_v48 = vadd.f32 %v6427_v21, %v9244_v1 }
 0x57e   : > { %v5512_v6 = vpop.f32.mrb[96].mxu1 }
 0x57f   : > { %v5513_v7 = vpop.f32.mrb[97].mxu1  ;;  %v6360_v9 = vpack.c.bf16 %v4694_v48, %v4689_v37 }
 0x580   : > { %v5514_v41 = vadd.f32 %v5513_v7, %v5512_v6 }
 0x581   : > { %6361 = vmatprep.subr.bf16.mxu1 %v6360_v9 }
 0x582   : > { %v5515_v10 = vpop.f32.mrb[98].mxu1  ;;  %6363 = vmatpush3.bf16.msra.mxu1 %v6362_v57  ;;  %5808 = vmatprep.mubr.f32.mxu0 %v5514_v41 }
 0x583   : > { %v5516_v24 = vpop.f32.mrb[99].mxu1 }
 0x584   : > { %v5517_v61 = vadd.f32 %v5516_v24, %v5515_v10 }
 0x585   : > { %5043 = vmatmul.mubr.f32.vlgmr.msra.gmra.mrb[112].mxu1 %v9127_v2 }
 0x586   : > { %5809 = vmatmul.mubr.f32.vlgmr.msra.gmra.mrb[96].mxu0 %v5517_v61  ;;  %v5518_v54 = vpop.f32.mrb[100].mxu1  ;;  %5047 = vmatprep.mubr.f32.mxu1 %v9132_v12 }
 0x587   : > { %v5519_v1 = vpop.f32.mrb[101].mxu1 }
 0x588   : > { %v5520_v22 = vadd.f32 %v5519_v1, %v5518_v54 }
 0x589   : > { %5048 = vmatmul.mubr.f32.gmra.mrb[114].mxu1 %v9139_v36 }
 0x58a   : > { %v5521_v30 = vpop.f32.mrb[102].mxu1  ;;  %5052 = vmatprep.mubr.f32.mxu1 %v9144_v62  ;;  %5811 = vmatprep.mubr.f32.mxu0 %v5520_v22 }
 0x58b   : > { %v5522_v58 = vpop.f32.mrb[103].mxu1 }
 0x58c   : > { %v5523_v14 = vadd.f32 %v5522_v58, %v5521_v30 }
 0x58d   : > { %5053 = vmatmul.mubr.f32.gmra.mrb[116].mxu1 %v9151_v42 }
 0x58e   : > { %5812 = vmatmul.mubr.f32.gmra.mrb[98].mxu0 %v5523_v14  ;;  %v5524_v44 = vpop.f32.mrb[104].mxu1  ;;  %5057 = vmatprep.mubr.f32.mxu1 %v9156_v17 }
 0x58f   : > { %v5525_v2 = vpop.f32.mrb[105].mxu1 }
 0x590   : > { %v5526_v57 = vadd.f32 %v5525_v2, %v5524_v44 }
 0x591   : > { %5058 = vmatmul.mubr.f32.gmra.mrb[118].mxu1 %v9163_v28 }
 0x592   : > { %v5527_v12 = vpop.f32.mrb[106].mxu1  ;;  %5062 = vmatprep.mubr.f32.mxu1 %v9168_v26  ;;  %5814 = vmatprep.mubr.f32.mxu0 %v5526_v57 }
 0x593   : > { %v5528_v36 = vpop.f32.mrb[107].mxu1 }
 0x594   : > { %v5529_v32 = vadd.f32 %v5528_v36, %v5527_v12 }
 0x595   : > { %5063 = vmatmul.mubr.f32.gmra.mrb[120].mxu1 %v9175_v13 }
 0x596   : > { %5815 = vmatmul.mubr.f32.gmra.mrb[100].mxu0 %v5529_v32  ;;  %v5530_v62 = vpop.f32.mrb[108].mxu1  ;;  %5067 = vmatprep.mubr.f32.mxu1 %v9180_v63  ;;  %v5380_v63 = vld [vmem:[%s9448_s6] ss:$0 sm:$0xff] }
 0x597   : > { %v5531_v42 = vpop.f32.mrb[109].mxu1 }
 0x598   : > { %v5532_v39 = vadd.f32 %v5531_v42, %v5530_v62 }
 0x599   : > { %5068 = vmatmul.mubr.f32.gmra.mrb[122].mxu1 %v9187_v46 }
 0x59a   : > { %v5533_v17 = vpop.f32.mrb[110].mxu1  ;;  %5072 = vmatprep.mubr.f32.mxu1 %v9192_v18  ;;  %5817 = vmatprep.mubr.f32.mxu0 %v5532_v39 }
 0x59b   : > { %v5534_v28 = vpop.f32.mrb[111].mxu1 }
 0x59c   : > { %v5535_v26 = vadd.f32 %v5534_v28, %v5533_v17 }
 0x59d   : > { %5073 = vmatmul.mubr.f32.gmra.mrb[124].mxu1 %v9199_v51 }
 0x59e   : > { %5818 = vmatmul.mubr.f32.gmra.mrb[102].mxu0 %v5535_v26  ;;  %5077 = vmatprep.mubr.f32.mxu1 %v9204_v56 }
 0x5a1   : > { %5078 = vmatmul.mubr.f32.gmra.mrb[126].mxu1 %v9211_v8 }
 0x658   : > { %v5592_v13 = vpop.f32.mrb[112].mxu1 }
 0x659   : > { %v5810_v27 = vpop.f32.mrb[96].mxu0  ;;  %v5593_v46 = vpop.f32.mrb[113].mxu1 }
 0x65a   : > { %v5594_v45 = vadd.f32 %v5593_v46, %v5592_v13  ;;  %v4939_v18 = vpop.f32.mrb[97].mxu0  ;;  %v4945_v52 = vadd.f32 %v5810_v27, %v5380_v63 }
 0x65b   : > { %v4940_v33 = vadd.f32 %v5380_v63, %v4939_v18 }
 0x65c   : > { %v5595_v51 = vpop.f32.mrb[114].mxu1 }
 0x65d   : > { %v5045_v56 = vadd.f32 %v5594_v45, %v4940_v33  ;;  %v5596_v8 = vpop.f32.mrb[115].mxu1 }
 0x65e   : > { %v5597_v53 = vadd.f32 %v5596_v8, %v5595_v51 }
 0x65f   : > { %5083 = vst [vmem:[%s9429_s9] sm:$0xff] %v5045_v56 }
 0x660   : > { %v5050_v19 = vadd.f32 %v5597_v53, %v4945_v52  ;;  %v5598_v59 = vpop.f32.mrb[116].mxu1 }
 0x661   : > { %v5813_v11 = vpop.f32.mrb[98].mxu0  ;;  %v5599_v29 = vpop.f32.mrb[117].mxu1 }
 0x662   : > { %5084 = vst [vmem:[%s9429_s9 + $0x8] sm:$0xff] %v5050_v19  ;;  %v5600_v47 = vadd.f32 %v5599_v29, %v5598_v59  ;;  %v4949_v43 = vpop.f32.mrb[99].mxu0  ;;  %v4955_v25 = vadd.f32 %v5813_v11, %v5380_v63 }
 0x663   : > { %v4950_v3 = vadd.f32 %v5380_v63, %v4949_v43 }
 0x664   : > { %v5601_v50 = vpop.f32.mrb[118].mxu1 }
 0x665   : > { %v5055_v0 = vadd.f32 %v5600_v47, %v4950_v3  ;;  %v5602_v49 = vpop.f32.mrb[119].mxu1 }
 0x666   : > { %v5603_v31 = vadd.f32 %v5602_v49, %v5601_v50 }
 0x667   : > { %5085 = vst [vmem:[%s9429_s9 + $0x10] sm:$0xff] %v5055_v0 }
 0x668   : > { %v5060_v5 = vadd.f32 %v5603_v31, %v4955_v25  ;;  %v5604_v4 = vpop.f32.mrb[120].mxu1 }
 0x669   : > { %v5816_v60 = vpop.f32.mrb[100].mxu0  ;;  %v5605_v55 = vpop.f32.mrb[121].mxu1 }
 0x66a   : > { %5086 = vst [vmem:[%s9429_s9 + $0x18] sm:$0xff] %v5060_v5  ;;  %v5606_v40 = vadd.f32 %v5605_v55, %v5604_v4  ;;  %v4959_v34 = vpop.f32.mrb[101].mxu0  ;;  %v4965_v37 = vadd.f32 %v5816_v60, %v5380_v63 }
 0x66b   : > { %v4960_v35 = vadd.f32 %v5380_v63, %v4959_v34 }
 0x66c   : > { %v5607_v16 = vpop.f32.mrb[122].mxu1 }
 0x66d   : > { %v5065_v20 = vadd.f32 %v5606_v40, %v4960_v35  ;;  %v5608_v38 = vpop.f32.mrb[123].mxu1 }
 0x66e   : > { %v5609_v15 = vadd.f32 %v5608_v38, %v5607_v16 }
 0x66f   : > { %5087 = vst [vmem:[%s9429_s9 + $0x20] sm:$0xff] %v5065_v20 }
 0x670   : > { %v5070_v21 = vadd.f32 %v5609_v15, %v4965_v37  ;;  %v5610_v23 = vpop.f32.mrb[124].mxu1 }
 0x671   : > { %v5819_v48 = vpop.f32.mrb[102].mxu0  ;;  %v5611_v6 = vpop.f32.mrb[125].mxu1 }
 0x672   : > { %5088 = vst [vmem:[%s9429_s9 + $0x28] sm:$0xff] %v5070_v21  ;;  %v5612_v7 = vadd.f32 %v5611_v6, %v5610_v23  ;;  %v4969_v9 = vpop.f32.mrb[103].mxu0  ;;  %v4975_v54 = vadd.f32 %v5819_v48, %v5380_v63 }
 0x673   : > { %v4970_v41 = vadd.f32 %v5380_v63, %v4969_v9 }
 0x674   : > { %v5613_v10 = vpop.f32.mrb[126].mxu1 }
 0x675   : > { %v5075_v24 = vadd.f32 %v5612_v7, %v4970_v41  ;;  %v5614_v61 = vpop.f32.mrb[127].mxu1 }
 0x676   : > { %v5615_v1 = vadd.f32 %v5614_v61, %v5613_v10 }
 0x677   : > { %5089 = vst [vmem:[%s9429_s9 + $0x30] sm:$0xff] %v5075_v24 }
 0x678   : > { %v5080_v22 = vadd.f32 %v5615_v1, %v4975_v54 }
 0x67a   : > { %5090 = vst [vmem:[%s9429_s9 + $0x38] sm:$0xff] %v5080_v22 }
 0x67b PF: > { %s18_s27 = sadd.s32 1, %s6830_s27  }
 0x67c   : > { %p15_p4 = scmp.ge.s32.totalorder %s18_s27, 4  }
 0x67e   :  { %17 = sbr.rel (!%p15_p4) target bundleno = 1 (0x1), region = 87 }

</bundles_post_ra>
